<compile_context>
chip_gen: v5e
topology: v5e:2x2
jax: 0.10.0
libtpu: 0.0.40
codegen_flags: <defaults>
</compile_context>

<pallas_src>
import math

import jax
import jax.numpy as jnp
import numpy as np
from jax import lax
from jax.experimental import pallas as pl
from jax.experimental.pallas import tpu as pltpu

DMODEL = 512
NUM_HEADS = 8
HEAD_DIM = DMODEL // NUM_HEADS


# ---------------------------------------------------------------------------
# Fused kernel: one grid step per batch element.
#   x_ref    : (T, D)      bf16   activations for batch b
#   wqkv_ref : (D, 3D)     bf16   VMEM-resident
#   bqkv_ref : (1, 3D)     fp32
#   wout_ref : (D, D)      bf16   VMEM-resident
#   bout_ref : (1, D)      fp32
#   o_ref    : (T, D)      fp32   lane-dense output slab
# ---------------------------------------------------------------------------
def _mhsa_fused_kernel(x_ref, wqkv_ref, bqkv_ref, wout_ref, bout_ref, o_ref):
    T = x_ref.shape[0]
    scale = 1.0 / math.sqrt(HEAD_DIM)

    # ---- QKV projection: bf16 MXU operands, fp32 accumulate, fp32 bias ----
    qkv = jnp.dot(x_ref[...], wqkv_ref[...],
                  preferred_element_type=jnp.float32) + bqkv_ref[...]

    # ---- head-major layout: one reshape/transpose per 512-wide slab --------
    # (slices at 0 / 512 / 1024 are 128-lane aligned; no per-head 64-wide
    #  slices and no concatenate later)
    def to_heads(slab):  # (T, D) fp32 -> (H, T, hd) bf16
        return jnp.transpose(slab.reshape(T, NUM_HEADS, HEAD_DIM),
                             (1, 0, 2)).astype(jnp.bfloat16)

    q = to_heads(qkv[:, :DMODEL])
    k = to_heads(qkv[:, DMODEL:2 * DMODEL])
    v = to_heads(qkv[:, 2 * DMODEL:])

    # ---- scores: single head-batched matmul (bf16 operands, fp32 acc) ------
    s = jnp.einsum("hqd,hkd->hqk", q, k,
                   preferred_element_type=jnp.float32) * scale

    # ---- causal mask + fp32 softmax ----------------------------------------
    row = lax.broadcasted_iota(jnp.int32, s.shape, 1)
    col = lax.broadcasted_iota(jnp.int32, s.shape, 2)
    s = jnp.where(col <= row, s, -jnp.inf)
    m = jnp.max(s, axis=-1, keepdims=True)
    p = jnp.exp(s - m)
    denom = jnp.sum(p, axis=-1, keepdims=True)
    # Downcast only AFTER normalization (softmax math stays fp32).
    wgt = (p * pl.reciprocal(denom, approx=True)).astype(jnp.bfloat16)

    # ---- PV: head-batched matmul (bf16 operands, fp32 acc) -----------------
    ctx = jnp.einsum("hqk,hkd->hqd", wgt, v,
                     preferred_element_type=jnp.float32)        # (H, T, hd)

    # ---- merge heads into a lane-dense (T, D) slab + output projection -----
    ctx = jnp.transpose(ctx, (1, 0, 2)).reshape(T, DMODEL).astype(jnp.bfloat16)
    out = jnp.dot(ctx, wout_ref[...],
                  preferred_element_type=jnp.float32) + bout_ref[...]
    o_ref[...] = out.astype(o_ref.dtype)


def mhsa_forward(x, params):
    """x: (B, T, DMODEL) fp32 -> (B, T, DMODEL) fp32."""
    B, T, D = x.shape
    assert D == DMODEL

    # fp32 -> bf16 at the HBM boundary (halves DMA traffic, native MXU path).
    x_b = x.astype(jnp.bfloat16)
    w_qkv = params["w_qkv"].astype(jnp.bfloat16)
    w_out = params["w_out"].astype(jnp.bfloat16)
    b_qkv = params["b_qkv"].reshape(1, 3 * D).astype(jnp.float32)
    b_out = params["b_out"].reshape(1, D).astype(jnp.float32)

    flops = (2 * B * T * D * 3 * D            # qkv projection
             + 4 * B * NUM_HEADS * T * T * HEAD_DIM   # qk^T + PV
             + 2 * B * T * D * D)             # out projection
    bytes_accessed = (2 * B * T * D                       # x (bf16)
                      + 2 * (D * 3 * D + D * D)           # weights (bf16)
                      + 4 * (3 * D + D)                    # biases (fp32)
                      + 4 * B * T * D)                     # output (fp32)

    # TODO(synk): for large T (multi-MiB score matrices / long sequences),
    # switch to a flash-style grid (B, T//tq, T//tk) with online softmax and a
    # v7x-aware (64 MiB) VMEM budget; this full-slab-per-batch fused design is
    # sized for the small deployed T.
    return pl.pallas_call(
        _mhsa_fused_kernel,
        out_shape=jax.ShapeDtypeStruct((B, T, D), jnp.float32),
        grid=(B,),
        in_specs=[
            pl.BlockSpec((None, T, D), lambda b: (b, 0, 0)),   # x: per-batch slab
            pl.BlockSpec((D, 3 * D), lambda b: (0, 0)),        # w_qkv: VMEM-resident
            pl.BlockSpec((1, 3 * D), lambda b: (0, 0)),        # b_qkv
            pl.BlockSpec((D, D), lambda b: (0, 0)),            # w_out: VMEM-resident
            pl.BlockSpec((1, D), lambda b: (0, 0)),            # b_out
        ],
        out_specs=pl.BlockSpec((None, T, D), lambda b: (b, 0, 0)),
        compiler_params=pltpu.CompilerParams(
            dimension_semantics=("parallel",),
            vmem_limit_bytes=48 * 1024 * 1024),
        cost_estimate=pl.CostEstimate(
            flops=flops,
            transcendentals=B * NUM_HEADS * T * T,
            bytes_accessed=bytes_accessed),
    )(x_b, w_qkv, b_qkv, w_out, b_out)


# ---------------------------------------------------------------------------
# Pure-JAX fp32 reference (mirrors the PyTorch forward) for correctness check
# ---------------------------------------------------------------------------
def mhsa_reference(x, params):
    B, T, D = x.shape
    qkv = x @ params["w_qkv"] + params["b_qkv"]
    qkv = qkv.reshape(B, T, 3, NUM_HEADS, HEAD_DIM)
    qkv = jnp.transpose(qkv, (2, 0, 3, 1, 4))
    q, k, v = qkv[0], qkv[1], qkv[2]
    s = jnp.einsum("bhqd,bhkd->bhqk", q, k) / math.sqrt(HEAD_DIM)
    mask = jnp.tril(jnp.ones((T, T)))[None, None]
    s = jnp.where(mask == 0, -jnp.inf, s)
    w = jax.nn.softmax(s, axis=-1)
    o = jnp.einsum("bhqk,bhkd->bhqd", w, v)
    o = jnp.transpose(o, (0, 2, 1, 3)).reshape(B, T, D)
    return o @ params["w_out"] + params["b_out"]


def init_params(key):
    k1, k2, k3, k4 = jax.random.split(key, 4)
    bound = 1.0 / math.sqrt(DMODEL)
    return {
        # weights stored as (in_features, out_features) so forward is x @ W + b
        "w_qkv": jax.random.uniform(k1, (DMODEL, 3 * DMODEL), jnp.float32,
                                    -bound, bound),
        "b_qkv": jax.random.uniform(k2, (3 * DMODEL,), jnp.float32, -bound, bound),
        "w_out": jax.random.uniform(k3, (DMODEL, DMODEL), jnp.float32,
                                    -bound, bound),
        "b_out": jax.random.uniform(k4, (DMODEL,), jnp.float32, -bound, bound),
    }


if __name__ == "__main__":
    key = jax.random.PRNGKey(0)
    kx, kp = jax.random.split(key)

    B, T = 2, 8
    x = jax.random.normal(kx, (B, T, DMODEL), dtype=jnp.float32)
    params = init_params(kp)

    out = jax.block_until_ready(jax.jit(mhsa_forward)(x, params))
    ref = mhsa_reference(x, params)

    # bf16 MXU operands everywhere + approx reciprocal in the softmax denom
    # => looser tolerance than a pure-fp32 comparison.
    np.testing.assert_allclose(np.asarray(out), np.asarray(ref),
                               rtol=5e-2, atol=5e-2)
    print("KERNEL_OK")
</pallas_src>

<mosaic_0001>
module attributes {stable_mosaic.version = 11 : i64} {
  func.func @_mhsa_fused_kernel(%arg0: i32, %arg1: memref<1x8x512xbf16, #tpu.memory_space<vmem>>, %arg2: memref<512x1536xbf16, #tpu.memory_space<vmem>>, %arg3: memref<1x1536xf32, #tpu.memory_space<vmem>>, %arg4: memref<512x512xbf16, #tpu.memory_space<vmem>>, %arg5: memref<1x512xf32, #tpu.memory_space<vmem>>, %arg6: memref<1x8x512xf32, #tpu.memory_space<vmem>>) attributes {dimension_semantics = [#tpu.dimension_semantics<parallel>], iteration_bounds = array<i64: 2>, scalar_prefetch = 0 : i64, scratch_operands = 0 : i64, tpu.core_type = #tpu.core_type<tc>, window_params = [{transform_indices = @transform_0, window_bounds = array<i64: 1, 8, 512>}, {pipeline_mode = #tpu.pipeline_mode<synchronous>, transform_indices = @transform_1, window_bounds = array<i64: 512, 1536>}, {pipeline_mode = #tpu.pipeline_mode<synchronous>, transform_indices = @transform_2, window_bounds = array<i64: 1, 1536>}, {pipeline_mode = #tpu.pipeline_mode<synchronous>, transform_indices = @transform_3, window_bounds = array<i64: 512, 512>}, {pipeline_mode = #tpu.pipeline_mode<synchronous>, transform_indices = @transform_4, window_bounds = array<i64: 1, 512>}, {transform_indices = @transform_5, window_bounds = array<i64: 1, 8, 512>}]} {
    %c0 = arith.constant 0 : index
    %c0_0 = arith.constant 0 : index
    %c0_1 = arith.constant 0 : index
    %0 = vector.load %arg1[%c0, %c0_0, %c0_1] : memref<1x8x512xbf16, #tpu.memory_space<vmem>>, vector<1x8x512xbf16>
    %1 = vector.shape_cast %0 : vector<1x8x512xbf16> to vector<8x512xbf16>
    %c0_2 = arith.constant 0 : index
    %c0_3 = arith.constant 0 : index
    %2 = vector.load %arg2[%c0_2, %c0_3] : memref<512x1536xbf16, #tpu.memory_space<vmem>>, vector<512x1536xbf16>
    %cst = arith.constant dense<0.000000e+00> : vector<8x1536xf32>
    %3 = tpu.matmul %1, %2, %cst {dimension_numbers = #tpu.dot_dimension_numbers<[1], [0], [0], [1], [0, 0, 1, 1], [], []>} : vector<8x512xbf16>, vector<512x1536xbf16>, vector<8x1536xf32> -> vector<8x1536xf32>
    %c0_4 = arith.constant 0 : index
    %c0_5 = arith.constant 0 : index
    %4 = vector.load %arg3[%c0_4, %c0_5] : memref<1x1536xf32, #tpu.memory_space<vmem>>, vector<1x1536xf32>
    %5 = vector.broadcast %4 : vector<1x1536xf32> to vector<8x1536xf32>
    %6 = arith.addf %3, %5 : vector<8x1536xf32>
    %7 = vector.extract_strided_slice %6 {offsets = [0, 0], sizes = [8, 512], strides = [1, 1]} : vector<8x1536xf32> to vector<8x512xf32>
    %8 = vector.shape_cast %7 : vector<8x512xf32> to vector<8x8x64xf32>
    %9 = tpu.transpose %8, [1, 0, 2] : vector<8x8x64xf32> -> vector<8x8x64xf32>
    %10 = arith.truncf %9 : vector<8x8x64xf32> to vector<8x8x64xbf16>
    %11 = vector.extract_strided_slice %6 {offsets = [0, 512], sizes = [8, 512], strides = [1, 1]} : vector<8x1536xf32> to vector<8x512xf32>
    %12 = vector.shape_cast %11 : vector<8x512xf32> to vector<8x8x64xf32>
    %13 = tpu.transpose %12, [1, 0, 2] : vector<8x8x64xf32> -> vector<8x8x64xf32>
    %14 = arith.truncf %13 : vector<8x8x64xf32> to vector<8x8x64xbf16>
    %15 = vector.extract_strided_slice %6 {offsets = [0, 1024], sizes = [8, 512], strides = [1, 1]} : vector<8x1536xf32> to vector<8x512xf32>
    %16 = vector.shape_cast %15 : vector<8x512xf32> to vector<8x8x64xf32>
    %17 = tpu.transpose %16, [1, 0, 2] : vector<8x8x64xf32> -> vector<8x8x64xf32>
    %18 = arith.truncf %17 : vector<8x8x64xf32> to vector<8x8x64xbf16>
    "tpu.trace_start"() <{level = 10 : i32, message = "hqd,hkd->hqk"}> : () -> ()
    %cst_6 = arith.constant dense<0.000000e+00> : vector<8x8x8xf32>
    %19 = tpu.matmul %10, %14, %cst_6 {dimension_numbers = #tpu.dot_dimension_numbers<[2], [2], [1], [1], [0, 0, 0, 1, 1, 1], [0], [0]>} : vector<8x8x64xbf16>, vector<8x8x64xbf16>, vector<8x8x8xf32> -> vector<8x8x8xf32>
    "tpu.trace_stop"() : () -> ()
    %cst_7 = arith.constant 1.250000e-01 : f32
    %20 = vector.broadcast %cst_7 : f32 to vector<8x8x8xf32>
    %21 = arith.mulf %19, %20 : vector<8x8x8xf32>
    %22 = tpu.iota {dimensions = array<i32: 1>} : vector<8x8x8xi32>
    %23 = tpu.iota {dimensions = array<i32: 2>} : vector<8x8x8xi32>
    %24 = arith.cmpi sle, %23, %22 : vector<8x8x8xi32>
    %cst_8 = arith.constant 0xFF800000 : f32
    %25 = vector.broadcast %cst_8 : f32 to vector<8x8x8xf32>
    %26 = arith.select %24, %21, %25 : vector<8x8x8xi1>, vector<8x8x8xf32>
    %cst_9 = arith.constant dense<0xFF800000> : vector<8x8xf32>
    %27 = vector.multi_reduction <maximumf>, %26, %cst_9 [2] : vector<8x8x8xf32> to vector<8x8xf32>
    %28 = vector.shape_cast %27 : vector<8x8xf32> to vector<8x8x1xf32>
    %29 = vector.broadcast %28 : vector<8x8x1xf32> to vector<8x8x8xf32>
    %30 = arith.subf %26, %29 : vector<8x8x8xf32>
    %31 = math.exp %30 : vector<8x8x8xf32>
    %cst_10 = arith.constant dense<0.000000e+00> : vector<8x8xf32>
    %32 = vector.multi_reduction <add>, %31, %cst_10 [2] : vector<8x8x8xf32> to vector<8x8xf32>
    %33 = vector.shape_cast %32 : vector<8x8xf32> to vector<8x8x1xf32>
    %34 = tpu.reciprocal %33 {approx = true} : vector<8x8x1xf32> -> vector<8x8x1xf32>
    %35 = vector.broadcast %34 : vector<8x8x1xf32> to vector<8x8x8xf32>
    %36 = arith.mulf %31, %35 : vector<8x8x8xf32>
    %37 = arith.truncf %36 : vector<8x8x8xf32> to vector<8x8x8xbf16>
    "tpu.trace_start"() <{level = 10 : i32, message = "hqk,hkd->hqd"}> : () -> ()
    %cst_11 = arith.constant dense<0.000000e+00> : vector<8x8x64xf32>
    %38 = tpu.matmul %37, %18, %cst_11 {dimension_numbers = #tpu.dot_dimension_numbers<[2], [1], [1], [2], [0, 0, 0, 1, 1, 2], [0], [0]>} : vector<8x8x8xbf16>, vector<8x8x64xbf16>, vector<8x8x64xf32> -> vector<8x8x64xf32>
    "tpu.trace_stop"() : () -> ()
    %39 = tpu.transpose %38, [1, 0, 2] : vector<8x8x64xf32> -> vector<8x8x64xf32>
    %40 = vector.shape_cast %39 : vector<8x8x64xf32> to vector<8x512xf32>
    %41 = arith.truncf %40 : vector<8x512xf32> to vector<8x512xbf16>
    %c0_12 = arith.constant 0 : index
    %c0_13 = arith.constant 0 : index
    %42 = vector.load %arg4[%c0_12, %c0_13] : memref<512x512xbf16, #tpu.memory_space<vmem>>, vector<512x512xbf16>
    %cst_14 = arith.constant dense<0.000000e+00> : vector<8x512xf32>
    %43 = tpu.matmul %41, %42, %cst_14 {dimension_numbers = #tpu.dot_dimension_numbers<[1], [0], [0], [1], [0, 0, 1, 1], [], []>} : vector<8x512xbf16>, vector<512x512xbf16>, vector<8x512xf32> -> vector<8x512xf32>
    %c0_15 = arith.constant 0 : index
    %c0_16 = arith.constant 0 : index
    %44 = vector.load %arg5[%c0_15, %c0_16] : memref<1x512xf32, #tpu.memory_space<vmem>>, vector<1x512xf32>
    %45 = vector.broadcast %44 : vector<1x512xf32> to vector<8x512xf32>
    %46 = arith.addf %43, %45 : vector<8x512xf32>
    %c0_17 = arith.constant 0 : index
    %c0_18 = arith.constant 0 : index
    %c0_19 = arith.constant 0 : index
    %47 = vector.load %arg6[%c0_17, %c0_18, %c0_19] : memref<1x8x512xf32, #tpu.memory_space<vmem>>, vector<1x8x512xf32>
    %48 = vector.shape_cast %47 : vector<1x8x512xf32> to vector<8x512xf32>
    %49 = vector.shape_cast %46 : vector<8x512xf32> to vector<1x8x512xf32>
    tpu.vector_store %arg6[%c0_17, %c0_18, %c0_19], %49 {strides = array<i32>} : memref<1x8x512xf32, #tpu.memory_space<vmem>>, vector<1x8x512xf32>,
    return
  }
  func.func @transform_0(%arg0: i32) -> (i32, i32, i32) {
    %c0_i32 = arith.constant 0 : i32
    %c0_i32_0 = arith.constant 0 : i32
    %c0_i32_1 = arith.constant 0 : i32
    return %arg0, %c0_i32, %c0_i32_0 : i32, i32, i32
  }
  func.func @transform_1(%arg0: i32) -> (i32, i32) {
    %c0_i32 = arith.constant 0 : i32
    %c0_i32_0 = arith.constant 0 : i32
    %c0_i32_1 = arith.constant 0 : i32
    return %c0_i32, %c0_i32_0 : i32, i32
  }
  func.func @transform_2(%arg0: i32) -> (i32, i32) {
    %c0_i32 = arith.constant 0 : i32
    %c0_i32_0 = arith.constant 0 : i32
    %c0_i32_1 = arith.constant 0 : i32
    return %c0_i32, %c0_i32_0 : i32, i32
  }
  func.func @transform_3(%arg0: i32) -> (i32, i32) {
    %c0_i32 = arith.constant 0 : i32
    %c0_i32_0 = arith.constant 0 : i32
    %c0_i32_1 = arith.constant 0 : i32
    return %c0_i32, %c0_i32_0 : i32, i32
  }
  func.func @transform_4(%arg0: i32) -> (i32, i32) {
    %c0_i32 = arith.constant 0 : i32
    %c0_i32_0 = arith.constant 0 : i32
    %c0_i32_1 = arith.constant 0 : i32
    return %c0_i32, %c0_i32_0 : i32, i32
  }
  func.func @transform_5(%arg0: i32) -> (i32, i32, i32) {
    %c0_i32 = arith.constant 0 : i32
    %c0_i32_0 = arith.constant 0 : i32
    %c0_i32_1 = arith.constant 0 : i32
    return %arg0, %c0_i32, %c0_i32_0 : i32, i32, i32
  }
}

</mosaic_0001>

<bundles_post_ra>
// kernel: mhsa_forward.1
= control target key start
LH: loop header
LB: loop body
LE: loop exit
PB: predicated region body
PF: predicated region fallthrough
CT: control target
= control target key end

     0   :  { %10 = vsyncpa [#allocation3], 0  ;;  %s12470_s0 = inlined_call_operand.vmem [shape: bf16[2,8,512], index: 0, kind: input, shape index: {}]   ;;  %s12471_s1 = inlined_call_operand.vmem [shape: bf16[512,1536], index: 1, kind: input, shape index: {}]   ;;  %s12472_s2 = inlined_call_operand.vmem [shape: f32[1,1536], index: 2, kind: input, shape index: {}]   ;;  %s12473_s3 = inlined_call_operand.vmem [shape: bf16[512,512], index: 3, kind: input, shape index: {}]   ;;  %s12474_s4 = inlined_call_operand.vmem [shape: f32[1,512], index: 4, kind: input, shape index: {}]   ;;  %s12475_s5 = inlined_call_operand.hbm [shape: f32[2,8,512], index: 5, kind: output, shape index: {}]  }
   0x1   :  { %12 = vsyncpa [#allocation3 + $0x1], 0  ;;  %s8481_s18 = smov 0   ;;  %s8483_s19 = smov 0  }
   0x2   :  { %s8485_s20 = smov 0   ;;  %s8487_s21 = smov 0  }
   0x3 LB: > { %s8502_s22 = sadd.s32 4294967295, %s8446_s21   ;;  %s5679_s23 = sadd.s32 4294967294, %s8446_s21   ;;  %s8446_s21 = sphi %s8487_s21, %s12483_s21   ;;  %s8442_s20 = sphi %s8485_s20, %s12482_s20   ;;  %s8438_s19 = sphi %s8483_s19, %s12481_s19   ;;  %s8434_s18 = sphi %s8481_s18, %s12480_s18  }
   0x4   : > { %s8506_s24 = sadd.s32 1, %s8446_s21   ;;  %s135_s25 = sadd.s32 1, %s8442_s20 }
   0x5   : > { %s132_s26 = ssub.s32 %s8446_s21, %s8506_s24  ;;  %p145_p0 = scmp.ne.s32.totalorder %s8442_s20, %s8438_s19 }
   0x6   : > { %p133_p1 = scmp.eq.s32.totalorder %s132_s26, 0  ;;  %p146_p2 = scmp.eq.s32.totalorder %s8502_s22, 1 }
   0x7   : > { %p151_p3 = scmp.ne.s32.totalorder %s8438_s19, %s8434_s18  ;;  %p152_p4 = scmp.eq.s32.totalorder %s5679_s23, 1 }
   0x8   : > { %s8517_s27 = scalar_select %p133_p1, %s8442_s20, %s135_s25  }
   0x9   : > { %p8519_p5 = por %p146_p2, %p145_p0  ;;  %p8523_p6 = por %p152_p4, %p151_p3 }
   0xa   : > { %p5682_p7 = scmp.ge.s32.totalorder %s8446_s21, 1  ;;  %p190_p8 = scmp.lt.s32.totalorder %s8446_s21, 3 }
   0xc   : > { %p191_p9 = pnand %p5682_p7, %p190_p8 }
   0xd   : > { %p218_p10 = scmp.lt.s32.totalorder (!%p191_p9), %s8502_s22, 1  ;;  %s8448_s12 = smov (!%p191_p9), 64  }
   0xe   : > { %194 = sbr.rel (%p191_p9) target bundleno = 1495 (0x5d7), region = 40  ;;  %s215_s10 = sand.u32 (!%p191_p9), 1, %s8438_s19  }
   0xf   : > { %s5683_s11 = sshll.u32 (!%p191_p9), %s215_s10, 5  ;;  %s8268_s14 = sshll.u32 (!%p191_p9), %s8502_s22, 5 }
  0x10   : > { %s5615_s17 = scalar_lea.hbm (!%p191_p9), %s12475_s5, %s8268_s14  ;;  %s5604_s26 = scalar_lea.sflag (!%p191_p9), [#allocation3], %s215_s10 }
  0x11   : > { %s5619_s25 = sshll.u32 (!%p191_p9), %s5615_s17, 4  ;;  %s8404_s7 = scalar_lea.hbm (!%p191_p9), %s12475_s5, 64  ;;  %s5620_s25 = int_to_ptr.hbm [resolvable:$true] %s5619_s25 }
  0x13   : > { %v6024_v0 = vld [vmem:[%s12471_s1 + $0x2a0] sm:$0xf]  ;;  %v7846_v1 = vld [vmem:[%s12471_s1 + $0x2cc] sm:$0xf0]  ;;  %s219_s15 = scalar_select %p218_p10, %s8502_s22, 1  ;;  %vm3213_vm0 = vcmask 1047556  }
  0x14   : > { %v6408_v2 = vld [vmem:[%s12471_s1 + $0x5a0] sm:$0xf]  ;;  %v6025_v3 = vor.u32 %v7846_v1, %v6024_v0  ;;  %v7942_v4 = vld [vmem:[%s12471_s1 + $0x5cc] sm:$0xf0]  ;;  %vm3941_vm1 = vcmask 523264   ;;  %vm4115_vm3 = vcmask 64512  }
  0x15   : > { %v6792_v5 = vld [vmem:[%s12471_s1 + $0x8a0] sm:$0xf]  ;;  %v8038_v6 = vld [vmem:[%s12471_s1 + $0x8cc] sm:$0xf0]  ;;  %v6409_v7 = vor.u32 %v7942_v4, %v6408_v2  ;;  %s7755_s6 = sshll.u32 %s219_s15, 4  ;;  %vm4215_vm4 = vcmask 1043456  }
  0x16   : > { %v6793_v8 = vor.u32 %v8038_v6, %v6792_v5  ;;  %v7176_v9 = vld [vmem:[%s12471_s1 + $0xba0] sm:$0xf]  ;;  %v8134_v10 = vld [vmem:[%s12471_s1 + $0xbcc] sm:$0xf0]  ;;  %2572 = vmatpush.bf16.msra.mxu0 %v6025_v3  ;;  %s222_s13 = scalar_lea.vmem %s12470_s0, %s7755_s6 }
  0x17   : > { %v5976_v11 = vld [vmem:[%s12471_s1 + $0x240] sm:$0xf]  ;;  %v7177_v12 = vor.u32 %v8134_v10, %v7176_v9  ;;  %v7834_v13 = vld [vmem:[%s12471_s1 + $0x26c] sm:$0xf0]  ;;  %2585 = vmatpush.bf16.msra.mxu1 %v6409_v7 }
  0x18   : > { %v6360_v14 = vld [vmem:[%s12471_s1 + $0x540] sm:$0xf]  ;;  %v7930_v15 = vld [vmem:[%s12471_s1 + $0x56c] sm:$0xf0]  ;;  %2598 = vmatpush.bf16.msra.mxu2 %v6793_v8  ;;  %v5977_v16 = vor.u32 %v7834_v13, %v5976_v11 }
  0x19   : > { %v6361_v17 = vor.u32 %v7930_v15, %v6360_v14  ;;  %v6744_v18 = vld [vmem:[%s12471_s1 + $0x840] sm:$0xf]  ;;  %v8026_v19 = vld [vmem:[%s12471_s1 + $0x86c] sm:$0xf0]  ;;  %2611 = vmatpush.bf16.msra.mxu3 %v7177_v12 }
  0x1a   : > { %v7128_v20 = vld [vmem:[%s12471_s1 + $0xb40] sm:$0xf]  ;;  %v6745_v21 = vor.u32 %v8026_v19, %v6744_v18  ;;  %v8122_v22 = vld [vmem:[%s12471_s1 + $0xb6c] sm:$0xf0]  ;;  %2573 = vmatpush.bf16.msra.mxu0 %v5977_v16 }
  0x1b   : > { %v5928_v23 = vld [vmem:[%s12471_s1 + $0x1e0] sm:$0xf]  ;;  %v7822_v24 = vld [vmem:[%s12471_s1 + $0x20c] sm:$0xf0]  ;;  %v7129_v25 = vor.u32 %v8122_v22, %v7128_v20  ;;  %2586 = vmatpush.bf16.msra.mxu1 %v6361_v17 }
  0x1c   : > { %v6312_v26 = vld [vmem:[%s12471_s1 + $0x4e0] sm:$0xf]  ;;  %v7918_v27 = vld [vmem:[%s12471_s1 + $0x50c] sm:$0xf0]  ;;  %v5929_v29 = vor.u32 %v7822_v24, %v5928_v23  ;;  %2599 = vmatpush.bf16.msra.mxu2 %v6745_v21 }
  0x1d   : > { %v6696_v28 = vld [vmem:[%s12471_s1 + $0x7e0] sm:$0xf]  ;;  %v8014_v30 = vld [vmem:[%s12471_s1 + $0x80c] sm:$0xf0]  ;;  %v6313_v33 = vor.u32 %v7918_v27, %v6312_v26  ;;  %2612 = vmatpush.bf16.msra.mxu3 %v7129_v25 }
  0x1e   : > { %v7080_v31 = vld [vmem:[%s12471_s1 + $0xae0] sm:$0xf]  ;;  %v8110_v32 = vld [vmem:[%s12471_s1 + $0xb0c] sm:$0xf0]  ;;  %v6697_v34 = vor.u32 %v8014_v30, %v6696_v28  ;;  %2574 = vmatpush.bf16.msra.mxu0 %v5929_v29  ;;  %v7840_v28 = vld [vmem:[%s12471_s1 + $0x2a4] sm:$0xf] }
  0x1f   : > { %v5880_v35 = vld [vmem:[%s12471_s1 + $0x180] sm:$0xf]  ;;  %v7810_v36 = vld [vmem:[%s12471_s1 + $0x1ac] sm:$0xf0]  ;;  %v7081_v38 = vor.u32 %v8110_v32, %v7080_v31  ;;  %2587 = vmatpush.bf16.msra.mxu1 %v6313_v33  ;;  %v6026_v29 = vld [vmem:[%s12471_s1 + $0x2d0] sm:$0xf0] }
  0x20   : > { %v6264_v37 = vld [vmem:[%s12471_s1 + $0x480] sm:$0xf]  ;;  %v7906_v39 = vld [vmem:[%s12471_s1 + $0x4ac] sm:$0xf0]  ;;  %v5881_v44 = vor.u32 %v7810_v36, %v5880_v35  ;;  %2600 = vmatpush.bf16.msra.mxu2 %v6697_v34  ;;  %v7936_v30 = vld [vmem:[%s12471_s1 + $0x5a4] sm:$0xf] }
  0x21   : > { %v6648_v40 = vld [vmem:[%s12471_s1 + $0x780] sm:$0xf]  ;;  %v8002_v41 = vld [vmem:[%s12471_s1 + $0x7ac] sm:$0xf0]  ;;  %v6265_v45 = vor.u32 %v7906_v39, %v6264_v37  ;;  %2613 = vmatpush.bf16.msra.mxu3 %v7081_v38  ;;  %v6410_v32 = vld [vmem:[%s12471_s1 + $0x5d0] sm:$0xf0] }
  0x22   : > { %v7032_v42 = vld [vmem:[%s12471_s1 + $0xa80] sm:$0xf]  ;;  %v8098_v43 = vld [vmem:[%s12471_s1 + $0xaac] sm:$0xf0]  ;;  %v6649_v46 = vor.u32 %v8002_v41, %v6648_v40  ;;  %2575 = vmatpush.bf16.msra.mxu0 %v5881_v44  ;;  %v8032_v33 = vld [vmem:[%s12471_s1 + $0x8a4] sm:$0xf]  ;;  %v6029_v40 = vor.u32 %v7840_v28, %v6026_v29  ;;  %v6413_v41 = vor.u32 %v7936_v30, %v6410_v32 }
  0x23   : > { %v5832_v47 = vld [vmem:[%s12471_s1 + $0x120] sm:$0xf]  ;;  %v7798_v48 = vld [vmem:[%s12471_s1 + $0x14c] sm:$0xf0]  ;;  %v7033_v50 = vor.u32 %v8098_v43, %v7032_v42  ;;  %2588 = vmatpush.bf16.msra.mxu1 %v6265_v45  ;;  %v6794_v34 = vld [vmem:[%s12471_s1 + $0x8d0] sm:$0xf0] }
  0x24   : > { %v6216_v49 = vld [vmem:[%s12471_s1 + $0x420] sm:$0xf]  ;;  %v7894_v51 = vld [vmem:[%s12471_s1 + $0x44c] sm:$0xf0]  ;;  %v5833_v56 = vor.u32 %v7798_v48, %v5832_v47  ;;  %2601 = vmatpush.bf16.msra.mxu2 %v6649_v46  ;;  %v8128_v37 = vld [vmem:[%s12471_s1 + $0xba4] sm:$0xf]  ;;  %v6797_v42 = vor.u32 %v8032_v33, %v6794_v34 }
  0x25   : > { %v6600_v52 = vld [vmem:[%s12471_s1 + $0x720] sm:$0xf]  ;;  %v7990_v53 = vld [vmem:[%s12471_s1 + $0x74c] sm:$0xf0]  ;;  %v6217_v57 = vor.u32 %v7894_v51, %v6216_v49  ;;  %2614 = vmatpush.bf16.msra.mxu3 %v7033_v50  ;;  %v7178_v38 = vld [vmem:[%s12471_s1 + $0xbd0] sm:$0xf0] }
  0x26   : > { %v6984_v54 = vld [vmem:[%s12471_s1 + $0xa20] sm:$0xf]  ;;  %v8086_v55 = vld [vmem:[%s12471_s1 + $0xa4c] sm:$0xf0]  ;;  %v6601_v58 = vor.u32 %v7990_v53, %v6600_v52  ;;  %2576 = vmatpush.bf16.msra.mxu0 %v5833_v56  ;;  %v7828_v43 = vld [vmem:[%s12471_s1 + $0x244] sm:$0xf]  ;;  %v7181_v46 = vor.u32 %v8128_v37, %v7178_v38 }
  0x27   : > { %v5784_v59 = vld [vmem:[%s12471_s1 + $0xc0] sm:$0xf]  ;;  %v7786_v60 = vld [vmem:[%s12471_s1 + $0xec] sm:$0xf0]  ;;  %v6985_v62 = vor.u32 %v8086_v55, %v6984_v54  ;;  %2589 = vmatpush.bf16.msra.mxu1 %v6217_v57  ;;  %v5978_v44 = vld [vmem:[%s12471_s1 + $0x270] sm:$0xf0] }
  0x28   : > { %v6168_v61 = vld [vmem:[%s12471_s1 + $0x3c0] sm:$0xf]  ;;  %v7882_v63 = vld [vmem:[%s12471_s1 + $0x3ec] sm:$0xf0]  ;;  %v5785_v4 = vor.u32 %v7786_v60, %v5784_v59  ;;  %2602 = vmatpush.bf16.msra.mxu2 %v6601_v58  ;;  %v7924_v45 = vld [vmem:[%s12471_s1 + $0x544] sm:$0xf]  ;;  %v5981_v52 = vor.u32 %v7828_v43, %v5978_v44 }
  0x29   : > { %v6552_v0 = vld [vmem:[%s12471_s1 + $0x6c0] sm:$0xf]  ;;  %v7978_v1 = vld [vmem:[%s12471_s1 + $0x6ec] sm:$0xf0]  ;;  %v6169_v5 = vor.u32 %v7882_v63, %v6168_v61  ;;  %2615 = vmatpush.bf16.msra.mxu3 %v6985_v62  ;;  %v6362_v47 = vld [vmem:[%s12471_s1 + $0x570] sm:$0xf0] }
  0x2a   : > { %v6936_v2 = vld [vmem:[%s12471_s1 + $0x9c0] sm:$0xf]  ;;  %v8074_v3 = vld [vmem:[%s12471_s1 + $0x9ec] sm:$0xf0]  ;;  %v6553_v6 = vor.u32 %v7978_v1, %v6552_v0  ;;  %2577 = vmatpush.bf16.msra.mxu0 %v5785_v4  ;;  %v8020_v48 = vld [vmem:[%s12471_s1 + $0x844] sm:$0xf]  ;;  %v6365_v56 = vor.u32 %v7924_v45, %v6362_v47 }
  0x2b   : > { %v5736_v7 = vld [vmem:[%s12471_s1 + $0x60] sm:$0xf]  ;;  %v7774_v8 = vld [vmem:[%s12471_s1 + $0x8c] sm:$0xf0]  ;;  %v6937_v10 = vor.u32 %v8074_v3, %v6936_v2  ;;  %2590 = vmatpush.bf16.msra.mxu1 %v6169_v5  ;;  %v6746_v49 = vld [vmem:[%s12471_s1 + $0x870] sm:$0xf0] }
  0x2c   : > { %v6120_v9 = vld [vmem:[%s12471_s1 + $0x360] sm:$0xf]  ;;  %v7870_v11 = vld [vmem:[%s12471_s1 + $0x38c] sm:$0xf0]  ;;  %v5737_v16 = vor.u32 %v7774_v8, %v5736_v7  ;;  %2603 = vmatpush.bf16.msra.mxu2 %v6553_v6  ;;  %v8116_v50 = vld [vmem:[%s12471_s1 + $0xb44] sm:$0xf]  ;;  %v6749_v57 = vor.u32 %v8020_v48, %v6746_v49 }
  0x2d   : > { %v6504_v12 = vld [vmem:[%s12471_s1 + $0x660] sm:$0xf]  ;;  %v7966_v13 = vld [vmem:[%s12471_s1 + $0x68c] sm:$0xf0]  ;;  %v6121_v19 = vor.u32 %v7870_v11, %v6120_v9  ;;  %2616 = vmatpush.bf16.msra.mxu3 %v6937_v10  ;;  %v7130_v51 = vld [vmem:[%s12471_s1 + $0xb70] sm:$0xf0] }
  0x2e   : > { %v6888_v14 = vld [vmem:[%s12471_s1 + $0x960] sm:$0xf]  ;;  %v8062_v15 = vld [vmem:[%s12471_s1 + $0x98c] sm:$0xf0]  ;;  %v6505_v20 = vor.u32 %v7966_v13, %v6504_v12  ;;  %2578 = vmatpush.bf16.msra.mxu0 %v5737_v16  ;;  %v7816_v53 = vld [vmem:[%s12471_s1 + $0x1e4] sm:$0xf]  ;;  %v7133_v60 = vor.u32 %v8116_v50, %v7130_v51 }
  0x2f   : > { %v5688_v17 = vld [vmem:[%s12471_s1] sm:$0xf]  ;;  %v7762_v18 = vld [vmem:[%s12471_s1 + $0x2c] sm:$0xf0]  ;;  %v6889_v24 = vor.u32 %v8062_v15, %v6888_v14  ;;  %2591 = vmatpush.bf16.msra.mxu1 %v6121_v19  ;;  %v5930_v54 = vld [vmem:[%s12471_s1 + $0x210] sm:$0xf0] }
  0x30   : > { %v6072_v21 = vld [vmem:[%s12471_s1 + $0x300] sm:$0xf]  ;;  %v7858_v22 = vld [vmem:[%s12471_s1 + $0x32c] sm:$0xf0]  ;;  %v5689_v31 = vor.u32 %v7762_v18, %v5688_v17  ;;  %2604 = vmatpush.bf16.msra.mxu2 %v6505_v20  ;;  %v7912_v55 = vld [vmem:[%s12471_s1 + $0x4e4] sm:$0xf]  ;;  %v5933_v0 = vor.u32 %v7816_v53, %v5930_v54 }
  0x31   : > { %v6456_v23 = vld [vmem:[%s12471_s1 + $0x600] sm:$0xf]  ;;  %v7954_v25 = vld [vmem:[%s12471_s1 + $0x62c] sm:$0xf0]  ;;  %v6073_v35 = vor.u32 %v7858_v22, %v6072_v21  ;;  %2617 = vmatpush.bf16.msra.mxu3 %v6889_v24  ;;  %v6314_v58 = vld [vmem:[%s12471_s1 + $0x510] sm:$0xf0] }
  0x32   : > { %v6840_v26 = vld [vmem:[%s12471_s1 + $0x900] sm:$0xf]  ;;  %v8050_v27 = vld [vmem:[%s12471_s1 + $0x92c] sm:$0xf0]  ;;  %v6457_v36 = vor.u32 %v7954_v25, %v6456_v23  ;;  %2579 = vmatpush.bf16.msra.mxu0 %v5689_v31  ;;  %v8008_v59 = vld [vmem:[%s12471_s1 + $0x7e4] sm:$0xf]  ;;  %v6317_v3 = vor.u32 %v7912_v55, %v6314_v58 }
  0x33   : > { %v6841_v39 = vor.u32 %v8050_v27, %v6840_v26  ;;  %2592 = vmatpush.bf16.msra.mxu1 %v6073_v35  ;;  %v6698_v61 = vld [vmem:[%s12471_s1 + $0x810] sm:$0xf0]  ;;  %v8104_v62 = vld [vmem:[%s12471_s1 + $0xae4] sm:$0xf]  ;;  %v225_v7 = vld [vmem:[%s222_s13 + $0x8] sm:$0xff] }
  0x34   : > { %2605 = vmatpush.bf16.msra.mxu2 %v6457_v36  ;;  %v7082_v63 = vld [vmem:[%s12471_s1 + $0xb10] sm:$0xf0]  ;;  %v7804_v1 = vld [vmem:[%s12471_s1 + $0x184] sm:$0xf]  ;;  %v6701_v4 = vor.u32 %v8008_v59, %v6698_v61  ;;  %v642_v12 = vunpack.c.l.b16 %v225_v7  ;;  %v643_v14 = vunpack.c.h.b16 %v225_v7  ;;  %v7847_v7 = vld [vmem:[%s12471_s1 + $0x2d4] sm:$0xf0] }
  0x35   : > { %2618 = vmatpush.bf16.msra.mxu3 %v6841_v39  ;;  %v5882_v2 = vld [vmem:[%s12471_s1 + $0x1b0] sm:$0xf0]  ;;  %v7085_v5 = vor.u32 %v8104_v62, %v7082_v63  ;;  %v7900_v6 = vld [vmem:[%s12471_s1 + $0x484] sm:$0xf] }
  0x36   : > { %2624 = vmatpush.bf16.msrb.mxu0 %v6029_v40  ;;  %v224_v8 = vld [vmem:[%s222_s13] sm:$0xff]  ;;  %v6266_v9 = vld [vmem:[%s12471_s1 + $0x4b0] sm:$0xf0]  ;;  %v5885_v16 = vor.u32 %v7804_v1, %v5882_v2  ;;  %v8822_v19 = vpack.c.b16 %v642_v12, %v642_v12  ;;  %v8826_v21 = vpack.c.b16 %v643_v14, %v643_v14  ;;  %v8039_v12 = vld [vmem:[%s12471_s1 + $0x8d4] sm:$0xf0]  ;;  %s12430_s13 = scalar_lea.vmem [#allocation2], %s5683_s11 }
  0x37   : > { %2637 = vmatpush.bf16.msrb.mxu1 %v6413_v41  ;;  %v7996_v10 = vld [vmem:[%s12471_s1 + $0x784] sm:$0xf]  ;;  %v6650_v11 = vld [vmem:[%s12471_s1 + $0x7b0] sm:$0xf0]  ;;  %v640_v13 = vunpack.c.l.b16 %v224_v8  ;;  %v641_v15 = vunpack.c.h.b16 %v224_v8  ;;  %v6269_v23 = vor.u32 %v7900_v6, %v6266_v9  ;;  %v6032_v6 = vld [vmem:[%s12471_s1 + $0x2a8] sm:$0xf] }
  0x38   : > { %2650 = vmatpush.bf16.msrb.mxu2 %v6797_v42  ;;  %v8092_v17 = vld [vmem:[%s12471_s1 + $0xa84] sm:$0xf]  ;;  %v7034_v18 = vld [vmem:[%s12471_s1 + $0xab0] sm:$0xf0]  ;;  %v6653_v24 = vor.u32 %v7996_v10, %v6650_v11  ;;  %2619 = vmatmul.bf16.vlgmr.msra.gmra.mxu3 %v8826_v21  ;;  %v6416_v8 = vld [vmem:[%s12471_s1 + $0x5a8] sm:$0xf] }
  0x39   : > { %2663 = vmatpush.bf16.msrb.mxu3 %v7181_v46  ;;  %v8824_v20 = vpack.c.b16 %v640_v13, %v640_v13  ;;  %v8828_v22 = vpack.c.b16 %v641_v15, %v641_v15  ;;  %v7792_v25 = vld [vmem:[%s12471_s1 + $0x124] sm:$0xf]  ;;  %v5834_v26 = vld [vmem:[%s12471_s1 + $0x150] sm:$0xf0]  ;;  %v7037_v28 = vor.u32 %v8092_v17, %v7034_v18  ;;  %2606 = vmatmul.bf16.vlgmr.msra.gmra.mxu2 %v8822_v19  ;;  %v7943_v10 = vld [vmem:[%s12471_s1 + $0x5d4] sm:$0xf0] }
  0x3a   : > { %2625 = vmatpush.bf16.msrb.mxu0 %v5981_v52  ;;  %v7888_v27 = vld [vmem:[%s12471_s1 + $0x424] sm:$0xf]  ;;  %v6218_v29 = vld [vmem:[%s12471_s1 + $0x450] sm:$0xf0]  ;;  %v5837_v34 = vor.u32 %v7792_v25, %v5834_v26  ;;  %v6800_v11 = vld [vmem:[%s12471_s1 + $0x8a8] sm:$0xf]  ;;  %v6033_v18 = vor.u32 %v7847_v7, %v6032_v6 }
  0x3b   : > { %2638 = vmatpush.bf16.msrb.mxu1 %v6365_v56  ;;  %v7984_v30 = vld [vmem:[%s12471_s1 + $0x724] sm:$0xf]  ;;  %v6602_v31 = vld [vmem:[%s12471_s1 + $0x750] sm:$0xf0]  ;;  %2580 = vmatmul.bf16.vlgmr.msra.gmra.mxu0 %v8824_v20  ;;  %v6221_v35 = vor.u32 %v7888_v27, %v6218_v29  ;;  %v7184_v15 = vld [vmem:[%s12471_s1 + $0xba8] sm:$0xf] }
  0x3c   : > { %2651 = vmatpush.bf16.msrb.mxu2 %v6749_v57  ;;  %v8080_v32 = vld [vmem:[%s12471_s1 + $0xa24] sm:$0xf]  ;;  %v6986_v33 = vld [vmem:[%s12471_s1 + $0xa50] sm:$0xf0]  ;;  %2593 = vmatmul.bf16.vlgmr.msra.gmra.mxu1 %v8828_v22  ;;  %v6605_v36 = vor.u32 %v7984_v30, %v6602_v31  ;;  %v5984_v25 = vld [vmem:[%s12471_s1 + $0x248] sm:$0xf] }
  0x3d   : > { %2664 = vmatpush.bf16.msrb.mxu3 %v7133_v60  ;;  %v7780_v37 = vld [vmem:[%s12471_s1 + $0xc4] sm:$0xf]  ;;  %v5786_v38 = vld [vmem:[%s12471_s1 + $0xf0] sm:$0xf0]  ;;  %v6989_v40 = vor.u32 %v8080_v32, %v6986_v33  ;;  %v7835_v26 = vld [vmem:[%s12471_s1 + $0x274] sm:$0xf0] }
  0x3e   : > { %2626 = vmatpush.bf16.msrb.mxu0 %v5933_v0  ;;  %v7876_v39 = vld [vmem:[%s12471_s1 + $0x3c4] sm:$0xf]  ;;  %v6170_v41 = vld [vmem:[%s12471_s1 + $0x3f0] sm:$0xf0]  ;;  %v5789_v46 = vor.u32 %v7780_v37, %v5786_v38  ;;  %v6368_v27 = vld [vmem:[%s12471_s1 + $0x548] sm:$0xf] }
  0x3f   : > { %2639 = vmatpush.bf16.msrb.mxu1 %v6317_v3  ;;  %v7972_v42 = vld [vmem:[%s12471_s1 + $0x6c4] sm:$0xf]  ;;  %v6554_v43 = vld [vmem:[%s12471_s1 + $0x6f0] sm:$0xf0]  ;;  %v6173_v47 = vor.u32 %v7876_v39, %v6170_v41  ;;  %v7931_v29 = vld [vmem:[%s12471_s1 + $0x574] sm:$0xf0] }
  0x40   : > { %2652 = vmatpush.bf16.msrb.mxu2 %v6701_v4  ;;  %v8068_v44 = vld [vmem:[%s12471_s1 + $0x9c4] sm:$0xf]  ;;  %v6938_v45 = vld [vmem:[%s12471_s1 + $0x9f0] sm:$0xf0]  ;;  %v6557_v48 = vor.u32 %v7972_v42, %v6554_v43  ;;  %v6752_v30 = vld [vmem:[%s12471_s1 + $0x848] sm:$0xf] }
  0x41   : > { %2665 = vmatpush.bf16.msrb.mxu3 %v7085_v5  ;;  %v7768_v49 = vld [vmem:[%s12471_s1 + $0x64] sm:$0xf]  ;;  %v5738_v50 = vld [vmem:[%s12471_s1 + $0x90] sm:$0xf0]  ;;  %v6941_v52 = vor.u32 %v8068_v44, %v6938_v45  ;;  %v8027_v31 = vld [vmem:[%s12471_s1 + $0x874] sm:$0xf0] }
  0x42   : > { %2627 = vmatpush.bf16.msrb.mxu0 %v5885_v16  ;;  %v7864_v51 = vld [vmem:[%s12471_s1 + $0x364] sm:$0xf]  ;;  %v6122_v53 = vld [vmem:[%s12471_s1 + $0x390] sm:$0xf0]  ;;  %v5741_v58 = vor.u32 %v7768_v49, %v5738_v50  ;;  %v8135_v16 = vld [vmem:[%s12471_s1 + $0xbd4] sm:$0xf0] }
  0x43   : > { %2640 = vmatpush.bf16.msrb.mxu1 %v6269_v23  ;;  %v7960_v54 = vld [vmem:[%s12471_s1 + $0x664] sm:$0xf]  ;;  %v6506_v55 = vld [vmem:[%s12471_s1 + $0x690] sm:$0xf0]  ;;  %v6125_v61 = vor.u32 %v7864_v51, %v6122_v53  ;;  %v6417_v23 = vor.u32 %v7943_v10, %v6416_v8  ;;  %v7136_v32 = vld [vmem:[%s12471_s1 + $0xb48] sm:$0xf] }
  0x44   : > { %2653 = vmatpush.bf16.msrb.mxu2 %v6653_v24  ;;  %v8056_v56 = vld [vmem:[%s12471_s1 + $0x964] sm:$0xf]  ;;  %v6890_v57 = vld [vmem:[%s12471_s1 + $0x990] sm:$0xf0]  ;;  %v6509_v62 = vor.u32 %v7960_v54, %v6506_v55  ;;  %v6801_v24 = vor.u32 %v8039_v12, %v6800_v11  ;;  %v8123_v33 = vld [vmem:[%s12471_s1 + $0xb74] sm:$0xf0] }
  0x45   : > { %2666 = vmatpush.bf16.msrb.mxu3 %v7037_v28  ;;  %v7756_v59 = vld [vmem:[%s12471_s1 + $0x4] sm:$0xf]  ;;  %v5690_v60 = vld [vmem:[%s12471_s1 + $0x30] sm:$0xf0]  ;;  %v6893_v2 = vor.u32 %v8056_v56, %v6890_v57  ;;  %v7185_v28 = vor.u32 %v8135_v16, %v7184_v15  ;;  %v5936_v37 = vld [vmem:[%s12471_s1 + $0x1e8] sm:$0xf] }
  0x46   : > { %2628 = vmatpush.bf16.msrb.mxu0 %v5837_v34  ;;  %v7852_v63 = vld [vmem:[%s12471_s1 + $0x304] sm:$0xf]  ;;  %v6074_v0 = vld [vmem:[%s12471_s1 + $0x330] sm:$0xf0]  ;;  %v5693_v9 = vor.u32 %v7756_v59, %v5690_v60  ;;  %v5985_v34 = vor.u32 %v7835_v26, %v5984_v25  ;;  %v7823_v38 = vld [vmem:[%s12471_s1 + $0x214] sm:$0xf0] }
  0x47   : > { %2641 = vmatpush.bf16.msrb.mxu1 %v6221_v35  ;;  %v7948_v1 = vld [vmem:[%s12471_s1 + $0x604] sm:$0xf]  ;;  %v6458_v3 = vld [vmem:[%s12471_s1 + $0x630] sm:$0xf0]  ;;  %v6077_v13 = vor.u32 %v7852_v63, %v6074_v0  ;;  %v6369_v35 = vor.u32 %v7931_v29, %v6368_v27  ;;  %v6320_v39 = vld [vmem:[%s12471_s1 + $0x4e8] sm:$0xf] }
  0x48   : > { %2654 = vmatpush.bf16.msrb.mxu2 %v6605_v36  ;;  %v8044_v4 = vld [vmem:[%s12471_s1 + $0x904] sm:$0xf]  ;;  %v6842_v5 = vld [vmem:[%s12471_s1 + $0x930] sm:$0xf0]  ;;  %v6461_v14 = vor.u32 %v7948_v1, %v6458_v3  ;;  %v6753_v36 = vor.u32 %v8027_v31, %v6752_v30  ;;  %v7919_v41 = vld [vmem:[%s12471_s1 + $0x514] sm:$0xf0] }
  0x49   : > { %2667 = vmatpush.bf16.msrb.mxu3 %v6989_v40  ;;  %v6845_v17 = vor.u32 %v8044_v4, %v6842_v5  ;;  %v7137_v40 = vor.u32 %v8123_v33, %v7136_v32  ;;  %v6704_v42 = vld [vmem:[%s12471_s1 + $0x7e8] sm:$0xf]  ;;  %v8015_v43 = vld [vmem:[%s12471_s1 + $0x814] sm:$0xf0]  ;;  %s5617_s23 = sshll.u32 %s12430_s13, 4  ;;  %s5618_s23 = int_to_ptr.vmem [resolvable:$true] %s5617_s23 }
  0x4a   : > { %2629 = vmatpush.bf16.msrb.mxu0 %v5789_v46  ;;  %v7088_v44 = vld [vmem:[%s12471_s1 + $0xae8] sm:$0xf]  ;;  %v8111_v45 = vld [vmem:[%s12471_s1 + $0xb14] sm:$0xf0]  ;;  %v5937_v46 = vor.u32 %v7823_v38, %v5936_v37 }
  0x4b   : > { %2642 = vmatpush.bf16.msrb.mxu1 %v6173_v47  ;;  %v6321_v47 = vor.u32 %v7919_v41, %v6320_v39  ;;  %v5888_v49 = vld [vmem:[%s12471_s1 + $0x188] sm:$0xf]  ;;  %v7811_v50 = vld [vmem:[%s12471_s1 + $0x1b4] sm:$0xf0] }
  0x4c   : > { %2655 = vmatpush.bf16.msrb.mxu2 %v6557_v48  ;;  %v6705_v48 = vor.u32 %v8015_v43, %v6704_v42  ;;  %v6272_v51 = vld [vmem:[%s12471_s1 + $0x488] sm:$0xf]  ;;  %v7907_v53 = vld [vmem:[%s12471_s1 + $0x4b4] sm:$0xf0] }
  0x4d   : > { %2668 = vmatpush.bf16.msrb.mxu3 %v6941_v52  ;;  %v7089_v52 = vor.u32 %v8111_v45, %v7088_v44  ;;  %v6656_v54 = vld [vmem:[%s12471_s1 + $0x788] sm:$0xf]  ;;  %v8003_v55 = vld [vmem:[%s12471_s1 + $0x7b4] sm:$0xf0]  ;;  %v6273_v59 = vor.u32 %v7907_v53, %v6272_v51  ;;  %v8033_v51 = vld [vmem:[%s12471_s1 + $0x8ac] sm:$0xf] }
  0x4e   : > { %2630 = vmatpush.bf16.msrb.mxu0 %v5741_v58  ;;  %v7040_v56 = vld [vmem:[%s12471_s1 + $0xa88] sm:$0xf]  ;;  %v8099_v57 = vld [vmem:[%s12471_s1 + $0xab4] sm:$0xf0]  ;;  %v5889_v58 = vor.u32 %v7811_v50, %v5888_v49  ;;  %v6657_v60 = vor.u32 %v8003_v55, %v6656_v54  ;;  %v6418_v50 = vld [vmem:[%s12471_s1 + $0x5d8] sm:$0xf0] }
  0x4f   : > { %2643 = vmatpush.bf16.msrb.mxu1 %v6125_v61  ;;  %v5840_v61 = vld [vmem:[%s12471_s1 + $0x128] sm:$0xf]  ;;  %v7041_v0 = vor.u32 %v8099_v57, %v7040_v56  ;;  %v7895_v1 = vld [vmem:[%s12471_s1 + $0x454] sm:$0xf0]  ;;  %v8129_v55 = vld [vmem:[%s12471_s1 + $0xbac] sm:$0xf] }
  0x50   : > { %2656 = vmatpush.bf16.msrb.mxu2 %v6509_v62  ;;  %v7799_v62 = vld [vmem:[%s12471_s1 + $0x154] sm:$0xf0]  ;;  %v6224_v63 = vld [vmem:[%s12471_s1 + $0x428] sm:$0xf]  ;;  %v7186_v56 = vld [vmem:[%s12471_s1 + $0xbd8] sm:$0xf0] }
  0x51   : > { %2669 = vmatpush.bf16.msrb.mxu3 %v6893_v2  ;;  %v6608_v2 = vld [vmem:[%s12471_s1 + $0x728] sm:$0xf]  ;;  %v7991_v3 = vld [vmem:[%s12471_s1 + $0x754] sm:$0xf0]  ;;  %v5841_v6 = vor.u32 %v7799_v62, %v5840_v61  ;;  %v6225_v7 = vor.u32 %v7895_v1, %v6224_v63  ;;  %v7829_v61 = vld [vmem:[%s12471_s1 + $0x24c] sm:$0xf] }
  0x52   : > { %2631 = vmatpush.bf16.msrb.mxu0 %v5693_v9  ;;  %v6992_v4 = vld [vmem:[%s12471_s1 + $0xa28] sm:$0xf]  ;;  %v8087_v5 = vld [vmem:[%s12471_s1 + $0xa54] sm:$0xf0]  ;;  %v6609_v8 = vor.u32 %v7991_v3, %v6608_v2  ;;  %v5986_v62 = vld [vmem:[%s12471_s1 + $0x278] sm:$0xf0] }
  0x53   : > { %2644 = vmatpush.bf16.msrb.mxu1 %v6077_v13  ;;  %v5792_v9 = vld [vmem:[%s12471_s1 + $0xc8] sm:$0xf]  ;;  %v7787_v10 = vld [vmem:[%s12471_s1 + $0xf4] sm:$0xf0]  ;;  %v6993_v12 = vor.u32 %v8087_v5, %v6992_v4  ;;  %v7925_v63 = vld [vmem:[%s12471_s1 + $0x54c] sm:$0xf] }
  0x54   : > { %2657 = vmatpush.bf16.msrb.mxu2 %v6461_v14  ;;  %v6176_v11 = vld [vmem:[%s12471_s1 + $0x3c8] sm:$0xf]  ;;  %v7883_v13 = vld [vmem:[%s12471_s1 + $0x3f4] sm:$0xf0]  ;;  %v6370_v1 = vld [vmem:[%s12471_s1 + $0x578] sm:$0xf0] }
  0x55   : > { %2670 = vmatpush.bf16.msrb.mxu3 %v6845_v17  ;;  %2632 = vmatmul.bf16.vlgmr.msrb.gmra.mxu0 %v8824_v20  ;;  %v6560_v14 = vld [vmem:[%s12471_s1 + $0x6c8] sm:$0xf]  ;;  %v7979_v15 = vld [vmem:[%s12471_s1 + $0x6f4] sm:$0xf0]  ;;  %v8021_v2 = vld [vmem:[%s12471_s1 + $0x84c] sm:$0xf] }
  0x56   : > { %2676 = vmatpush.bf16.msra.mxu0 %v6033_v18  ;;  %2645 = vmatmul.bf16.vlgmr.msrb.gmra.mxu1 %v8828_v22  ;;  %v6944_v16 = vld [vmem:[%s12471_s1 + $0x9c8] sm:$0xf]  ;;  %v8075_v17 = vld [vmem:[%s12471_s1 + $0x9f4] sm:$0xf0]  ;;  %v5793_v18 = vor.u32 %v7787_v10, %v5792_v9  ;;  %v6754_v3 = vld [vmem:[%s12471_s1 + $0x878] sm:$0xf0] }
  0x57   : > { %2689 = vmatpush.bf16.msra.mxu1 %v6417_v23  ;;  %2658 = vmatmul.bf16.vlgmr.msrb.gmra.mxu2 %v8822_v19  ;;  %v6177_v23 = vor.u32 %v7883_v13, %v6176_v11  ;;  %v5744_v25 = vld [vmem:[%s12471_s1 + $0x68] sm:$0xf]  ;;  %v7775_v26 = vld [vmem:[%s12471_s1 + $0x94] sm:$0xf0]  ;;  %v8117_v4 = vld [vmem:[%s12471_s1 + $0xb4c] sm:$0xf] }
  0x58   : > { %2702 = vmatpush.bf16.msra.mxu2 %v6801_v24  ;;  %2671 = vmatmul.bf16.vlgmr.msrb.gmra.mxu3 %v8826_v21  ;;  %v6561_v24 = vor.u32 %v7979_v15, %v6560_v14  ;;  %v6128_v27 = vld [vmem:[%s12471_s1 + $0x368] sm:$0xf]  ;;  %v7871_v29 = vld [vmem:[%s12471_s1 + $0x394] sm:$0xf0]  ;;  %v7138_v5 = vld [vmem:[%s12471_s1 + $0xb78] sm:$0xf0] }
  0x59   : > { %2715 = vmatpush.bf16.msra.mxu3 %v7185_v28  ;;  %v6945_v28 = vor.u32 %v8075_v17, %v6944_v16  ;;  %v6512_v30 = vld [vmem:[%s12471_s1 + $0x668] sm:$0xf]  ;;  %v7967_v31 = vld [vmem:[%s12471_s1 + $0x694] sm:$0xf0]  ;;  %v6129_v37 = vor.u32 %v7871_v29, %v6128_v27  ;;  %v7817_v9 = vld [vmem:[%s12471_s1 + $0x1ec] sm:$0xf] }
  0x5a   : > { %2677 = vmatpush.bf16.msra.mxu0 %v5985_v34  ;;  %v6896_v32 = vld [vmem:[%s12471_s1 + $0x968] sm:$0xf]  ;;  %v8063_v33 = vld [vmem:[%s12471_s1 + $0x994] sm:$0xf0]  ;;  %v5745_v34 = vor.u32 %v7775_v26, %v5744_v25  ;;  %v6513_v38 = vor.u32 %v7967_v31, %v6512_v30  ;;  %v5938_v10 = vld [vmem:[%s12471_s1 + $0x218] sm:$0xf0] }
  0x5b   : > { %2690 = vmatpush.bf16.msra.mxu1 %v6369_v35  ;;  %v5696_v35 = vld [vmem:[%s12471_s1 + $0x8] sm:$0xf]  ;;  %v6897_v42 = vor.u32 %v8063_v33, %v6896_v32  ;;  %v7955_v43 = vld [vmem:[%s12471_s1 + $0x634] sm:$0xf0]  ;;  %v7913_v11 = vld [vmem:[%s12471_s1 + $0x4ec] sm:$0xf] }
  0x5c   : > { %2703 = vmatpush.bf16.msra.mxu2 %v6753_v36  ;;  %v7763_v36 = vld [vmem:[%s12471_s1 + $0x34] sm:$0xf0]  ;;  %v6080_v39 = vld [vmem:[%s12471_s1 + $0x308] sm:$0xf]  ;;  %v6322_v13 = vld [vmem:[%s12471_s1 + $0x518] sm:$0xf0] }
  0x5d   : > { %2716 = vmatpush.bf16.msra.mxu3 %v7137_v40  ;;  %v7859_v40 = vld [vmem:[%s12471_s1 + $0x334] sm:$0xf0]  ;;  %v6464_v41 = vld [vmem:[%s12471_s1 + $0x608] sm:$0xf]  ;;  %v5697_v49 = vor.u32 %v7763_v36, %v5696_v35  ;;  %v8009_v14 = vld [vmem:[%s12471_s1 + $0x7ec] sm:$0xf] }
  0x5e   : > { %2678 = vmatpush.bf16.msra.mxu0 %v5937_v46  ;;  %v6848_v44 = vld [vmem:[%s12471_s1 + $0x908] sm:$0xf]  ;;  %v8051_v45 = vld [vmem:[%s12471_s1 + $0x934] sm:$0xf0]  ;;  %v7841_v46 = vld [vmem:[%s12471_s1 + $0x2ac] sm:$0xf]  ;;  %v6081_v53 = vor.u32 %v7859_v40, %v6080_v39  ;;  %v6465_v54 = vor.u32 %v7955_v43, %v6464_v41 }
  0x5f   : > { %2691 = vmatpush.bf16.msra.mxu1 %v6321_v47  ;;  %v6034_v47 = vld [vmem:[%s12471_s1 + $0x2d8] sm:$0xf0]  ;;  %v6849_v57 = vor.u32 %v8051_v45, %v6848_v44  ;;  %v8105_v16 = vld [vmem:[%s12471_s1 + $0xaec] sm:$0xf] }
  0x60   : > { %2704 = vmatpush.bf16.msra.mxu2 %v6705_v48  ;;  %v7937_v48 = vld [vmem:[%s12471_s1 + $0x5ac] sm:$0xf]  ;;  %v6706_v15 = vld [vmem:[%s12471_s1 + $0x818] sm:$0xf0] }
  0x61   : > { %2717 = vmatpush.bf16.msra.mxu3 %v7089_v52  ;;  %v6802_v52 = vld [vmem:[%s12471_s1 + $0x8d8] sm:$0xf0]  ;;  %v7805_v25 = vld [vmem:[%s12471_s1 + $0x18c] sm:$0xf] }
  0x62   : > { %2679 = vmatpush.bf16.msra.mxu0 %v5889_v58  ;;  %v6037_v58 = vor.u32 %v7841_v46, %v6034_v47  ;;  %v7090_v17 = vld [vmem:[%s12471_s1 + $0xb18] sm:$0xf0]  ;;  %v7901_v27 = vld [vmem:[%s12471_s1 + $0x48c] sm:$0xf] }
  0x63   : > { %2692 = vmatpush.bf16.msra.mxu1 %v6273_v59  ;;  %v6421_v59 = vor.u32 %v7937_v48, %v6418_v50  ;;  %v5890_v26 = vld [vmem:[%s12471_s1 + $0x1b8] sm:$0xf0]  ;;  %v7997_v30 = vld [vmem:[%s12471_s1 + $0x78c] sm:$0xf] }
  0x64   : > { %2705 = vmatpush.bf16.msra.mxu2 %v6657_v60  ;;  %v6805_v60 = vor.u32 %v8033_v51, %v6802_v52  ;;  %v6274_v29 = vld [vmem:[%s12471_s1 + $0x4b8] sm:$0xf0]  ;;  %v8093_v32 = vld [vmem:[%s12471_s1 + $0xa8c] sm:$0xf] }
  0x65   : > { %2718 = vmatpush.bf16.msra.mxu3 %v7041_v0  ;;  %v7189_v0 = vor.u32 %v8129_v55, %v7186_v56  ;;  %v6658_v31 = vld [vmem:[%s12471_s1 + $0x7b8] sm:$0xf0]  ;;  %v6277_v35 = vor.u32 %v7901_v27, %v6274_v29  ;;  %v7889_v39 = vld [vmem:[%s12471_s1 + $0x42c] sm:$0xf]  ;;  %v6808_v27 = vld [vmem:[%s12471_s1 + $0x8b0] sm:$0xf] }
  0x66   : > { %2680 = vmatpush.bf16.msra.mxu0 %v5841_v6  ;;  %v5989_v6 = vor.u32 %v7829_v61, %v5986_v62  ;;  %v7042_v33 = vld [vmem:[%s12471_s1 + $0xab8] sm:$0xf0]  ;;  %v6661_v36 = vor.u32 %v7997_v30, %v6658_v31  ;;  %v8081_v44 = vld [vmem:[%s12471_s1 + $0xa2c] sm:$0xf]  ;;  %v7192_v31 = vld [vmem:[%s12471_s1 + $0xbb0] sm:$0xf] }
  0x67   : > { %2693 = vmatpush.bf16.msra.mxu1 %v6225_v7  ;;  %v6373_v7 = vor.u32 %v7925_v63, %v6370_v1  ;;  %v7045_v40 = vor.u32 %v8093_v32, %v7042_v33  ;;  %v6226_v41 = vld [vmem:[%s12471_s1 + $0x458] sm:$0xf0]  ;;  %v7877_v51 = vld [vmem:[%s12471_s1 + $0x3cc] sm:$0xf]  ;;  %v8136_v32 = vld [vmem:[%s12471_s1 + $0xbdc] sm:$0xf0] }
  0x68   : > { %2706 = vmatpush.bf16.msra.mxu2 %v6609_v8  ;;  %v6757_v8 = vor.u32 %v8021_v2, %v6754_v3  ;;  %v6610_v43 = vld [vmem:[%s12471_s1 + $0x758] sm:$0xf0]  ;;  %v6229_v47 = vor.u32 %v7889_v39, %v6226_v41  ;;  %v8069_v56 = vld [vmem:[%s12471_s1 + $0x9cc] sm:$0xf]  ;;  %v6376_v39 = vld [vmem:[%s12471_s1 + $0x550] sm:$0xf] }
  0x69   : > { %2719 = vmatpush.bf16.msra.mxu3 %v6993_v12  ;;  %v7141_v12 = vor.u32 %v8117_v4, %v7138_v5  ;;  %v6994_v45 = vld [vmem:[%s12471_s1 + $0xa58] sm:$0xf0]  ;;  %v7769_v61 = vld [vmem:[%s12471_s1 + $0x6c] sm:$0xf]  ;;  %v7932_v41 = vld [vmem:[%s12471_s1 + $0x57c] sm:$0xf0] }
  0x6a   : > { %2681 = vmatpush.bf16.msra.mxu0 %v5793_v18  ;;  %v5941_v18 = vor.u32 %v7817_v9, %v5938_v10  ;;  %v5794_v50 = vld [vmem:[%s12471_s1 + $0xf8] sm:$0xf0]  ;;  %v6997_v52 = vor.u32 %v8081_v44, %v6994_v45  ;;  %v7865_v63 = vld [vmem:[%s12471_s1 + $0x36c] sm:$0xf]  ;;  %v7144_v44 = vld [vmem:[%s12471_s1 + $0xb50] sm:$0xf] }
  0x6b   : > { %2694 = vmatpush.bf16.msra.mxu1 %v6177_v23  ;;  %v6325_v23 = vor.u32 %v7913_v11, %v6322_v13  ;;  %v6562_v55 = vld [vmem:[%s12471_s1 + $0x6f8] sm:$0xf0]  ;;  %v7961_v2 = vld [vmem:[%s12471_s1 + $0x66c] sm:$0xf]  ;;  %v8124_v45 = vld [vmem:[%s12471_s1 + $0xb7c] sm:$0xf0] }
  0x6c   : > { %2707 = vmatpush.bf16.msra.mxu2 %v6561_v24  ;;  %v6709_v24 = vor.u32 %v8009_v14, %v6706_v15  ;;  %v5746_v62 = vld [vmem:[%s12471_s1 + $0x98] sm:$0xf0]  ;;  %v8057_v4 = vld [vmem:[%s12471_s1 + $0x96c] sm:$0xf] }
  0x6d   : > { %2720 = vmatpush.bf16.msra.mxu3 %v6945_v28  ;;  %v7093_v28 = vor.u32 %v8105_v16, %v7090_v17  ;;  %v6130_v1 = vld [vmem:[%s12471_s1 + $0x398] sm:$0xf0]  ;;  %v7853_v11 = vld [vmem:[%s12471_s1 + $0x30c] sm:$0xf] }
  0x6e   : > { %2682 = vmatpush.bf16.msra.mxu0 %v5745_v34  ;;  %v5893_v34 = vor.u32 %v7805_v25, %v5890_v26  ;;  %v6514_v3 = vld [vmem:[%s12471_s1 + $0x698] sm:$0xf0]  ;;  %v6133_v9 = vor.u32 %v7865_v63, %v6130_v1  ;;  %v7949_v13 = vld [vmem:[%s12471_s1 + $0x60c] sm:$0xf]  ;;  %v7944_v26 = vld [vmem:[%s12471_s1 + $0x5dc] sm:$0xf0] }
  0x6f   : > { %2695 = vmatpush.bf16.msra.mxu1 %v6129_v37  ;;  %v7793_v37 = vld [vmem:[%s12471_s1 + $0x12c] sm:$0xf]  ;;  %v6898_v5 = vld [vmem:[%s12471_s1 + $0x998] sm:$0xf0]  ;;  %v6517_v10 = vor.u32 %v7961_v2, %v6514_v3  ;;  %v6280_v63 = vld [vmem:[%s12471_s1 + $0x490] sm:$0xf] }
  0x70   : > { %2708 = vmatpush.bf16.msra.mxu2 %v6513_v38  ;;  %v5842_v38 = vld [vmem:[%s12471_s1 + $0x158] sm:$0xf0]  ;;  %v6901_v14 = vor.u32 %v8057_v4, %v6898_v5  ;;  %v8045_v16 = vld [vmem:[%s12471_s1 + $0x90c] sm:$0xf]  ;;  %v7908_v1 = vld [vmem:[%s12471_s1 + $0x4bc] sm:$0xf0] }
  0x71   : > { %2721 = vmatpush.bf16.msra.mxu3 %v6897_v42  ;;  %v7985_v42 = vld [vmem:[%s12471_s1 + $0x72c] sm:$0xf]  ;;  %v5845_v46 = vor.u32 %v7793_v37, %v5842_v38  ;;  %v6466_v15 = vld [vmem:[%s12471_s1 + $0x638] sm:$0xf0]  ;;  %v5992_v37 = vld [vmem:[%s12471_s1 + $0x250] sm:$0xf] }
  0x72   : > { %2683 = vmatpush.bf16.msra.mxu0 %v5697_v49  ;;  %v6613_v48 = vor.u32 %v7985_v42, %v6610_v43  ;;  %v7781_v49 = vld [vmem:[%s12471_s1 + $0xcc] sm:$0xf]  ;;  %v6850_v17 = vld [vmem:[%s12471_s1 + $0x938] sm:$0xf0]  ;;  %v6469_v30 = vor.u32 %v7949_v13, %v6466_v15  ;;  %v7836_v38 = vld [vmem:[%s12471_s1 + $0x27c] sm:$0xf0] }
  0x73   : > { %2696 = vmatpush.bf16.msra.mxu1 %v6081_v53  ;;  %v6178_v53 = vld [vmem:[%s12471_s1 + $0x3f8] sm:$0xf0]  ;;  %v6853_v33 = vor.u32 %v8045_v16, %v6850_v17  ;;  %v6760_v42 = vld [vmem:[%s12471_s1 + $0x850] sm:$0xf]  ;;  %v8028_v43 = vld [vmem:[%s12471_s1 + $0x87c] sm:$0xf0] }
  0x74   : > { %2709 = vmatpush.bf16.msra.mxu2 %v6465_v54  ;;  %v7973_v54 = vld [vmem:[%s12471_s1 + $0x6cc] sm:$0xf]  ;;  %v6664_v2 = vld [vmem:[%s12471_s1 + $0x790] sm:$0xf]  ;;  %v8004_v3 = vld [vmem:[%s12471_s1 + $0x7bc] sm:$0xf0] }
  0x75   : > { %2722 = vmatpush.bf16.msra.mxu3 %v6849_v57  ;;  %2684 = vmatmul.bf16.vlgmr.msra.gmra.mxu0 %v8824_v20  ;;  %v6946_v57 = vld [vmem:[%s12471_s1 + $0x9f8] sm:$0xf0]  ;;  %v7048_v4 = vld [vmem:[%s12471_s1 + $0xa90] sm:$0xf]  ;;  %v8100_v5 = vld [vmem:[%s12471_s1 + $0xabc] sm:$0xf0] }
  0x76   : > { %2728 = vmatpush.bf16.msrb.mxu0 %v6037_v58  ;;  %2697 = vmatmul.bf16.vlgmr.msra.gmra.mxu1 %v8828_v22  ;;  %v5797_v58 = vor.u32 %v7781_v49, %v5794_v50  ;;  %v5944_v49 = vld [vmem:[%s12471_s1 + $0x1f0] sm:$0xf]  ;;  %v7824_v50 = vld [vmem:[%s12471_s1 + $0x21c] sm:$0xf0] }
  0x77   : > { %2741 = vmatpush.bf16.msrb.mxu1 %v6421_v59  ;;  %2710 = vmatmul.bf16.vlgmr.msra.gmra.mxu2 %v8822_v19  ;;  %v6181_v59 = vor.u32 %v7877_v51, %v6178_v53  ;;  %v6328_v51 = vld [vmem:[%s12471_s1 + $0x4f0] sm:$0xf]  ;;  %v7920_v53 = vld [vmem:[%s12471_s1 + $0x51c] sm:$0xf0] }
  0x78   : > { %2754 = vmatpush.bf16.msrb.mxu2 %v6805_v60  ;;  %2723 = vmatmul.bf16.vlgmr.msra.gmra.mxu3 %v8826_v21  ;;  %v6565_v60 = vor.u32 %v7973_v54, %v6562_v55  ;;  %v6712_v54 = vld [vmem:[%s12471_s1 + $0x7f0] sm:$0xf]  ;;  %v8016_v55 = vld [vmem:[%s12471_s1 + $0x81c] sm:$0xf0] }
  0x79   : > { %2767 = vmatpush.bf16.msrb.mxu3 %v7189_v0  ;;  %v6949_v0 = vor.u32 %v8069_v56, %v6946_v57  ;;  %v7096_v56 = vld [vmem:[%s12471_s1 + $0xaf0] sm:$0xf]  ;;  %v8112_v57 = vld [vmem:[%s12471_s1 + $0xb1c] sm:$0xf0] }
  0x7a   : > { %2729 = vmatpush.bf16.msrb.mxu0 %v5989_v6  ;;  %v5749_v6 = vor.u32 %v7769_v61, %v5746_v62  ;;  %v5896_v61 = vld [vmem:[%s12471_s1 + $0x190] sm:$0xf]  ;;  %v7812_v62 = vld [vmem:[%s12471_s1 + $0x1bc] sm:$0xf0] }
  0x7b   : > { %2742 = vmatpush.bf16.msrb.mxu1 %v6373_v7  ;;  %v7757_v7 = vld [vmem:[%s12471_s1 + $0xc] sm:$0xf]  ;;  %v7896_v13 = vld [vmem:[%s12471_s1 + $0x45c] sm:$0xf0]  ;;  %v7000_v16 = vld [vmem:[%s12471_s1 + $0xa30] sm:$0xf] }
  0x7c   : > { %2755 = vmatpush.bf16.msrb.mxu2 %v6757_v8  ;;  %v5698_v8 = vld [vmem:[%s12471_s1 + $0x38] sm:$0xf0]  ;;  %v7992_v15 = vld [vmem:[%s12471_s1 + $0x75c] sm:$0xf0] }
  0x7d   : > { %2768 = vmatpush.bf16.msrb.mxu3 %v7141_v12  ;;  %v6082_v12 = vld [vmem:[%s12471_s1 + $0x338] sm:$0xf0]  ;;  %v5701_v25 = vor.u32 %v7757_v7, %v5698_v8  ;;  %v6281_v7 = vor.u32 %v7908_v1, %v6280_v63  ;;  %v6665_v8 = vor.u32 %v8004_v3, %v6664_v2  ;;  %v8088_v17 = vld [vmem:[%s12471_s1 + $0xa5c] sm:$0xf0]  ;;  %v8034_v63 = vld [vmem:[%s12471_s1 + $0x8b4] sm:$0xf] }
  0x7e   : > { %2730 = vmatpush.bf16.msrb.mxu0 %v5941_v18  ;;  %v6040_v18 = vld [vmem:[%s12471_s1 + $0x2b0] sm:$0xf]  ;;  %v6085_v29 = vor.u32 %v7853_v11, %v6082_v12  ;;  %v7049_v12 = vor.u32 %v8100_v5, %v7048_v4  ;;  %v8130_v3 = vld [vmem:[%s12471_s1 + $0xbb4] sm:$0xf]  ;;  %v7194_v4 = vld [vmem:[%s12471_s1 + $0xbe0] sm:$0xf0] }
  0x7f   : > { %2743 = vmatpush.bf16.msrb.mxu1 %v6325_v23  ;;  %v7848_v23 = vld [vmem:[%s12471_s1 + $0x2dc] sm:$0xf0]  ;;  %v6232_v11 = vld [vmem:[%s12471_s1 + $0x430] sm:$0xf] }
  0x80   : > { %2756 = vmatpush.bf16.msrb.mxu2 %v6709_v24  ;;  %v6424_v24 = vld [vmem:[%s12471_s1 + $0x5b0] sm:$0xf] }
  0x81   : > { %2769 = vmatpush.bf16.msrb.mxu3 %v7093_v28  ;;  %v8040_v28 = vld [vmem:[%s12471_s1 + $0x8dc] sm:$0xf0] }
  0x82   : > { %2731 = vmatpush.bf16.msrb.mxu0 %v5893_v34  ;;  %v6041_v34 = vor.u32 %v7848_v23, %v6040_v18  ;;  %v6233_v23 = vor.u32 %v7896_v13, %v6232_v11  ;;  %v7926_v11 = vld [vmem:[%s12471_s1 + $0x554] sm:$0xf]  ;;  %v6378_v13 = vld [vmem:[%s12471_s1 + $0x580] sm:$0xf0] }
  0x83   : > { %2744 = vmatpush.bf16.msrb.mxu1 %v6277_v35  ;;  %v6425_v35 = vor.u32 %v7944_v26, %v6424_v24  ;;  %v7788_v26 = vld [vmem:[%s12471_s1 + $0xfc] sm:$0xf0] }
  0x84   : > { %2757 = vmatpush.bf16.msrb.mxu2 %v6661_v36  ;;  %v6809_v36 = vor.u32 %v8040_v28, %v6808_v27  ;;  %v6184_v27 = vld [vmem:[%s12471_s1 + $0x3d0] sm:$0xf]  ;;  %v7001_v28 = vor.u32 %v8088_v17, %v7000_v16  ;;  %v8118_v16 = vld [vmem:[%s12471_s1 + $0xb54] sm:$0xf]  ;;  %v7146_v17 = vld [vmem:[%s12471_s1 + $0xb80] sm:$0xf0] }
  0x85   : > { %2770 = vmatpush.bf16.msrb.mxu3 %v7045_v40  ;;  %v7193_v40 = vor.u32 %v8136_v32, %v7192_v31  ;;  %v7980_v31 = vld [vmem:[%s12471_s1 + $0x6fc] sm:$0xf0]  ;;  %v6952_v32 = vld [vmem:[%s12471_s1 + $0x9d0] sm:$0xf] }
  0x86   : > { %2732 = vmatpush.bf16.msrb.mxu0 %v5845_v46  ;;  %v5993_v46 = vor.u32 %v7836_v38, %v5992_v37  ;;  %v5752_v37 = vld [vmem:[%s12471_s1 + $0x70] sm:$0xf]  ;;  %v7776_v38 = vld [vmem:[%s12471_s1 + $0x9c] sm:$0xf0] }
  0x87   : > { %2745 = vmatpush.bf16.msrb.mxu1 %v6229_v47  ;;  %v6377_v47 = vor.u32 %v7932_v41, %v6376_v39  ;;  %v6136_v39 = vld [vmem:[%s12471_s1 + $0x370] sm:$0xf]  ;;  %v7872_v41 = vld [vmem:[%s12471_s1 + $0x39c] sm:$0xf0] }
  0x88   : > { %2758 = vmatpush.bf16.msrb.mxu2 %v6613_v48  ;;  %v6761_v48 = vor.u32 %v8028_v43, %v6760_v42  ;;  %v6520_v42 = vld [vmem:[%s12471_s1 + $0x670] sm:$0xf]  ;;  %v7968_v43 = vld [vmem:[%s12471_s1 + $0x69c] sm:$0xf0] }
  0x89   : > { %2771 = vmatpush.bf16.msrb.mxu3 %v6997_v52  ;;  %v7145_v52 = vor.u32 %v8124_v45, %v7144_v44  ;;  %v6904_v44 = vld [vmem:[%s12471_s1 + $0x970] sm:$0xf]  ;;  %v8064_v45 = vld [vmem:[%s12471_s1 + $0x99c] sm:$0xf0] }
  0x8a   : > { %2733 = vmatpush.bf16.msrb.mxu0 %v5797_v58  ;;  %v5945_v58 = vor.u32 %v7824_v50, %v5944_v49  ;;  %v6137_v49 = vor.u32 %v7872_v41, %v6136_v39  ;;  %v6521_v50 = vor.u32 %v7968_v43, %v6520_v42  ;;  %v7902_v39 = vld [vmem:[%s12471_s1 + $0x494] sm:$0xf]  ;;  %v6282_v41 = vld [vmem:[%s12471_s1 + $0x4c0] sm:$0xf0] }
  0x8b   : > { %2746 = vmatpush.bf16.msrb.mxu1 %v6181_v59  ;;  %v6329_v59 = vor.u32 %v7920_v53, %v6328_v51  ;;  %v6088_v51 = vld [vmem:[%s12471_s1 + $0x310] sm:$0xf]  ;;  %v7998_v42 = vld [vmem:[%s12471_s1 + $0x794] sm:$0xf]  ;;  %v6666_v43 = vld [vmem:[%s12471_s1 + $0x7c0] sm:$0xf0] }
  0x8c   : > { %2759 = vmatpush.bf16.msrb.mxu2 %v6565_v60  ;;  %v6713_v60 = vor.u32 %v8016_v55, %v6712_v54  ;;  %v6472_v53 = vld [vmem:[%s12471_s1 + $0x610] sm:$0xf]  ;;  %v6905_v54 = vor.u32 %v8064_v45, %v6904_v44  ;;  %v7956_v55 = vld [vmem:[%s12471_s1 + $0x63c] sm:$0xf0]  ;;  %v8094_v44 = vld [vmem:[%s12471_s1 + $0xa94] sm:$0xf] }
  0x8d   : > { %2772 = vmatpush.bf16.msrb.mxu3 %v6949_v0  ;;  %v7097_v0 = vor.u32 %v8112_v57, %v7096_v56  ;;  %v6856_v56 = vld [vmem:[%s12471_s1 + $0x910] sm:$0xf]  ;;  %v8052_v57 = vld [vmem:[%s12471_s1 + $0x93c] sm:$0xf0]  ;;  %v6473_v2 = vor.u32 %v7956_v55, %v6472_v53  ;;  %v7050_v45 = vld [vmem:[%s12471_s1 + $0xac0] sm:$0xf0] }
  0x8e   : > { %2734 = vmatpush.bf16.msrb.mxu0 %v5749_v6  ;;  %v5897_v6 = vor.u32 %v7812_v62, %v5896_v61  ;;  %v6426_v62 = vld [vmem:[%s12471_s1 + $0x5e0] sm:$0xf0]  ;;  %v6857_v5 = vor.u32 %v8052_v57, %v6856_v56  ;;  %v7053_v53 = vor.u32 %v8094_v44, %v7050_v45  ;;  %v8082_v57 = vld [vmem:[%s12471_s1 + $0xa34] sm:$0xf]  ;;  %v7849_v44 = vld [vmem:[%s12471_s1 + $0x2e4] sm:$0xf0] }
  0x8f   : > { %2747 = vmatpush.bf16.msrb.mxu1 %v6133_v9  ;;  %v5848_v9 = vld [vmem:[%s12471_s1 + $0x130] sm:$0xf]  ;;  %v6618_v55 = vld [vmem:[%s12471_s1 + $0x760] sm:$0xf0]  ;;  %v6432_v45 = vld [vmem:[%s12471_s1 + $0x5b8] sm:$0xf] }
  0x90   : > { %2760 = vmatpush.bf16.msrb.mxu2 %v6517_v10  ;;  %v7800_v10 = vld [vmem:[%s12471_s1 + $0x15c] sm:$0xf0] }
  0x91   : > { %2773 = vmatpush.bf16.msrb.mxu3 %v6901_v14  ;;  %v6616_v14 = vld [vmem:[%s12471_s1 + $0x730] sm:$0xf]  ;;  %v5849_v18 = vor.u32 %v7800_v10, %v5848_v9  ;;  %v7830_v9 = vld [vmem:[%s12471_s1 + $0x254] sm:$0xf]  ;;  %v5994_v10 = vld [vmem:[%s12471_s1 + $0x280] sm:$0xf0] }
  0x92   : > { %2735 = vmatpush.bf16.msrb.mxu0 %v5701_v25  ;;  %v6617_v24 = vor.u32 %v7992_v15, %v6616_v14  ;;  %v5800_v25 = vld [vmem:[%s12471_s1 + $0xd0] sm:$0xf]  ;;  %v8022_v14 = vld [vmem:[%s12471_s1 + $0x854] sm:$0xf]  ;;  %v6762_v15 = vld [vmem:[%s12471_s1 + $0x880] sm:$0xf0] }
  0x93   : > { %2748 = vmatpush.bf16.msrb.mxu1 %v6085_v29  ;;  %v7884_v29 = vld [vmem:[%s12471_s1 + $0x3fc] sm:$0xf0] }
  0x94   : > { %2761 = vmatpush.bf16.msrb.mxu2 %v6469_v30  ;;  %v6568_v30 = vld [vmem:[%s12471_s1 + $0x6d0] sm:$0xf]  ;;  %v9639_v56 = vld [vmem:[%s12472_s2] sm:$0xff] }
  0x95   : > { %2774 = vmatpush.bf16.msrb.mxu3 %v6853_v33  ;;  %2736 = vmatmul.bf16.vlgmr.msrb.gmra.mxu0 %v8824_v20  ;;  %v8076_v33 = vld [vmem:[%s12471_s1 + $0x9fc] sm:$0xf0] }
  0x96   : > { %2780 = vmatpush.bf16.msra.mxu0 %v6041_v34  ;;  %2749 = vmatmul.bf16.vlgmr.msrb.gmra.mxu1 %v8828_v22  ;;  %v5801_v34 = vor.u32 %v7788_v26, %v5800_v25  ;;  %v7818_v25 = vld [vmem:[%s12471_s1 + $0x1f4] sm:$0xf]  ;;  %v5946_v26 = vld [vmem:[%s12471_s1 + $0x220] sm:$0xf0] }
  0x97   : > { %2793 = vmatpush.bf16.msra.mxu1 %v6425_v35  ;;  %2762 = vmatmul.bf16.vlgmr.msrb.gmra.mxu2 %v8822_v19  ;;  %v6185_v35 = vor.u32 %v7884_v29, %v6184_v27  ;;  %v7914_v27 = vld [vmem:[%s12471_s1 + $0x4f4] sm:$0xf]  ;;  %v6330_v29 = vld [vmem:[%s12471_s1 + $0x520] sm:$0xf0] }
  0x98   : > { %2806 = vmatpush.bf16.msra.mxu2 %v6809_v36  ;;  %2775 = vmatmul.bf16.vlgmr.msrb.gmra.mxu3 %v8826_v21  ;;  %v6569_v36 = vor.u32 %v7980_v31, %v6568_v30  ;;  %v8010_v30 = vld [vmem:[%s12471_s1 + $0x7f4] sm:$0xf]  ;;  %v6714_v31 = vld [vmem:[%s12471_s1 + $0x820] sm:$0xf0] }
  0x99   : > { %2819 = vmatpush.bf16.msra.mxu3 %v7193_v40  ;;  %v6953_v40 = vor.u32 %v8076_v33, %v6952_v32  ;;  %v8106_v32 = vld [vmem:[%s12471_s1 + $0xaf4] sm:$0xf]  ;;  %v7098_v33 = vld [vmem:[%s12471_s1 + $0xb20] sm:$0xf0] }
  0x9a   : > { %2781 = vmatpush.bf16.msra.mxu0 %v5993_v46  ;;  %v5753_v46 = vor.u32 %v7776_v38, %v5752_v37  ;;  %v7806_v37 = vld [vmem:[%s12471_s1 + $0x194] sm:$0xf]  ;;  %v5898_v38 = vld [vmem:[%s12471_s1 + $0x1c0] sm:$0xf0] }
  0x9b   : > { %2794 = vmatpush.bf16.msra.mxu1 %v6377_v47  ;;  %v5704_v47 = vld [vmem:[%s12471_s1 + $0x10] sm:$0xf] }
  0x9c   : > { %2807 = vmatpush.bf16.msra.mxu2 %v6761_v48  ;;  %v7764_v48 = vld [vmem:[%s12471_s1 + $0x3c] sm:$0xf0] }
  0x9d   : > { %2820 = vmatpush.bf16.msra.mxu3 %v7145_v52  ;;  %v7860_v52 = vld [vmem:[%s12471_s1 + $0x33c] sm:$0xf0]  ;;  %v5705_v61 = vor.u32 %v7764_v48, %v5704_v47  ;;  %v7794_v47 = vld [vmem:[%s12471_s1 + $0x134] sm:$0xf]  ;;  %v6285_v48 = vor.u32 %v7902_v39, %v6282_v41 }
  0x9e   : > { %2782 = vmatpush.bf16.msra.mxu0 %v5945_v58  ;;  %v7842_v58 = vld [vmem:[%s12471_s1 + $0x2b4] sm:$0xf]  ;;  %v6089_v1 = vor.u32 %v7860_v52, %v6088_v51  ;;  %v6234_v52 = vld [vmem:[%s12471_s1 + $0x460] sm:$0xf0] }
  0x9f   : > { %2795 = vmatpush.bf16.msra.mxu1 %v6329_v59  ;;  %v6042_v59 = vld [vmem:[%s12471_s1 + $0x2e0] sm:$0xf0]  ;;  %v7890_v51 = vld [vmem:[%s12471_s1 + $0x434] sm:$0xf] }
  0xa0   : > { %2808 = vmatpush.bf16.msra.mxu2 %v6713_v60  ;;  %v7938_v60 = vld [vmem:[%s12471_s1 + $0x5b4] sm:$0xf] }
  0xa1   : > { %2821 = vmatpush.bf16.msra.mxu3 %v7097_v0  ;;  %v6810_v0 = vld [vmem:[%s12471_s1 + $0x8e0] sm:$0xf0]  ;;  %v8046_v39 = vld [vmem:[%s12471_s1 + $0x914] sm:$0xf] }
  0xa2   : > { %2783 = vmatpush.bf16.msra.mxu0 %v5897_v6  ;;  %v6045_v6 = vor.u32 %v7842_v58, %v6042_v59  ;;  %v7002_v58 = vld [vmem:[%s12471_s1 + $0xa60] sm:$0xf0] }
  0xa3   : > { %2796 = vmatpush.bf16.msra.mxu1 %v6281_v7  ;;  %v6429_v7 = vor.u32 %v7938_v60, %v6426_v62  ;;  %v7782_v60 = vld [vmem:[%s12471_s1 + $0xd4] sm:$0xf] }
  0xa4   : > { %2809 = vmatpush.bf16.msra.mxu2 %v6665_v8  ;;  %v6813_v8 = vor.u32 %v8034_v63, %v6810_v0  ;;  %v5802_v63 = vld [vmem:[%s12471_s1 + $0x100] sm:$0xf0]  ;;  %v7878_v0 = vld [vmem:[%s12471_s1 + $0x3d4] sm:$0xf] }
  0xa5   : > { %2822 = vmatpush.bf16.msra.mxu3 %v7049_v12  ;;  %v7197_v12 = vor.u32 %v8130_v3, %v7194_v4  ;;  %v6186_v3 = vld [vmem:[%s12471_s1 + $0x400] sm:$0xf0]  ;;  %v7974_v4 = vld [vmem:[%s12471_s1 + $0x6d4] sm:$0xf] }
  0xa6   : > { %2784 = vmatpush.bf16.msra.mxu0 %v5849_v18  ;;  %v5997_v18 = vor.u32 %v7830_v9, %v5994_v10  ;;  %v6189_v10 = vor.u32 %v7878_v0, %v6186_v3  ;;  %v6384_v0 = vld [vmem:[%s12471_s1 + $0x558] sm:$0xf] }
  0xa7   : > { %2797 = vmatpush.bf16.msra.mxu1 %v6233_v23  ;;  %v6381_v23 = vor.u32 %v7926_v11, %v6378_v13  ;;  %v5754_v13 = vld [vmem:[%s12471_s1 + $0xa0] sm:$0xf0]  ;;  %v6768_v3 = vld [vmem:[%s12471_s1 + $0x858] sm:$0xf] }
  0xa8   : > { %2810 = vmatpush.bf16.msra.mxu2 %v6617_v24  ;;  %v6765_v24 = vor.u32 %v8022_v14, %v6762_v15  ;;  %v7866_v14 = vld [vmem:[%s12471_s1 + $0x374] sm:$0xf] }
  0xa9   : > { %2823 = vmatpush.bf16.msra.mxu3 %v7001_v28  ;;  %v7149_v28 = vor.u32 %v8118_v16, %v7146_v17 }
  0xaa   : > { %2785 = vmatpush.bf16.msra.mxu0 %v5801_v34  ;;  %v5949_v34 = vor.u32 %v7818_v25, %v5946_v26  ;;  %v8058_v25 = vld [vmem:[%s12471_s1 + $0x974] sm:$0xf]  ;;  %v6906_v26 = vld [vmem:[%s12471_s1 + $0x9a0] sm:$0xf0] }
  0xab   : > { %2798 = vmatpush.bf16.msra.mxu1 %v6185_v35  ;;  %v6333_v35 = vor.u32 %v7914_v27, %v6330_v29  ;;  %v7758_v29 = vld [vmem:[%s12471_s1 + $0x14] sm:$0xf] }
  0xac   : > { %2811 = vmatpush.bf16.msra.mxu2 %v6569_v36  ;;  %v6717_v36 = vor.u32 %v8010_v30, %v6714_v31  ;;  %v5706_v30 = vld [vmem:[%s12471_s1 + $0x40] sm:$0xf0] }
  0xad   : > { %2824 = vmatpush.bf16.msra.mxu3 %v6953_v40  ;;  %v7101_v40 = vor.u32 %v8106_v32, %v7098_v33  ;;  %v7854_v33 = vld [vmem:[%s12471_s1 + $0x314] sm:$0xf] }
  0xae   : > { %2786 = vmatpush.bf16.msra.mxu0 %v5753_v46  ;;  %v5901_v46 = vor.u32 %v7806_v37, %v5898_v38  ;;  %v6909_v37 = vor.u32 %v8058_v25, %v6906_v26  ;;  %v6474_v38 = vld [vmem:[%s12471_s1 + $0x640] sm:$0xf0]  ;;  %v5904_v26 = vld [vmem:[%s12471_s1 + $0x198] sm:$0xf] }
  0xaf   : > { %2799 = vmatpush.bf16.msra.mxu1 %v6137_v49  ;;  %v6669_v49 = vor.u32 %v7998_v42, %v6666_v43  ;;  %v6048_v43 = vld [vmem:[%s12471_s1 + $0x2b8] sm:$0xf] }
  0xb0   : > { %2812 = vmatpush.bf16.msra.mxu2 %v6521_v50  ;;  %v5850_v50 = vld [vmem:[%s12471_s1 + $0x160] sm:$0xf0] }
  0xb1   : > { %2825 = vmatpush.bf16.msra.mxu3 %v6905_v54  ;;  %v7986_v54 = vld [vmem:[%s12471_s1 + $0x734] sm:$0xf]  ;;  %v5853_v59 = vor.u32 %v7794_v47, %v5850_v50  ;;  %v7945_v47 = vld [vmem:[%s12471_s1 + $0x5e4] sm:$0xf0] }
  0xb2   : > { %2787 = vmatpush.bf16.msra.mxu0 %v5705_v61  ;;  %v6237_v61 = vor.u32 %v7890_v51, %v6234_v52  ;;  %v6621_v62 = vor.u32 %v7986_v54, %v6618_v55  ;;  %v7200_v54 = vld [vmem:[%s12471_s1 + $0xbb8] sm:$0xf]  ;;  %v8137_v55 = vld [vmem:[%s12471_s1 + $0xbe4] sm:$0xf0] }
  0xb3   : > { %2800 = vmatpush.bf16.msra.mxu1 %v6089_v1  ;;  %v614_v1 = vperm.slane %v9639_v56, 0 }
  0xb4   : > { %2813 = vmatpush.bf16.msra.mxu2 %v6473_v2  ;;  %v7005_v2 = vor.u32 %v8082_v57, %v7002_v58 }
  0xb5   : > { %2826 = vmatpush.bf16.msra.mxu3 %v6857_v5  ;;  %2788 = vmatmul.bf16.vlgmr.msra.gmra.mxu0 %v8824_v20  ;;  %v6570_v5 = vld [vmem:[%s12471_s1 + $0x700] sm:$0xf0] }
  0xb6   : > { %2832 = vmatpush.bf16.msrb.mxu0 %v6045_v6  ;;  %2801 = vmatmul.bf16.vlgmr.msra.gmra.mxu1 %v8828_v22  ;;  %v8070_v6 = vld [vmem:[%s12471_s1 + $0x9d4] sm:$0xf]  ;;  %v6573_v11 = vor.u32 %v7974_v4, %v6570_v5  ;;  %v8029_v4 = vld [vmem:[%s12471_s1 + $0x884] sm:$0xf0]  ;;  %v7152_v5 = vld [vmem:[%s12471_s1 + $0xb58] sm:$0xf] }
  0xb7   : > { %2845 = vmatpush.bf16.msrb.mxu1 %v6429_v7  ;;  %2814 = vmatmul.bf16.vlgmr.msra.gmra.mxu2 %v8822_v19  ;;  %v6954_v7 = vld [vmem:[%s12471_s1 + $0xa00] sm:$0xf0] }
  0xb8   : > { %2858 = vmatpush.bf16.msrb.mxu2 %v6813_v8  ;;  %2827 = vmatmul.bf16.vlgmr.msra.gmra.mxu3 %v8826_v21  ;;  %v5805_v8 = vor.u32 %v7782_v60, %v5802_v63  ;;  %v2581_v9 = vpop.f32.mrf.mxu0  ;;  %v6957_v17 = vor.u32 %v8070_v6, %v6954_v7  ;;  %v6433_v60 = vor.u32 %v7945_v47, %v6432_v45  ;;  %v7837_v63 = vld [vmem:[%s12471_s1 + $0x284] sm:$0xf0] }
  0xb9   : > { %2871 = vmatpush.bf16.msrb.mxu3 %v7197_v12  ;;  %v7770_v12 = vld [vmem:[%s12471_s1 + $0x74] sm:$0xf]  ;;  %v2582_v15 = vadd.f32 %v2581_v9, %v614_v1  ;;  %v2594_v16 = vpop.f32.mrf.mxu1  ;;  %v7201_v1 = vor.u32 %v8137_v55, %v7200_v54  ;;  %v8125_v6 = vld [vmem:[%s12471_s1 + $0xb84] sm:$0xf0] }
  0xba   : > { %2833 = vmatpush.bf16.msrb.mxu0 %v5997_v18  ;;  %v6138_v18 = vld [vmem:[%s12471_s1 + $0x3a0] sm:$0xf0]  ;;  %v7801_v45 = vld [vmem:[%s12471_s1 + $0x164] sm:$0xf0] }
  0xbb   : > { %2846 = vmatpush.bf16.msrb.mxu1 %v6381_v23  ;;  %v7962_v23 = vld [vmem:[%s12471_s1 + $0x674] sm:$0xf]  ;;  %v2595_v27 = vadd.f32 %v2594_v16, %v2582_v15  ;;  %v6141_v31 = vor.u32 %v7866_v14, %v6138_v18  ;;  %v2620_v42 = vpop.f32.mrf.mxu3  ;;  %v6336_v14 = vld [vmem:[%s12471_s1 + $0x4f8] sm:$0xf]  ;;  %v7153_v15 = vor.u32 %v8125_v6, %v7152_v5  ;;  %v7921_v16 = vld [vmem:[%s12471_s1 + $0x524] sm:$0xf0] }
  0xbc   : > { %2859 = vmatpush.bf16.msrb.mxu2 %v6765_v24  ;;  %v6522_v24 = vld [vmem:[%s12471_s1 + $0x6a0] sm:$0xf0]  ;;  %v8017_v18 = vld [vmem:[%s12471_s1 + $0x824] sm:$0xf0]  ;;  %v6960_v6 = vld [vmem:[%s12471_s1 + $0x9d8] sm:$0xf] }
  0xbd   : > { %2872 = vmatpush.bf16.msrb.mxu3 %v7149_v28  ;;  %v5757_v28 = vor.u32 %v7770_v12, %v5754_v13  ;;  %v6525_v32 = vor.u32 %v7962_v23, %v6522_v24  ;;  %v5952_v12 = vld [vmem:[%s12471_s1 + $0x1f8] sm:$0xf]  ;;  %v7825_v13 = vld [vmem:[%s12471_s1 + $0x224] sm:$0xf0] }
  0xbe   : > { %2834 = vmatpush.bf16.msrb.mxu0 %v5949_v34  ;;  %v6090_v34 = vld [vmem:[%s12471_s1 + $0x340] sm:$0xf0]  ;;  %v7104_v23 = vld [vmem:[%s12471_s1 + $0xaf8] sm:$0xf]  ;;  %v8113_v24 = vld [vmem:[%s12471_s1 + $0xb24] sm:$0xf0]  ;;  %v5953_v25 = vor.u32 %v7825_v13, %v5952_v12 }
  0xbf   : > { %2847 = vmatpush.bf16.msrb.mxu1 %v6333_v35  ;;  %v7950_v35 = vld [vmem:[%s12471_s1 + $0x614] sm:$0xf]  ;;  %v6093_v52 = vor.u32 %v7854_v33, %v6090_v34  ;;  %v7909_v33 = vld [vmem:[%s12471_s1 + $0x4c4] sm:$0xf0]  ;;  %v6672_v34 = vld [vmem:[%s12471_s1 + $0x798] sm:$0xf] }
  0xc0   : > { %2860 = vmatpush.bf16.msrb.mxu2 %v6717_v36  ;;  %v2607_v36 = vpop.f32.mrf.mxu2  ;;  %v2583_v51 = vpop.f32.mrf.mxu0  ;;  %v8089_v54 = vld [vmem:[%s12471_s1 + $0xa64] sm:$0xf0] }
  0xc1   : > { %2873 = vmatpush.bf16.msrb.mxu3 %v7101_v40  ;;  %v6858_v40 = vld [vmem:[%s12471_s1 + $0x940] sm:$0xf0]  ;;  %v2608_v41 = vadd.f32 %v2607_v36, %v2595_v27  ;;  %v2596_v57 = vpop.f32.mrf.mxu1  ;;  %v6337_v27 = vor.u32 %v7921_v16, %v6336_v14  ;;  %v7056_v36 = vld [vmem:[%s12471_s1 + $0xa98] sm:$0xf]  ;;  %v7993_v51 = vld [vmem:[%s12471_s1 + $0x764] sm:$0xf0] }
  0xc2   : > { %2835 = vmatpush.bf16.msrb.mxu0 %v5901_v46  ;;  %v5709_v46 = vor.u32 %v7758_v29, %v5706_v30  ;;  %v6861_v58 = vor.u32 %v8046_v39, %v6858_v40  ;;  %v7813_v29 = vld [vmem:[%s12471_s1 + $0x1c4] sm:$0xf0]  ;;  %v6288_v30 = vld [vmem:[%s12471_s1 + $0x498] sm:$0xf] }
  0xc3   : > { %2848 = vmatpush.bf16.msrb.mxu1 %v6285_v48  ;;  %v6816_v48 = vld [vmem:[%s12471_s1 + $0x8b8] sm:$0xf]  ;;  %v9738_v50 = vadd.f32 %v2620_v42, %v2608_v41  ;;  %v2622_v9 = vpop.f32.mrf.mxu3  ;;  %v6289_v40 = vor.u32 %v7909_v33, %v6288_v30  ;;  %v7981_v5 = vld [vmem:[%s12471_s1 + $0x704] sm:$0xf0] }
  0xc4   : > { %2861 = vmatpush.bf16.msrb.mxu2 %v6669_v49  ;;  %v8041_v49 = vld [vmem:[%s12471_s1 + $0x8e4] sm:$0xf0]  ;;  %v5808_v57 = vld [vmem:[%s12471_s1 + $0xd8] sm:$0xf] }
  0xc5   : > { %2874 = vmatpush.bf16.msrb.mxu3 %v7053_v53  ;;  %v6477_v53 = vor.u32 %v7950_v35, %v6474_v38  ;;  %v8005_v35 = vld [vmem:[%s12471_s1 + $0x7c4] sm:$0xf0]  ;;  %v5905_v38 = vor.u32 %v7813_v29, %v5904_v26 }
  0xc6   : > { %2836 = vmatpush.bf16.msrb.mxu0 %v5853_v59  ;;  %v6049_v59 = vor.u32 %v7849_v44, %v6048_v43  ;;  %v6673_v41 = vor.u32 %v8005_v35, %v6672_v34  ;;  %v5856_v44 = vld [vmem:[%s12471_s1 + $0x138] sm:$0xf]  ;;  %v7777_v14 = vld [vmem:[%s12471_s1 + $0xa4] sm:$0xf0] }
  0xc7   : > { %2849 = vmatpush.bf16.msrb.mxu1 %v6237_v61  ;;  %v6817_v61 = vor.u32 %v8041_v49, %v6816_v48  ;;  %v7897_v48 = vld [vmem:[%s12471_s1 + $0x464] sm:$0xf0]  ;;  %v6624_v49 = vld [vmem:[%s12471_s1 + $0x738] sm:$0xf]  ;;  %v5857_v55 = vor.u32 %v7801_v45, %v5856_v44  ;;  %v7843_v44 = vld [vmem:[%s12471_s1 + $0x2bc] sm:$0xf] }
  0xc8   : > { %2862 = vmatpush.bf16.msrb.mxu2 %v6621_v62  ;;  %v6000_v62 = vld [vmem:[%s12471_s1 + $0x258] sm:$0xf]  ;;  %v2609_v7 = vpop.f32.mrf.mxu2  ;;  %v7873_v16 = vld [vmem:[%s12471_s1 + $0x3a4] sm:$0xf0]  ;;  %v6050_v45 = vld [vmem:[%s12471_s1 + $0x2e8] sm:$0xf0] }
  0xc9   : > { %2875 = vmatpush.bf16.msrb.mxu3 %v7005_v2  ;;  %v7933_v2 = vld [vmem:[%s12471_s1 + $0x584] sm:$0xf0]  ;;  %v6096_v35 = vld [vmem:[%s12471_s1 + $0x318] sm:$0xf] }
  0xca   : > { %2837 = vmatpush.bf16.msrb.mxu0 %v5805_v8  ;;  %v6001_v8 = vor.u32 %v7837_v63, %v6000_v62  ;;  %v6192_v62 = vld [vmem:[%s12471_s1 + $0x3d8] sm:$0xf]  ;;  %v7885_v63 = vld [vmem:[%s12471_s1 + $0x404] sm:$0xf0] }
  0xcb   : > { %2850 = vmatpush.bf16.msrb.mxu1 %v6189_v10  ;;  %v6385_v10 = vor.u32 %v7933_v2, %v6384_v0  ;;  %v3215_v0 = vrot.slane %v9738_v50, 4  ;;  %v8077_v7 = vld [vmem:[%s12471_s1 + $0xa04] sm:$0xf0]  ;;  %v6193_v12 = vor.u32 %v7885_v63, %v6192_v62  ;;  %v6002_v62 = vld [vmem:[%s12471_s1 + $0x288] sm:$0xf0] }
  0xcc   : > { %2863 = vmatpush.bf16.msrb.mxu2 %v6573_v11  ;;  %v6769_v11 = vor.u32 %v8029_v4, %v6768_v3  ;;  %v6576_v4 = vld [vmem:[%s12471_s1 + $0x6d8] sm:$0xf]  ;;  %v7969_v26 = vld [vmem:[%s12471_s1 + $0x6a4] sm:$0xf0]  ;;  %v7927_v63 = vld [vmem:[%s12471_s1 + $0x55c] sm:$0xf] }
  0xcd   : > { %2876 = vmatpush.bf16.msrb.mxu3 %v6957_v17  ;;  %v6720_v17 = vld [vmem:[%s12471_s1 + $0x7f8] sm:$0xf]  ;;  %v6577_v13 = vor.u32 %v7981_v5, %v6576_v4  ;;  %v8119_v4 = vld [vmem:[%s12471_s1 + $0xb5c] sm:$0xf]  ;;  %v7154_v5 = vld [vmem:[%s12471_s1 + $0xb88] sm:$0xf0] }
  0xce   : > { %2838 = vmatpush.bf16.msrb.mxu0 %v5757_v28  ;;  %v6721_v28 = vor.u32 %v8017_v18, %v6720_v17 }
  0xcf   : > { %2851 = vmatpush.bf16.msrb.mxu1 %v6141_v31  ;;  %v615_v31 = vperm.slane %v9639_v56, 1 }
  0xd0   : > { %2864 = vmatpush.bf16.msrb.mxu2 %v6525_v32  ;;  %v7105_v32 = vor.u32 %v8113_v24, %v7104_v23  ;;  %v6961_v24 = vor.u32 %v8077_v7, %v6960_v6 }
  0xd1   : > { %2877 = vmatpush.bf16.msrb.mxu3 %v6909_v37  ;;  %v8101_v37 = vld [vmem:[%s12471_s1 + $0xac4] sm:$0xf0] }
  0xd2   : > { %2839 = vmatpush.bf16.msrb.mxu0 %v5709_v46  ;;  %v2633_v39 = vpop.f32.mrf.mxu0  ;;  %v6240_v46 = vld [vmem:[%s12471_s1 + $0x438] sm:$0xf]  ;;  %v7057_v47 = vor.u32 %v8101_v37, %v7056_v36  ;;  %v7861_v36 = vld [vmem:[%s12471_s1 + $0x344] sm:$0xf0] }
  0xd3   : > { %2852 = vmatpush.bf16.msrb.mxu1 %v6093_v52  ;;  %v2634_v42 = vadd.f32 %v2633_v39, %v615_v31  ;;  %v2646_v43 = vpop.f32.mrf.mxu1  ;;  %v5712_v31 = vld [vmem:[%s12471_s1 + $0x18] sm:$0xf] }
  0xd4   : > { %2865 = vmatpush.bf16.msrb.mxu2 %v6477_v53  ;;  %v7008_v53 = vld [vmem:[%s12471_s1 + $0xa38] sm:$0xf] }
  0xd5   : > { %2878 = vmatpush.bf16.msrb.mxu3 %v6861_v58  ;;  %2840 = vmatmul.bf16.vlgmr.msrb.gmra.mxu0 %v8824_v20  ;;  %v2647_v52 = vadd.f32 %v2646_v43, %v2634_v42  ;;  %v6241_v58 = vor.u32 %v7897_v48, %v6240_v46  ;;  %v6480_v37 = vld [vmem:[%s12471_s1 + $0x618] sm:$0xf]  ;;  %v8053_v42 = vld [vmem:[%s12471_s1 + $0x944] sm:$0xf0]  ;;  %v7939_v46 = vld [vmem:[%s12471_s1 + $0x5bc] sm:$0xf] }
  0xd6   : > { %2884 = vmatpush.bf16.msra.mxu0 %v6049_v59  ;;  %2853 = vmatmul.bf16.vlgmr.msrb.gmra.mxu1 %v8828_v22  ;;  %v6625_v59 = vor.u32 %v7993_v51, %v6624_v49  ;;  %v6434_v48 = vld [vmem:[%s12471_s1 + $0x5e8] sm:$0xf0]  ;;  %v8035_v49 = vld [vmem:[%s12471_s1 + $0x8bc] sm:$0xf] }
  0xd7   : > { %2897 = vmatpush.bf16.msra.mxu1 %v6433_v60  ;;  %2866 = vmatmul.bf16.vlgmr.msrb.gmra.mxu2 %v8822_v19  ;;  %v6818_v51 = vld [vmem:[%s12471_s1 + $0x8e8] sm:$0xf0] }
  0xd8   : > { %2910 = vmatpush.bf16.msra.mxu2 %v6817_v61  ;;  %2879 = vmatmul.bf16.vlgmr.msrb.gmra.mxu3 %v8826_v21  ;;  %v7789_v61 = vld [vmem:[%s12471_s1 + $0x104] sm:$0xf0] }
  0xd9   : > { %2923 = vmatpush.bf16.msra.mxu3 %v7201_v1  ;;  %v7009_v1 = vor.u32 %v8089_v54, %v7008_v53  ;;  %v5809_v9 = vor.u32 %v7789_v61, %v5808_v57  ;;  %v8131_v54 = vld [vmem:[%s12471_s1 + $0xbbc] sm:$0xf] }
  0xda   : > { %2885 = vmatpush.bf16.msra.mxu0 %v6001_v8  ;;  %v2659_v60 = vpop.f32.mrf.mxu2  ;;  %v7831_v61 = vld [vmem:[%s12471_s1 + $0x25c] sm:$0xf] }
  0xdb   : > { %2898 = vmatpush.bf16.msra.mxu1 %v6385_v10  ;;  %v2660_v2 = vadd.f32 %v2659_v60, %v2647_v52  ;;  %v2672_v3 = vpop.f32.mrf.mxu3  ;;  %v5760_v10 = vld [vmem:[%s12471_s1 + $0x78] sm:$0xf]  ;;  %v2648_v17 = vpop.f32.mrf.mxu1  ;;  %v6097_v52 = vor.u32 %v7861_v36, %v6096_v35  ;;  %v6821_v60 = vor.u32 %v8035_v49, %v6818_v51  ;;  %v6005_v6 = vor.u32 %v7831_v61, %v6002_v62  ;;  %v8095_v35 = vld [vmem:[%s12471_s1 + $0xa9c] sm:$0xf]  ;;  %v7058_v36 = vld [vmem:[%s12471_s1 + $0xac8] sm:$0xf0] }
  0xdc   : > { %2911 = vmatpush.bf16.msra.mxu2 %v6769_v11  ;;  %v2635_v11 = vpop.f32.mrf.mxu0  ;;  %v5761_v30 = vor.u32 %v7777_v14, %v5760_v10  ;;  %v7819_v10 = vld [vmem:[%s12471_s1 + $0x1fc] sm:$0xf]  ;;  %v6338_v14 = vld [vmem:[%s12471_s1 + $0x528] sm:$0xf0] }
  0xdd   : > { %2924 = vmatpush.bf16.msra.mxu3 %v7153_v15  ;;  %v9872_v8 = vadd.f32 %v2672_v3, %v2660_v2  ;;  %v6144_v15 = vld [vmem:[%s12471_s1 + $0x378] sm:$0xf]  ;;  %v8023_v2 = vld [vmem:[%s12471_s1 + $0x85c] sm:$0xf]  ;;  %v6770_v3 = vld [vmem:[%s12471_s1 + $0x888] sm:$0xf0] }
  0xde   : > { %2886 = vmatpush.bf16.msra.mxu0 %v5953_v25  ;;  %v6528_v25 = vld [vmem:[%s12471_s1 + $0x678] sm:$0xf]  ;;  %v6145_v33 = vor.u32 %v7873_v16, %v6144_v15  ;;  %v5954_v11 = vld [vmem:[%s12471_s1 + $0x228] sm:$0xf0]  ;;  %v8011_v15 = vld [vmem:[%s12471_s1 + $0x7fc] sm:$0xf] }
  0xdf   : > { %2899 = vmatpush.bf16.msra.mxu1 %v6337_v27  ;;  %v3212_v18 = vrot.slane %v9872_v8, 4  ;;  %v9889_v23 = vsel %vm3213_vm0, %v9872_v8, %v3215_v0  ;;  %v6912_v27 = vld [vmem:[%s12471_s1 + $0x978] sm:$0xf]  ;;  %v6529_v34 = vor.u32 %v7969_v26, %v6528_v25  ;;  %v6722_v16 = vld [vmem:[%s12471_s1 + $0x828] sm:$0xf0] }
  0xe0   : > { %2912 = vmatpush.bf16.msra.mxu2 %v6721_v28  ;;  %v8065_v28 = vld [vmem:[%s12471_s1 + $0x9a4] sm:$0xf0]  ;;  %v8107_v17 = vld [vmem:[%s12471_s1 + $0xafc] sm:$0xf]  ;;  %v6725_v26 = vor.u32 %v8011_v15, %v6722_v16  ;;  %v7010_v51 = vld [vmem:[%s12471_s1 + $0xa68] sm:$0xf0] }
  0xe1   : > { %2925 = vmatpush.bf16.msra.mxu3 %v7105_v32  ;;  %v9905_v29 = vsel %vm3213_vm0, %v3212_v18, %v9738_v50  ;;  %v7765_v32 = vld [vmem:[%s12471_s1 + $0x44] sm:$0xf0]  ;;  %v6913_v39 = vor.u32 %v8065_v28, %v6912_v27  ;;  %v7106_v18 = vld [vmem:[%s12471_s1 + $0xb28] sm:$0xf0]  ;;  %v7807_v27 = vld [vmem:[%s12471_s1 + $0x19c] sm:$0xf] }
  0xe2   : > { %2887 = vmatpush.bf16.msra.mxu0 %v5905_v38  ;;  %v2661_v38 = vpop.f32.mrf.mxu2  ;;  %v5906_v28 = vld [vmem:[%s12471_s1 + $0x1c8] sm:$0xf0]  ;;  %v8083_v49 = vld [vmem:[%s12471_s1 + $0xa3c] sm:$0xf] }
  0xe3   : > { %2900 = vmatpush.bf16.msra.mxu1 %v6289_v40  ;;  %v7957_v40 = vld [vmem:[%s12471_s1 + $0x644] sm:$0xf0]  ;;  %v2674_v43 = vpop.f32.mrf.mxu3  ;;  %v6194_v62 = vld [vmem:[%s12471_s1 + $0x408] sm:$0xf0]  ;;  %v8059_v16 = vld [vmem:[%s12471_s1 + $0x97c] sm:$0xf] }
  0xe4   : > { %2913 = vmatpush.bf16.msra.mxu2 %v6673_v41  ;;  %v6864_v41 = vld [vmem:[%s12471_s1 + $0x918] sm:$0xf]  ;;  %v6481_v53 = vor.u32 %v7957_v40, %v6480_v37  ;;  %v5909_v37 = vor.u32 %v7807_v27, %v5906_v28  ;;  %v5858_v43 = vld [vmem:[%s12471_s1 + $0x168] sm:$0xf0]  ;;  %v7855_v28 = vld [vmem:[%s12471_s1 + $0x31c] sm:$0xf] }
  0xe5   : > { %2926 = vmatpush.bf16.msra.mxu3 %v7057_v47  ;;  %v5713_v47 = vor.u32 %v7765_v32, %v5712_v31  ;;  %v6865_v57 = vor.u32 %v8053_v42, %v6864_v41  ;;  %v7109_v31 = vor.u32 %v8107_v17, %v7106_v18  ;;  %v6290_v32 = vld [vmem:[%s12471_s1 + $0x4c8] sm:$0xf0]  ;;  %v7795_v42 = vld [vmem:[%s12471_s1 + $0x13c] sm:$0xf] }
  0xe6   : > { %2888 = vmatpush.bf16.msra.mxu0 %v5857_v55  ;;  %v7202_v55 = vld [vmem:[%s12471_s1 + $0xbe8] sm:$0xf0] }
  0xe7   : > { %2901 = vmatpush.bf16.msra.mxu1 %v6241_v58  ;;  %v6053_v58 = vor.u32 %v7843_v44, %v6050_v45  ;;  %v7205_v0 = vor.u32 %v8131_v54, %v7202_v55  ;;  %v7891_v44 = vld [vmem:[%s12471_s1 + $0x43c] sm:$0xf]  ;;  %v7061_v45 = vor.u32 %v8095_v35, %v7058_v36  ;;  %v6530_v15 = vld [vmem:[%s12471_s1 + $0x6a8] sm:$0xf0] }
  0xe8   : > { %2914 = vmatpush.bf16.msra.mxu2 %v6625_v59  ;;  %v6437_v59 = vor.u32 %v7939_v46, %v6434_v48  ;;  %v6242_v46 = vld [vmem:[%s12471_s1 + $0x468] sm:$0xf0]  ;;  %v8047_v36 = vld [vmem:[%s12471_s1 + $0x91c] sm:$0xf] }
  0xe9   : > { %2927 = vmatpush.bf16.msra.mxu3 %v7009_v1  ;;  %v6386_v1 = vld [vmem:[%s12471_s1 + $0x588] sm:$0xf0] }
  0xea   : > { %2889 = vmatpush.bf16.msra.mxu0 %v5809_v9  ;;  %v6389_v7 = vor.u32 %v7927_v63, %v6386_v1  ;;  %v6773_v9 = vor.u32 %v8023_v2, %v6770_v3  ;;  %v6626_v48 = vld [vmem:[%s12471_s1 + $0x768] sm:$0xf0]  ;;  %v7975_v63 = vld [vmem:[%s12471_s1 + $0x6dc] sm:$0xf] }
  0xeb   : > { %2902 = vmatpush.bf16.msra.mxu1 %v6193_v12  ;;  %v7915_v12 = vld [vmem:[%s12471_s1 + $0x4fc] sm:$0xf]  ;;  %v6962_v2 = vld [vmem:[%s12471_s1 + $0xa08] sm:$0xf0] }
  0xec   : > { %2915 = vmatpush.bf16.msra.mxu2 %v6577_v13  ;;  %v7157_v13 = vor.u32 %v8119_v4, %v7154_v5  ;;  %v6341_v25 = vor.u32 %v7915_v12, %v6338_v14  ;;  %v8071_v1 = vld [vmem:[%s12471_s1 + $0x9dc] sm:$0xf]  ;;  %v6914_v17 = vld [vmem:[%s12471_s1 + $0x9a8] sm:$0xf0] }
  0xed   : > { %2928 = vmatpush.bf16.msra.mxu3 %v6961_v24  ;;  %v5957_v24 = vor.u32 %v7819_v10, %v5954_v11  ;;  %v7867_v10 = vld [vmem:[%s12471_s1 + $0x37c] sm:$0xf]  ;;  %v6965_v12 = vor.u32 %v8071_v1, %v6962_v2  ;;  %v5714_v27 = vld [vmem:[%s12471_s1 + $0x48] sm:$0xf0] }
  0xee   : > { %2890 = vmatpush.bf16.msra.mxu0 %v5761_v30  ;;  %v7903_v30 = vld [vmem:[%s12471_s1 + $0x49c] sm:$0xf] }
  0xef   : > { %2903 = vmatpush.bf16.msra.mxu1 %v6145_v33  ;;  %v7999_v33 = vld [vmem:[%s12471_s1 + $0x79c] sm:$0xf] }
  0xf0   : > { %2916 = vmatpush.bf16.msra.mxu2 %v6529_v34  ;;  %v6674_v34 = vld [vmem:[%s12471_s1 + $0x7c8] sm:$0xf0]  ;;  %v7963_v14 = vld [vmem:[%s12471_s1 + $0x67c] sm:$0xf] }
  0xf1   : > { %2929 = vmatpush.bf16.msra.mxu3 %v6913_v39  ;;  %v6293_v39 = vor.u32 %v7903_v30, %v6290_v32  ;;  %v6677_v40 = vor.u32 %v7999_v33, %v6674_v34  ;;  %v6098_v32 = vld [vmem:[%s12471_s1 + $0x348] sm:$0xf0]  ;;  %v7951_v33 = vld [vmem:[%s12471_s1 + $0x61c] sm:$0xf] }
  0xf2   : > { %2891 = vmatpush.bf16.msra.mxu0 %v5713_v47  ;;  %v10031_v38 = vpop.f32.mrf.mxu0  ;;  %v7987_v47 = vld [vmem:[%s12471_s1 + $0x73c] sm:$0xf]  ;;  %v6482_v34 = vld [vmem:[%s12471_s1 + $0x648] sm:$0xf0] }
  0xf3   : > { %2904 = vmatpush.bf16.msra.mxu1 %v6097_v52  ;;  %v10033_v41 = vpop.f32.mrf.mxu1  ;;  %v5861_v52 = vor.u32 %v7795_v42, %v5858_v43  ;;  %v6629_v54 = vor.u32 %v7987_v47, %v6626_v48  ;;  %v6485_v42 = vor.u32 %v7951_v33, %v6482_v34  ;;  %v616_v43 = vperm.slane %v9639_v56, 2 }
  0xf4   : > { %2917 = vmatpush.bf16.msra.mxu2 %v6481_v53  ;;  %v6245_v53 = vor.u32 %v7891_v44, %v6242_v46  ;;  %v617_v47 = vperm.slane %v9639_v56, 3 }
  0xf5   : > { %2930 = vmatpush.bf16.msra.mxu3 %v6865_v57  ;;  %2892 = vmatmul.bf16.vlgmr.msra.gmra.mxu0 %v8824_v20  ;;  %v7783_v57 = vld [vmem:[%s12471_s1 + $0xdc] sm:$0xf] }
  0xf6   : > { %2936 = vmatpush.bf16.msrb.mxu0 %v6053_v58  ;;  %2905 = vmatmul.bf16.vlgmr.msra.gmra.mxu1 %v8828_v22  ;;  %v5810_v58 = vld [vmem:[%s12471_s1 + $0x108] sm:$0xf0] }
  0xf7   : > { %2949 = vmatpush.bf16.msrb.mxu1 %v6437_v59  ;;  %2918 = vmatmul.bf16.vlgmr.msra.gmra.mxu2 %v8822_v19  ;;  %v7879_v59 = vld [vmem:[%s12471_s1 + $0x3dc] sm:$0xf]  ;;  %v5813_v3 = vor.u32 %v7783_v57, %v5810_v58 }
  0xf8   : > { %2962 = vmatpush.bf16.msrb.mxu2 %v6821_v60  ;;  %2931 = vmatmul.bf16.vlgmr.msra.gmra.mxu3 %v8826_v21  ;;  %v7013_v60 = vor.u32 %v8083_v49, %v7010_v51  ;;  %v6197_v5 = vor.u32 %v7879_v59, %v6194_v62 }
  0xf9   : > { %2975 = vmatpush.bf16.msrb.mxu3 %v7205_v0  ;;  %v6578_v0 = vld [vmem:[%s12471_s1 + $0x708] sm:$0xf0] }
  0xfa   : > { %2937 = vmatpush.bf16.msrb.mxu0 %v6005_v6  ;;  %v10059_v55 = vpop.f32.mrf.mxu2  ;;  %v2687_v4 = vpop.f32.mrf.mxu0  ;;  %v6581_v6 = vor.u32 %v7975_v63, %v6578_v0 }
  0xfb   : > { %2950 = vmatpush.bf16.msrb.mxu1 %v6389_v7  ;;  %v10070_v61 = vpop.f32.mrf.mxu3  ;;  %v7771_v7 = vld [vmem:[%s12471_s1 + $0x7c] sm:$0xf]  ;;  %v2700_v11 = vpop.f32.mrf.mxu1  ;;  %v618_v4 = vperm.slane %v9639_v56, 4 }
  0xfc   : > { %2963 = vmatpush.bf16.msrb.mxu2 %v6773_v9  ;;  %v5762_v9 = vld [vmem:[%s12471_s1 + $0xa8] sm:$0xf0] }
  0xfd   : > { %2976 = vmatpush.bf16.msrb.mxu3 %v7157_v13  ;;  %v6146_v13 = vld [vmem:[%s12471_s1 + $0x3a8] sm:$0xf0]  ;;  %v5765_v18 = vor.u32 %v7771_v7, %v5762_v9 }
  0xfe   : > { %2938 = vmatpush.bf16.msrb.mxu0 %v5957_v24  ;;  %v6149_v24 = vor.u32 %v7867_v10, %v6146_v13 }
  0xff   : > { %2951 = vmatpush.bf16.msrb.mxu1 %v6341_v25  ;;  %v6533_v25 = vor.u32 %v7963_v14, %v6530_v15 }
 0x100   : > { %2964 = vmatpush.bf16.msrb.mxu2 %v6725_v26  ;;  %v7759_v26 = vld [vmem:[%s12471_s1 + $0x1c] sm:$0xf] }
 0x101   : > { %2977 = vmatpush.bf16.msrb.mxu3 %v7109_v31  ;;  %v6917_v31 = vor.u32 %v8059_v16, %v6914_v17  ;;  %v619_v17 = vperm.slane %v9639_v56, 5 }
 0x102   : > { %2939 = vmatpush.bf16.msrb.mxu0 %v5909_v37  ;;  %v2713_v30 = vpop.f32.mrf.mxu2  ;;  %v6866_v37 = vld [vmem:[%s12471_s1 + $0x948] sm:$0xf0] }
 0x103   : > { %2952 = vmatpush.bf16.msrb.mxu1 %v6293_v39  ;;  %v2726_v35 = vpop.f32.mrf.mxu3  ;;  %v5717_v39 = vor.u32 %v7759_v26, %v5714_v27  ;;  %v6869_v44 = vor.u32 %v8047_v36, %v6866_v37 }
 0x104   : > { %2965 = vmatpush.bf16.msrb.mxu2 %v6677_v40  ;;  %v6101_v40 = vor.u32 %v7855_v28, %v6098_v32 }
 0x105   : > { %2978 = vmatpush.bf16.msrb.mxu3 %v7061_v45  ;;  %v2686_v45 = vadd.f32 %v10031_v38, %v616_v43  ;;  %v6824_v43 = vld [vmem:[%s12471_s1 + $0x8c0] sm:$0xf] }
 0x106   : > { %2940 = vmatpush.bf16.msrb.mxu0 %v5861_v52 }
 0x107   : > { %2953 = vmatpush.bf16.msrb.mxu1 %v6245_v53  ;;  %v2699_v46 = vadd.f32 %v10033_v41, %v2686_v45 }
 0x108   : > { %2966 = vmatpush.bf16.msrb.mxu2 %v6629_v54 }
 0x109   : > { %2979 = vmatpush.bf16.msrb.mxu3 %v7013_v60  ;;  %v2712_v48 = vadd.f32 %v10059_v55, %v2699_v46  ;;  %v6056_v46 = vld [vmem:[%s12471_s1 + $0x2c0] sm:$0xf] }
 0x10a   : > { %2941 = vmatpush.bf16.msrb.mxu0 %v5813_v3 }
 0x10b   : > { %2954 = vmatpush.bf16.msrb.mxu1 %v6197_v5  ;;  %v2725_v38 = vadd.f32 %v10070_v61, %v2712_v48  ;;  %v7208_v48 = vld [vmem:[%s12471_s1 + $0xbc0] sm:$0xf] }
 0x10c   : > { %2967 = vmatpush.bf16.msrb.mxu2 %v6581_v6 }
 0x10d   : > { %2980 = vmatpush.bf16.msrb.mxu3 %v6965_v12  ;;  %v3239_v57 = vrot.slane %v2725_v38, 4  ;;  %v8326_v3 = vpack.i.bf16 %v9738_v50, %v2725_v38 }
 0x10e   : > { %2942 = vmatpush.bf16.msrb.mxu0 %v5765_v18 }
 0x10f   : > { %2955 = vmatpush.bf16.msrb.mxu1 %v6149_v24 }
 0x110   : > { %2968 = vmatpush.bf16.msrb.mxu2 %v6533_v25 }
 0x111   : > { %2981 = vmatpush.bf16.msrb.mxu3 %v6917_v31 }
 0x112   : > { %2943 = vmatpush.bf16.msrb.mxu0 %v5717_v39  ;;  %v2737_v49 = vpop.f32.mrf.mxu0 }
 0x113   : > { %2956 = vmatpush.bf16.msrb.mxu1 %v6101_v40  ;;  %v2738_v51 = vadd.f32 %v2737_v49, %v617_v47  ;;  %v2750_v52 = vpop.f32.mrf.mxu1  ;;  %v7850_v47 = vld [vmem:[%s12471_s1 + $0x2ec] sm:$0xf0] }
 0x114   : > { %2969 = vmatpush.bf16.msrb.mxu2 %v6485_v42  ;;  %v6057_v49 = vor.u32 %v7850_v47, %v6056_v46  ;;  %v7910_v46 = vld [vmem:[%s12471_s1 + $0x4cc] sm:$0xf0]  ;;  %v6632_v47 = vld [vmem:[%s12471_s1 + $0x740] sm:$0xf] }
 0x115   : > { %2982 = vmatpush.bf16.msrb.mxu3 %v6869_v44  ;;  %2944 = vmatmul.bf16.vlgmr.msrb.gmra.mxu0 %v8824_v20  ;;  %v2751_v53 = vadd.f32 %v2750_v52, %v2738_v51  ;;  %v8042_v44 = vld [vmem:[%s12471_s1 + $0x8ec] sm:$0xf0] }
 0x116   : > { %2957 = vmatmul.bf16.vlgmr.msrb.gmra.mxu1 %v8828_v22  ;;  %v6825_v45 = vor.u32 %v8042_v44, %v6824_v43  ;;  %v8138_v51 = vld [vmem:[%s12471_s1 + $0xbec] sm:$0xf0]  ;;  %2988 = vmatpush.bf16.msra.mxu0 %v6057_v49 }
 0x117   : > { %2970 = vmatmul.bf16.vlgmr.msrb.gmra.mxu2 %v8822_v19  ;;  %v8102_v43 = vld [vmem:[%s12471_s1 + $0xacc] sm:$0xf0] }
 0x118   : > { %2983 = vmatmul.bf16.vlgmr.msrb.gmra.mxu3 %v8826_v21  ;;  %3014 = vmatpush.bf16.msra.mxu2 %v6825_v45  ;;  %v6296_v45 = vld [vmem:[%s12471_s1 + $0x4a0] sm:$0xf] }
 0x119   : > { %v6297_v49 = vor.u32 %v7910_v46, %v6296_v45  ;;  %v7958_v46 = vld [vmem:[%s12471_s1 + $0x64c] sm:$0xf0] }
 0x11a   : > { %v2763_v54 = vpop.f32.mrf.mxu2  ;;  %v2739_v62 = vpop.f32.mrf.mxu0 }
 0x11b   : > { %v2764_v58 = vadd.f32 %v2763_v54, %v2751_v53  ;;  %v2776_v59 = vpop.f32.mrf.mxu3  ;;  %v2752_v63 = vpop.f32.mrf.mxu1  ;;  %v7209_v53 = vor.u32 %v8138_v51, %v7208_v48  ;;  %v7946_v54 = vld [vmem:[%s12471_s1 + $0x5ec] sm:$0xf0]  ;;  %v620_v48 = vperm.slane %v9639_v56, 6  ;;  %v7016_v56 = vld [vmem:[%s12471_s1 + $0xa40] sm:$0xf] }
 0x11c   : > { %v6008_v63 = vld [vmem:[%s12471_s1 + $0x260] sm:$0xf]  ;;  %v7994_v51 = vld [vmem:[%s12471_s1 + $0x76c] sm:$0xf0] }
 0x11d   : > { %v2777_v60 = vadd.f32 %v2776_v59, %v2764_v58  ;;  %3027 = vmatpush.bf16.msra.mxu3 %v7209_v53  ;;  %v6633_v53 = vor.u32 %v7994_v51, %v6632_v47  ;;  %v8036_v47 = vld [vmem:[%s12471_s1 + $0x8c4] sm:$0xf] }
 0x11f   : > { %v3237_v0 = vrot.slane %v2777_v60, 4  ;;  %v10146_v41 = vsel %vm3213_vm0, %v2777_v60, %v3239_v57  ;;  %v8321_v1 = vpack.i.bf16 %v9872_v8, %v2777_v60  ;;  %v6776_v57 = vld [vmem:[%s12471_s1 + $0x860] sm:$0xf]  ;;  %v8030_v60 = vld [vmem:[%s12471_s1 + $0x88c] sm:$0xf0] }
 0x120   : > { %v6777_v62 = vor.u32 %v8030_v60, %v6776_v57 }
 0x121   : > { %v10150_v55 = vsel %vm3213_vm0, %v3237_v0, %v2725_v38  ;;  %8322 = vrot.lane.b32.xlu1 %v8321_v1, %s8448_s12  ;;  %v6440_v38 = vld [vmem:[%s12471_s1 + $0x5c0] sm:$0xf]  ;;  %v7838_v0 = vld [vmem:[%s12471_s1 + $0x28c] sm:$0xf0] }
 0x122   : > { %v2765_v61 = vpop.f32.mrf.mxu2  ;;  %v6441_v59 = vor.u32 %v7946_v54, %v6440_v38  ;;  %v7160_v1 = vld [vmem:[%s12471_s1 + $0xb60] sm:$0xf]  ;;  %3015 = vmatpush.bf16.msra.mxu2 %v6777_v62  ;;  %v7802_v54 = vld [vmem:[%s12471_s1 + $0x16c] sm:$0xf0] }
 0x123   : > { %v2778_v2 = vpop.f32.mrf.mxu3  ;;  %v5864_v38 = vld [vmem:[%s12471_s1 + $0x140] sm:$0xf] }
 0x124   : > { %3001 = vmatpush.bf16.msra.mxu1 %v6441_v59  ;;  %v6009_v2 = vor.u32 %v7838_v0, %v6008_v63  ;;  %v5865_v57 = vor.u32 %v7802_v54, %v5864_v38  ;;  %v8090_v59 = vld [vmem:[%s12471_s1 + $0xa6c] sm:$0xf0]  ;;  %v6248_v62 = vld [vmem:[%s12471_s1 + $0x440] sm:$0xf] }
 0x125   : > { %v7017_v60 = vor.u32 %v8090_v59, %v7016_v56  ;;  %v7898_v63 = vld [vmem:[%s12471_s1 + $0x46c] sm:$0xf0]  ;;  %v6584_v0 = vld [vmem:[%s12471_s1 + $0x6e0] sm:$0xf] }
 0x126   : > { %2989 = vmatpush.bf16.msra.mxu0 %v6009_v2  ;;  %v5720_v38 = vld [vmem:[%s12471_s1 + $0x20] sm:$0xf]  ;;  %v7766_v54 = vld [vmem:[%s12471_s1 + $0x4c] sm:$0xf0] }
 0x127   : > { %v6872_v56 = vld [vmem:[%s12471_s1 + $0x920] sm:$0xf]  ;;  %v5721_v59 = vor.u32 %v7766_v54, %v5720_v38 }
 0x129   : > { %8327 = vrot.lane.b32.xlu1 %v8326_v3, %s8448_s12  ;;  %v8126_v3 = vld [vmem:[%s12471_s1 + $0xb8c] sm:$0xf0] }
 0x132   : > { %v2789_v5 = vpop.f32.mrf.mxu0 }
 0x133   : > { %v2790_v6 = vadd.f32 %v2789_v5, %v618_v4  ;;  %v2802_v7 = vpop.f32.mrf.mxu1  ;;  %v7161_v5 = vor.u32 %v8126_v3, %v7160_v1  ;;  %v6249_v1 = vor.u32 %v7898_v63, %v6248_v62  ;;  %v6058_v62 = vld [vmem:[%s12471_s1 + $0x2f0] sm:$0xf0] }
 0x135   : > { %v2803_v9 = vadd.f32 %v2802_v7, %v2790_v6  ;;  %v6392_v6 = vld [vmem:[%s12471_s1 + $0x560] sm:$0xf]  ;;  %v7934_v7 = vld [vmem:[%s12471_s1 + $0x58c] sm:$0xf0]  ;;  %3028 = vmatpush.bf16.msra.mxu3 %v7161_v5 }
 0x136   : > { %v7790_v5 = vld [vmem:[%s12471_s1 + $0x10c] sm:$0xf0] }
 0x13a   : > { %v2815_v10 = vpop.f32.mrf.mxu2  ;;  %v2791_v13 = vpop.f32.mrf.mxu0 }
 0x13b   : > { %v2816_v8 = vadd.f32 %v2815_v10, %v2803_v9  ;;  %v2828_v11 = vpop.f32.mrf.mxu3  ;;  %v2804_v14 = vpop.f32.mrf.mxu1  ;;  %v6728_v9 = vld [vmem:[%s12471_s1 + $0x800] sm:$0xf]  ;;  %v6393_v10 = vor.u32 %v7934_v7, %v6392_v6 }
 0x13c   : > { %v5960_v13 = vld [vmem:[%s12471_s1 + $0x200] sm:$0xf]  ;;  %v7826_v14 = vld [vmem:[%s12471_s1 + $0x22c] sm:$0xf0] }
 0x13d   : > { %v10156_v12 = vadd.f32 %v2828_v11, %v2816_v8  ;;  %v8018_v8 = vld [vmem:[%s12471_s1 + $0x82c] sm:$0xf0]  ;;  %3002 = vmatpush.bf16.msra.mxu1 %v6393_v10  ;;  %v6968_v6 = vld [vmem:[%s12471_s1 + $0x9e0] sm:$0xf] }
 0x13e   : > { %v6729_v11 = vor.u32 %v8018_v8, %v6728_v9  ;;  %v8383_v7 = vld [vmem:[%s12472_s2] sm:$0xff]  ;;  %v8078_v10 = vld [vmem:[%s12471_s1 + $0xa0c] sm:$0xf0]  ;;  %v8449_v8 = vmov 1983009808  }
 0x13f   : > { %v3463_v27 = vrot.slane %v10156_v12, 4  ;;  %v621_v9 = vperm.slane %v8383_v7, 7 }
 0x140   : > { %3016 = vmatpush.bf16.msra.mxu2 %v6729_v11  ;;  %v3218_v11 = vunpack.c.l.s4 %v8449_v8  ;;  %v8024_v8 = vld [vmem:[%s12471_s1 + $0x864] sm:$0xf] }
 0x142   : > { %v2817_v15 = vpop.f32.mrf.mxu2 }
 0x143   : > { %v2830_v16 = vpop.f32.mrf.mxu3  ;;  %v7112_v15 = vld [vmem:[%s12471_s1 + $0xb00] sm:$0xf] }
 0x144   : > { %v5961_v16 = vor.u32 %v7826_v14, %v5960_v13  ;;  %v6969_v13 = vor.u32 %v8078_v10, %v6968_v6  ;;  %v6200_v14 = vld [vmem:[%s12471_s1 + $0x3e0] sm:$0xf]  ;;  %v6442_v6 = vld [vmem:[%s12471_s1 + $0x5f0] sm:$0xf0] }
 0x146   : > { %2990 = vmatpush.bf16.msra.mxu0 %v5961_v16  ;;  %v6536_v16 = vld [vmem:[%s12471_s1 + $0x680] sm:$0xf] }
 0x152   : > { %v2841_v50 = vpop.f32.mrf.mxu0 }
 0x153   : > { %v2842_v18 = vadd.f32 %v2841_v50, %v619_v17  ;;  %v2854_v24 = vpop.f32.mrf.mxu1  ;;  %v8114_v17 = vld [vmem:[%s12471_s1 + $0xb2c] sm:$0xf0] }
 0x155   : > { %v2855_v25 = vadd.f32 %v2854_v24, %v2842_v18  ;;  %v7113_v18 = vor.u32 %v8114_v17, %v7112_v15  ;;  %v6344_v24 = vld [vmem:[%s12471_s1 + $0x500] sm:$0xf]  ;;  %v7886_v15 = vld [vmem:[%s12471_s1 + $0x40c] sm:$0xf0] }
 0x156   : > { %v6201_v17 = vor.u32 %v7886_v15, %v6200_v14 }
 0x157   : > { %3029 = vmatpush.bf16.msra.mxu3 %v7113_v18 }
 0x15a   : > { %v2867_v26 = vpop.f32.mrf.mxu2  ;;  %v2843_v32 = vpop.f32.mrf.mxu0 }
 0x15b   : > { %v2868_v28 = vadd.f32 %v2867_v26, %v2855_v25  ;;  %v2880_v30 = vpop.f32.mrf.mxu3  ;;  %v2856_v33 = vpop.f32.mrf.mxu1  ;;  %v7922_v25 = vld [vmem:[%s12471_s1 + $0x52c] sm:$0xf0]  ;;  %v6680_v26 = vld [vmem:[%s12471_s1 + $0x7a0] sm:$0xf] }
 0x15c   : > { %v5912_v33 = vld [vmem:[%s12471_s1 + $0x1a0] sm:$0xf] }
 0x15d   : > { %v10160_v31 = vadd.f32 %v2880_v30, %v2868_v28  ;;  %v6345_v28 = vor.u32 %v7922_v25, %v6344_v24  ;;  %v8006_v30 = vld [vmem:[%s12471_s1 + $0x7cc] sm:$0xf0]  ;;  %v5768_v25 = vld [vmem:[%s12471_s1 + $0x80] sm:$0xf] }
 0x15e   : > { %v6681_v32 = vor.u32 %v8006_v30, %v6680_v26  ;;  %v7778_v26 = vld [vmem:[%s12471_s1 + $0xac] sm:$0xf0] }
 0x15f   : > { %v3461_v34 = vrot.slane %v10160_v31, 4  ;;  %v10165_v35 = vsel %vm3213_vm0, %v10160_v31, %v3463_v27  ;;  %3003 = vmatpush.bf16.msra.mxu1 %v6345_v28  ;;  %v5769_v30 = vor.u32 %v7778_v26, %v5768_v25 }
 0x160   : > { %3017 = vmatpush.bf16.msra.mxu2 %v6681_v32  ;;  %v10347_v32 = vunpack.c.0.s8 %v3218_v11  ;;  %v6778_v11 = vld [vmem:[%s12471_s1 + $0x890] sm:$0xf0] }
 0x161   : > { %v10169_v36 = vsel %vm3213_vm0, %v3461_v34, %v10156_v12  ;;  %v7814_v34 = vld [vmem:[%s12471_s1 + $0x1cc] sm:$0xf0] }
 0x162   : > { %v2869_v37 = vpop.f32.mrf.mxu2  ;;  %v10388_v63 = vperm.slane %v9905_v29, %v10347_v32  ;;  %v6104_v29 = vld [vmem:[%s12471_s1 + $0x320] sm:$0xf] }
 0x163   : > { %v2882_v39 = vpop.f32.mrf.mxu3  ;;  %v7064_v37 = vld [vmem:[%s12471_s1 + $0xaa0] sm:$0xf]  ;;  %3004 = vmatpush.bf16.msra.mxu1 %v6297_v49 }
 0x164   : > { %v5913_v39 = vor.u32 %v7814_v34, %v5912_v33  ;;  %v7065_v44 = vor.u32 %v8102_v43, %v7064_v37  ;;  %3018 = vmatpush.bf16.msra.mxu2 %v6633_v53  ;;  %v7874_v43 = vld [vmem:[%s12471_s1 + $0x3ac] sm:$0xf0] }
 0x166   : > { %2991 = vmatpush.bf16.msra.mxu0 %v5913_v39  ;;  %3030 = vmatpush.bf16.msra.mxu3 %v7065_v44  ;;  %v6152_v39 = vld [vmem:[%s12471_s1 + $0x380] sm:$0xf] }
 0x167   : > { %3005 = vmatpush.bf16.msra.mxu1 %v6249_v1  ;;  %v6488_v44 = vld [vmem:[%s12471_s1 + $0x620] sm:$0xf]  ;;  %v6153_v45 = vor.u32 %v7874_v43, %v6152_v39  ;;  %v8012_v39 = vld [vmem:[%s12471_s1 + $0x804] sm:$0xf]  ;;  %v10451_v43 = vperm.slane %v10150_v55, %v10347_v32 }
 0x168   : > { %v6489_v51 = vor.u32 %v7958_v46, %v6488_v44  ;;  %v10455_v44 = vperm.slane %v10146_v41, %v10347_v32  ;;  %v6730_v46 = vld [vmem:[%s12471_s1 + $0x830] sm:$0xf0] }
 0x169   : > { %v6733_v54 = vor.u32 %v8012_v39, %v6730_v46 }
 0x16a   : > { %2992 = vmatpush.bf16.msra.mxu0 %v5865_v57  ;;  %3031 = vmatpush.bf16.msra.mxu3 %v7017_v60  ;;  %v7844_v60 = vld [vmem:[%s12471_s1 + $0x2c4] sm:$0xf] }
 0x16b   : > { %3006 = vmatpush.bf16.msra.mxu1 %v6201_v17  ;;  %v6010_v17 = vld [vmem:[%s12471_s1 + $0x290] sm:$0xf0] }
 0x16e   : > { %3032 = vmatpush.bf16.msra.mxu3 %v6969_v13 }
 0x16f   : > { %3007 = vmatpush.bf16.msra.mxu1 %v6153_v45 }
 0x172   : > { %v10171_v40 = vpop.f32.mrf.mxu0 }
 0x173   : > { %v10173_v42 = vpop.f32.mrf.mxu1  ;;  %v2894_v2 = vadd.f32 %v10171_v40, %v620_v48  ;;  %v6826_v48 = vld [vmem:[%s12471_s1 + $0x8f0] sm:$0xf0] }
 0x174   : > { %v6829_v53 = vor.u32 %v8036_v47, %v6826_v48  ;;  %v7820_v47 = vld [vmem:[%s12471_s1 + $0x204] sm:$0xf]  ;;  %v5962_v48 = vld [vmem:[%s12471_s1 + $0x230] sm:$0xf0] }
 0x175   : > { %v2907_v18 = vadd.f32 %v10173_v42, %v2894_v2  ;;  %v8066_v42 = vld [vmem:[%s12471_s1 + $0x9ac] sm:$0xf0]  ;;  %v8132_v2 = vld [vmem:[%s12471_s1 + $0xbc4] sm:$0xf] }
 0x17a   : > { %v10193_v52 = vpop.f32.mrf.mxu2  ;;  %v2895_v61 = vpop.f32.mrf.mxu0 }
 0x17b   : > { %v10204_v58 = vpop.f32.mrf.mxu3  ;;  %v2908_v4 = vpop.f32.mrf.mxu1  ;;  %v7982_v61 = vld [vmem:[%s12471_s1 + $0x70c] sm:$0xf0]  ;;  %v2920_v49 = vadd.f32 %v10193_v52, %v2907_v18  ;;  %v3263_v18 = vrot.slane %v10388_v63, 4 }
 0x17c   : > { %v6585_v3 = vor.u32 %v7982_v61, %v6584_v0  ;;  %v5816_v4 = vld [vmem:[%s12471_s1 + $0xe0] sm:$0xf]  ;;  %v8054_v52 = vld [vmem:[%s12471_s1 + $0x94c] sm:$0xf0]  ;;  %v10392_v0 = vperm.slane %v9889_v23, %v10347_v32  ;;  %v6061_v61 = vor.u32 %v7844_v60, %v6058_v62 }
 0x17d   : > { %v5817_v40 = vor.u32 %v7790_v5, %v5816_v4  ;;  %v6873_v1 = vor.u32 %v8054_v52, %v6872_v56  ;;  %v7862_v23 = vld [vmem:[%s12471_s1 + $0x34c] sm:$0xf0]  ;;  %v7940_v5 = vld [vmem:[%s12471_s1 + $0x5c4] sm:$0xf]  ;;  %v10413_v7 = vadd.f32 %v10204_v58, %v2920_v49  ;;  %v5965_v56 = vor.u32 %v7820_v47, %v5962_v48  ;;  %v6346_v52 = vld [vmem:[%s12471_s1 + $0x530] sm:$0xf0] }
 0x17e   : > { %3019 = vmatpush.bf16.msra.mxu2 %v6585_v3  ;;  %v7210_v3 = vld [vmem:[%s12471_s1 + $0xbf0] sm:$0xf0]  ;;  %v6445_v10 = vor.u32 %v7940_v5, %v6442_v6  ;;  %v7832_v58 = vld [vmem:[%s12471_s1 + $0x264] sm:$0xf] }
 0x17f   : > { %2993 = vmatpush.bf16.msra.mxu0 %v5817_v40  ;;  %v7213_v4 = vor.u32 %v8132_v2, %v7210_v3  ;;  %v6105_v40 = vor.u32 %v7862_v23, %v6104_v29  ;;  %v3487_v25 = vrot.slane %v10413_v7, 4  ;;  %v7808_v2 = vld [vmem:[%s12471_s1 + $0x1a4] sm:$0xf]  ;;  %v3287_v3 = vrot.slane %v10451_v43, 4  ;;  %v7018_v47 = vld [vmem:[%s12471_s1 + $0xa70] sm:$0xf0] }
 0x180   : > { %v3299_v29 = vrot.slane %v10455_v44, 4  ;;  %v8450_v23 = vmov 1934713408   ;;  %v8316_v39 = vpack.i.bf16 %v10156_v12, %v10413_v7  ;;  %v7892_v48 = vld [vmem:[%s12471_s1 + $0x444] sm:$0xf] }
 0x181   : > { %3008 = vmatpush.bf16.msra.mxu1 %v6105_v40  ;;  %v3266_v5 = vunpack.c.l.s4 %v8450_v23  ;;  %v8096_v40 = vld [vmem:[%s12471_s1 + $0xaa4] sm:$0xf] }
 0x182   : > { %v2921_v50 = vpop.f32.mrf.mxu2 }
 0x183   : > { %v2934_v27 = vpop.f32.mrf.mxu3  ;;  %v7970_v50 = vld [vmem:[%s12471_s1 + $0x6ac] sm:$0xf0]  ;;  %2994 = vmatpush.bf16.msra.mxu0 %v5769_v30  ;;  %v7162_v30 = vld [vmem:[%s12471_s1 + $0xb90] sm:$0xf0] }
 0x184   : > { %v6537_v24 = vor.u32 %v7970_v50, %v6536_v16  ;;  %v6920_v27 = vld [vmem:[%s12471_s1 + $0x980] sm:$0xf]  ;;  %v6781_v16 = vor.u32 %v8024_v8, %v6778_v11  ;;  %v8120_v50 = vld [vmem:[%s12471_s1 + $0xb64] sm:$0xf]  ;;  %3009 = vmatmul.bf16.vlgmr.msra.gmra.mxu1 %v8828_v22  ;;  %v7066_v11 = vld [vmem:[%s12471_s1 + $0xad0] sm:$0xf0] }
 0x185   : > { %v6921_v37 = vor.u32 %v8066_v42, %v6920_v27  ;;  %3053 = vmatpush.bf16.msrb.mxu1 %v6445_v10 }
 0x186   : > { %3020 = vmatpush.bf16.msra.mxu2 %v6537_v24  ;;  %v3275_v24 = vrot.slane %v10392_v0, 4 }
 0x187   : > { %3033 = vmatpush.bf16.msra.mxu3 %v6921_v37  ;;  %2995 = vmatpush.bf16.msra.mxu0 %v5721_v59  ;;  %v6394_v37 = vld [vmem:[%s12471_s1 + $0x590] sm:$0xf0]  ;;  %v7916_v59 = vld [vmem:[%s12471_s1 + $0x504] sm:$0xf] }
 0x188   : > { %v6349_v62 = vor.u32 %v7916_v59, %v6346_v52 }
 0x18a   : > { %3021 = vmatpush.bf16.msra.mxu2 %v6489_v51  ;;  %2996 = vmatmul.bf16.vlgmr.msra.gmra.mxu0 %v8824_v20  ;;  %v8108_v51 = vld [vmem:[%s12471_s1 + $0xb04] sm:$0xf] }
 0x18b   : > { %3034 = vmatpush.bf16.msra.mxu3 %v6873_v1  ;;  %3040 = vmatpush.bf16.msrb.mxu0 %v6061_v61  ;;  %v8000_v1 = vld [vmem:[%s12471_s1 + $0x7a4] sm:$0xf]  ;;  %v6682_v61 = vld [vmem:[%s12471_s1 + $0x7d0] sm:$0xf0] }
 0x18c   : > { %v6685_v6 = vor.u32 %v8000_v1, %v6682_v61  ;;  %v5818_v1 = vld [vmem:[%s12471_s1 + $0x110] sm:$0xf0]  ;;  %v8072_v61 = vld [vmem:[%s12471_s1 + $0x9e4] sm:$0xf] }
 0x18d   : > { %3022 = vmatmul.bf16.vlgmr.msra.gmra.mxu2 %v8822_v19 }
 0x18e   : > { %3066 = vmatpush.bf16.msrb.mxu2 %v6829_v53  ;;  %3035 = vmatmul.bf16.vlgmr.msra.gmra.mxu3 %v8826_v21 }
 0x18f   : > { %3079 = vmatpush.bf16.msrb.mxu3 %v7213_v4 }
 0x192   : > { %v2945_v28 = vpop.f32.mrf.mxu0  ;;  %3067 = vmatpush.bf16.msrb.mxu2 %v6781_v16 }
 0x193   : > { %v2946_v33 = vadd.f32 %v2945_v28, %v621_v9  ;;  %v2958_v34 = vpop.f32.mrf.mxu1  ;;  %v10434_v27 = vpop.permute.xlu1 %8322  ;;  %v6013_v28 = vor.u32 %v7832_v58, %v6010_v17  ;;  %v7069_v17 = vor.u32 %v8096_v40, %v7066_v11 }
 0x194   : > { %v8325_v49 = vunpack.i.h.bf16 %v10434_v27  ;;  %v8324_v53 = vunpack.i.l.bf16 %v10434_v27 }
 0x195   : > { %v2959_v57 = vadd.f32 %v2958_v34, %v2946_v33  ;;  %v7165_v33 = vor.u32 %v8120_v50, %v7162_v30  ;;  %v7928_v34 = vld [vmem:[%s12471_s1 + $0x564] sm:$0xf]  ;;  %3041 = vmatpush.bf16.msrb.mxu0 %v6013_v28 }
 0x196   : > { %v6397_v45 = vor.u32 %v7928_v34, %v6394_v37  ;;  %3068 = vmatpush.bf16.msrb.mxu2 %v6733_v54  ;;  %v3249_v16 = vrot.slane %v8324_v53, 4  ;;  %v7988_v50 = vld [vmem:[%s12471_s1 + $0x744] sm:$0xf]  ;;  %v10536_v37 = vunpack.c.0.s8 %v3266_v5 }
 0x197   : > { %3080 = vmatpush.bf16.msrb.mxu3 %v7165_v33  ;;  %v5866_v33 = vld [vmem:[%s12471_s1 + $0x170] sm:$0xf0]  ;;  %v8084_v34 = vld [vmem:[%s12471_s1 + $0xa44] sm:$0xf] }
 0x198   : > { %3054 = vmatpush.bf16.msrb.mxu1 %v6397_v45  ;;  %v7976_v54 = vld [vmem:[%s12471_s1 + $0x6e4] sm:$0xf]  ;;  %v7021_v52 = vor.u32 %v8084_v34, %v7018_v47 }
 0x199   : > { %3042 = vmatpush.bf16.msrb.mxu0 %v5965_v56  ;;  %v6586_v56 = vld [vmem:[%s12471_s1 + $0x710] sm:$0xf0] }
 0x19a   : > { %v2971_v9 = vpop.f32.mrf.mxu2  ;;  %v2947_v15 = vpop.f32.mrf.mxu0  ;;  %3069 = vmatpush.bf16.msrb.mxu2 %v6685_v6  ;;  %v6589_v23 = vor.u32 %v7976_v54, %v6586_v56  ;;  %v6970_v6 = vld [vmem:[%s12471_s1 + $0xa10] sm:$0xf0] }
 0x19b   : > { %v2972_v13 = vadd.f32 %v2971_v9, %v2959_v57  ;;  %v2984_v14 = vpop.f32.mrf.mxu3  ;;  %v2960_v26 = vpop.f32.mrf.mxu1  ;;  %v7114_v57 = vld [vmem:[%s12471_s1 + $0xb30] sm:$0xf0]  ;;  %v3225_v15 = vrot.slane %v8325_v49, 4  ;;  %v6973_v11 = vor.u32 %v8072_v61, %v6970_v6 }
 0x19c   : > { %v5914_v9 = vld [vmem:[%s12471_s1 + $0x1d0] sm:$0xf0]  ;;  %v8328_v58 = vpop.permute.xlu1 %8327  ;;  %3055 = vmatpush.bf16.msrb.mxu1 %v6349_v62  ;;  %v7784_v62 = vld [vmem:[%s12471_s1 + $0xe4] sm:$0xf] }
 0x19d   : > { %v2985_v42 = vadd.f32 %v2984_v14, %v2972_v13  ;;  %v5917_v8 = vor.u32 %v7808_v2, %v5914_v9  ;;  %v7904_v13 = vld [vmem:[%s12471_s1 + $0x4a4] sm:$0xf]  ;;  %v6298_v14 = vld [vmem:[%s12471_s1 + $0x4d0] sm:$0xf0]  ;;  %v8330_v26 = vunpack.i.h.bf16 %v8328_v58  ;;  %v8329_v28 = vunpack.i.l.bf16 %v8328_v58 }
 0x19e   : > { %v6301_v30 = vor.u32 %v7904_v13, %v6298_v14  ;;  %v5821_v5 = vor.u32 %v7784_v62, %v5818_v1 }
 0x19f   : > { %v3485_v55 = vrot.slane %v2985_v42, 4  ;;  %v10468_v41 = vsel %vm3213_vm0, %v2985_v42, %v3487_v25  ;;  %v8311_v38 = vpack.i.bf16 %v10160_v31, %v2985_v42  ;;  %v7117_v31 = vor.u32 %v8108_v51, %v7114_v57  ;;  %v6634_v25 = vld [vmem:[%s12471_s1 + $0x770] sm:$0xf0]  ;;  %v7796_v42 = vld [vmem:[%s12471_s1 + $0x144] sm:$0xf]  ;;  %3043 = vmatpush.bf16.msrb.mxu0 %v5917_v8 }
 0x1a0   : > { %v6637_v45 = vor.u32 %v7988_v50, %v6634_v25  ;;  %v5869_v46 = vor.u32 %v7796_v42, %v5866_v33  ;;  %v3226_v51 = vsel %vm3213_vm0, %v3225_v15, %v8330_v26  ;;  %v3250_v12 = vsel %vm3213_vm0, %v3249_v16, %v8329_v28  ;;  %3056 = vmatpush.bf16.msrb.mxu1 %v6301_v30 }
 0x1a1   : > { %v10488_v60 = vsel %vm3213_vm0, %v3485_v55, %v10413_v7  ;;  %8312 = vrot.lane.b32.xlu0 %v8311_v38, %s8448_s12  ;;  %3081 = vmatpush.bf16.msrb.mxu3 %v7117_v31  ;;  %v6250_v55 = vld [vmem:[%s12471_s1 + $0x470] sm:$0xf0]  ;;  %v3227_v38 = vrot.slane %v8330_v26, 4  ;;  %v3251_v7 = vrot.slane %v8329_v28, 4  ;;  %v3232_v57 = vperm.slane %v3226_v51, %v10347_v32 }
 0x1a2   : > { %v2973_v4 = vpop.f32.mrf.mxu2  ;;  %v3256_v59 = vperm.slane %v3250_v12, %v10347_v32  ;;  %v6253_v31 = vor.u32 %v7892_v48, %v6250_v55  ;;  %3070 = vmatpush.bf16.msrb.mxu2 %v6637_v45 }
 0x1a3   : > { %v2986_v10 = vpop.f32.mrf.mxu3  ;;  %v3228_v2 = vsel %vm3213_vm0, %v8325_v49, %v3227_v38  ;;  %v3252_v4 = vsel %vm3213_vm0, %v8324_v53, %v3251_v7  ;;  %v3261_v40 = vrot.slane %v3232_v57, 4  ;;  %v3264_v49 = vsel %vm3213_vm0, %v3232_v57, %v3263_v18  ;;  %3044 = vmatpush.bf16.msrb.mxu0 %v5869_v46 }
 0x1a4   : > { %v3236_v9 = vperm.slane %v3228_v2, %v10347_v32  ;;  %v3260_v10 = vperm.slane %v3252_v4, %v10347_v32  ;;  %v3272_v27 = vperm.slane %v3264_v49, %v10536_v37  ;;  %v3285_v53 = vrot.slane %v3256_v59, 4  ;;  %3057 = vmatpush.bf16.msrb.mxu1 %v6253_v31  ;;  %v6538_v49 = vld [vmem:[%s12471_s1 + $0x6b0] sm:$0xf0] }
 0x1a5   : > { %3082 = vmatpush.bf16.msrb.mxu3 %v7069_v17  ;;  %v3288_v8 = vsel %vm3213_vm0, %v3256_v59, %v3287_v3  ;;  %v3262_v14 = vsel %vm3213_vm0, %v3261_v40, %v10388_v63 }
 0x1a6   : > { %v3273_v13 = vrot.slane %v3236_v9, 4  ;;  %v3276_v18 = vsel %vm3213_vm0, %v3236_v9, %v3275_v24  ;;  %v3296_v15 = vperm.slane %v3288_v8, %v10536_v37  ;;  %v3268_v16 = vperm.slane %v3262_v14, %v10536_v37  ;;  %3071 = vmatpush.bf16.msrb.mxu2 %v6589_v23  ;;  %v7880_v23 = vld [vmem:[%s12471_s1 + $0x3e4] sm:$0xf]  ;;  %v6922_v14 = vld [vmem:[%s12471_s1 + $0x9b0] sm:$0xf0] }
 0x1a7   : > { %v3284_v58 = vperm.slane %v3276_v18, %v10536_v37  ;;  %v3286_v3 = vsel %vm3213_vm0, %v3285_v53, %v10451_v43  ;;  %v3297_v17 = vrot.slane %v3260_v10, 4  ;;  %v3300_v24 = vsel %vm3213_vm0, %v3260_v10, %v3299_v29  ;;  %3045 = vmatpush.bf16.msrb.mxu0 %v5821_v5  ;;  %v6202_v5 = vld [vmem:[%s12471_s1 + $0x410] sm:$0xf0]  ;;  %v7964_v10 = vld [vmem:[%s12471_s1 + $0x684] sm:$0xf] }
 0x1a8   : > { %v3274_v50 = vsel %vm3213_vm0, %v3273_v13, %v10392_v0  ;;  %v3292_v63 = vperm.slane %v3286_v3, %v10536_v37  ;;  %v3313_v25 = vrot.slane %v3296_v15, 4  ;;  %v3308_v43 = vperm.slane %v3300_v24, %v10536_v37  ;;  %v5770_v53 = vld [vmem:[%s12471_s1 + $0xb0] sm:$0xf0]  ;;  %v8060_v8 = vld [vmem:[%s12471_s1 + $0x984] sm:$0xf] }
 0x1a9   : > { %8317 = vrot.lane.b32.xlu0 %v8316_v39, %s8448_s12  ;;  %3083 = vmatpush.bf16.msrb.mxu3 %v7021_v52  ;;  %v3280_v26 = vperm.slane %v3274_v50, %v10536_v37  ;;  %v3298_v28 = vsel %vm3213_vm0, %v3297_v17, %v10455_v44  ;;  %v3311_v30 = vrot.slane %v3268_v16, 4  ;;  %v3315_v34 = vrot.slane %v3272_v27, 4  ;;  %v7868_v18 = vld [vmem:[%s12471_s1 + $0x384] sm:$0xf]  ;;  %v6490_v50 = vld [vmem:[%s12471_s1 + $0x650] sm:$0xf0] }
 0x1aa   : > { %v3304_v0 = vperm.slane %v3298_v28, %v10536_v37  ;;  %v3309_v42 = vrot.slane %v3292_v63, 4  ;;  %v3314_v33 = vsel %vm3213_vm0, %v3313_v25, %v3272_v27  ;;  %v3321_v45 = vrot.slane %v3308_v43, 4  ;;  %v7772_v27 = vld [vmem:[%s12471_s1 + $0x84] sm:$0xf] }
 0x1ab   : > { %v3312_v29 = vsel %vm3213_vm0, %v3292_v63, %v3311_v30  ;;  %v3319_v39 = vrot.slane %v3280_v26, 4  ;;  %v3323_v46 = vrot.slane %v3284_v58, 4  ;;  %v3316_v44 = vsel %vm3213_vm0, %v3296_v15, %v3315_v34  ;;  %v6832_v63 = vld [vmem:[%s12471_s1 + $0x8c8] sm:$0xf]  ;;  %v7760_v30 = vld [vmem:[%s12471_s1 + $0x24] sm:$0xf] }
 0x1ac   : > { %v3310_v47 = vsel %vm3213_vm0, %v3309_v42, %v3268_v16  ;;  %v3317_v48 = vrot.slane %v3304_v0, 4  ;;  %v3325_v55 = vrot.slane %v3314_v33, 4  ;;  %v3322_v38 = vsel %vm3213_vm0, %v3321_v45, %v3284_v58  ;;  %v6154_v16 = vld [vmem:[%s12471_s1 + $0x3b0] sm:$0xf0]  ;;  %v7952_v58 = vld [vmem:[%s12471_s1 + $0x624] sm:$0xf] }
 0x1ad   : > { %3084 = vmatpush.bf16.msrb.mxu3 %v6973_v11  ;;  %v3320_v51 = vsel %vm3213_vm0, %v3304_v0, %v3319_v39  ;;  %v3324_v12 = vsel %vm3213_vm0, %v3308_v43, %v3323_v46  ;;  %v3327_v7 = vrot.slane %v3310_v47, 4  ;;  %v3337_v57 = vrot.slane %v3316_v44, 4  ;;  %v8043_v43 = vld [vmem:[%s12471_s1 + $0x8f4] sm:$0xf0]  ;;  %v5722_v0 = vld [vmem:[%s12471_s1 + $0x50] sm:$0xf0] }
 0x1ae   : > { %v3318_v54 = vsel %vm3213_vm0, %v3317_v48, %v3280_v26  ;;  %v3326_v56 = vsel %vm3213_vm0, %v3325_v55, %v3310_v47  ;;  %v3339_v59 = vrot.slane %v3312_v29, 4  ;;  %v3349_v31 = vrot.slane %v3322_v38, 4  ;;  %v8048_v39 = vld [vmem:[%s12471_s1 + $0x924] sm:$0xf]  ;;  %v6874_v45 = vld [vmem:[%s12471_s1 + $0x950] sm:$0xf0] }
 0x1af   : > { %v3328_v52 = vsel %vm3213_vm0, %v3314_v33, %v3327_v7  ;;  %v3351_v62 = vrot.slane %v3318_v54, 4  ;;  %v3338_v61 = vsel %vm3213_vm0, %v3337_v57, %v3312_v29  ;;  %v3361_v4 = vrot.slane %v3324_v12, 4  ;;  %v6064_v46 = vld [vmem:[%s12471_s1 + $0x2c8] sm:$0xf]  ;;  %v8139_v55 = vld [vmem:[%s12471_s1 + $0xbf4] sm:$0xf0] }
 0x1b0   : > { %v3336_v1 = vperm.slane %v3328_v52, %v10347_v32  ;;  %v3340_v2 = vsel %vm3213_vm0, %v3316_v44, %v3339_v59  ;;  %v3350_v9 = vsel %vm3213_vm0, %v3349_v31, %v3318_v54  ;;  %v3363_v13 = vrot.slane %v3320_v51, 4  ;;  %v7851_v44 = vld [vmem:[%s12471_s1 + $0x2f4] sm:$0xf0]  ;;  %v7216_v48 = vld [vmem:[%s12471_s1 + $0xbc8] sm:$0xf] }
 0x1b1   : > { %v3348_v6 = vperm.slane %v3340_v2, %v10347_v32  ;;  %v3352_v40 = vsel %vm3213_vm0, %v3322_v38, %v3351_v62  ;;  %v3362_v11 = vsel %vm3213_vm0, %v3361_v4, %v3320_v51  ;;  %v10666_v24 = vperm.slane %v3338_v61, %v10347_v32  ;;  %v7856_v7 = vld [vmem:[%s12471_s1 + $0x324] sm:$0xf]  ;;  %v6106_v54 = vld [vmem:[%s12471_s1 + $0x350] sm:$0xf0]  ;;  %v6448_v57 = vld [vmem:[%s12471_s1 + $0x5c8] sm:$0xf] }
 0x1b2   : > { %v3364_v3 = vsel %vm3213_vm0, %v3324_v12, %v3363_v13  ;;  %v3387_v17 = vrot.slane %v3336_v1, 4  ;;  %v10669_v25 = vperm.slane %v3362_v11, %v10347_v32  ;;  %v6205_v28 = vor.u32 %v7880_v23, %v6202_v5  ;;  %v7947_v31 = vld [vmem:[%s12471_s1 + $0x5f4] sm:$0xf0]  ;;  %v6784_v62 = vld [vmem:[%s12471_s1 + $0x868] sm:$0xf] }
 0x1b3   : > { %v3385_v15 = vrot.slane %v3348_v6, 4  ;;  %v6541_v33 = vor.u32 %v7964_v10, %v6538_v49  ;;  %v5773_v34 = vor.u32 %v7772_v27, %v5770_v53  ;;  %v6925_v29 = vor.u32 %v8060_v8, %v6922_v14  ;;  %v6016_v5 = vld [vmem:[%s12471_s1 + $0x268] sm:$0xf]  ;;  %v8127_v27 = vld [vmem:[%s12471_s1 + $0xb94] sm:$0xf0] }
 0x1b4   : > { %v10684_v42 = vsel %vm3213_vm0, %v3348_v6, %v3387_v17  ;;  %3058 = vmatpush.bf16.msrb.mxu1 %v6205_v28  ;;  %v6157_v47 = vor.u32 %v7868_v18, %v6154_v16  ;;  %v3332_v51 = vperm.slane %v3326_v56, %v10347_v32  ;;  %v6493_v38 = vor.u32 %v7952_v58, %v6490_v50  ;;  %v7839_v6 = vld [vmem:[%s12471_s1 + $0x294] sm:$0xf0]  ;;  %v7168_v49 = vld [vmem:[%s12471_s1 + $0xb68] sm:$0xf] }
 0x1b5   : > { %v10672_v26 = vsel %vm3213_vm0, %v3385_v15, %v3336_v1  ;;  %3072 = vmatpush.bf16.msrb.mxu2 %v6541_v33  ;;  %3046 = vmatpush.bf16.msrb.mxu0 %v5773_v34  ;;  %v5725_v12 = vor.u32 %v7760_v30, %v5722_v0  ;;  %v10715_v59 = vperm.slane %v3350_v9, %v10347_v32  ;;  %v8031_v1 = vld [vmem:[%s12471_s1 + $0x894] sm:$0xf0]  ;;  %v3373_v61 = vrot.slane %v10666_v24, 4  ;;  %v6400_v13 = vld [vmem:[%s12471_s1 + $0x568] sm:$0xf] }
 0x1b6   : > { %3085 = vmatpush.bf16.msrb.mxu3 %v6925_v29  ;;  %v6833_v56 = vor.u32 %v8043_v43, %v6832_v63  ;;  %v6877_v52 = vor.u32 %v8048_v39, %v6874_v45  ;;  %v3397_v2 = vrot.slane %v10669_v25, 4  ;;  %v6065_v4 = vor.u32 %v7851_v44, %v6064_v46  ;;  %v7935_v16 = vld [vmem:[%s12471_s1 + $0x594] sm:$0xf0]  ;;  %v5968_v17 = vld [vmem:[%s12471_s1 + $0x208] sm:$0xf] }
 0x1b7   : > { %v7217_v23 = vor.u32 %v8139_v55, %v7216_v48  ;;  %v3372_v9 = vperm.slane %v3364_v3, %v10347_v32  ;;  %v6109_v10 = vor.u32 %v7856_v7, %v6106_v54  ;;  %v3360_v53 = vperm.slane %v3352_v40, %v10347_v32  ;;  %v6736_v40 = vld [vmem:[%s12471_s1 + $0x808] sm:$0xf]  ;;  %v8019_v3 = vld [vmem:[%s12471_s1 + $0x834] sm:$0xf0] }
 0x1b8   : > { %3059 = vmatpush.bf16.msrb.mxu1 %v6157_v47  ;;  %v3375_v8 = vrot.slane %v3332_v51, 4  ;;  %v6449_v11 = vor.u32 %v7947_v31, %v6448_v57  ;;  %v3399_v14 = vrot.slane %v10715_v59, 4  ;;  %v6785_v18 = vor.u32 %v8031_v1, %v6784_v62  ;;  %v7827_v50 = vld [vmem:[%s12471_s1 + $0x234] sm:$0xf0]  ;;  %v7120_v30 = vld [vmem:[%s12471_s1 + $0xb08] sm:$0xf] }
 0x1b9   : > { %3073 = vmatpush.bf16.msrb.mxu2 %v6493_v38  ;;  %3047 = vmatpush.bf16.msrb.mxu0 %v5725_v12  ;;  %v6017_v15 = vor.u32 %v7839_v6, %v6016_v5  ;;  %v7169_v58 = vor.u32 %v8127_v27, %v7168_v49  ;;  %v10762_v63 = vsel %vm3213_vm0, %v3373_v61, %v3332_v51  ;;  %v3409_v43 = vrot.slane %v3372_v9, 4  ;;  %v8115_v0 = vld [vmem:[%s12471_s1 + $0xb34] sm:$0xf0]  ;;  %v6352_v45 = vld [vmem:[%s12471_s1 + $0x508] sm:$0xf] }
 0x1ba   : > { %3086 = vmatpush.bf16.msrb.mxu3 %v6877_v52  ;;  %v10766_v28 = vsel %vm3213_vm0, %v3397_v2, %v10715_v59  ;;  %v3411_v33 = vrot.slane %v3360_v53, 4  ;;  %v6401_v34 = vor.u32 %v7935_v16, %v6400_v13  ;;  %v10778_v29 = vsel %vm3213_vm0, %v10666_v24, %v3375_v8  ;;  %v7923_v46 = vld [vmem:[%s12471_s1 + $0x534] sm:$0xf0]  ;;  %v6688_v24 = vld [vmem:[%s12471_s1 + $0x7a8] sm:$0xf] }
 0x1bb   : > { %v6737_v39 = vor.u32 %v8019_v3, %v6736_v40  ;;  %v5969_v47 = vor.u32 %v7827_v50, %v5968_v17  ;;  %v7121_v44 = vor.u32 %v8115_v0, %v7120_v30  ;;  %v8007_v48 = vld [vmem:[%s12471_s1 + $0x7d4] sm:$0xf0]  ;;  %v5920_v55 = vld [vmem:[%s12471_s1 + $0x1a8] sm:$0xf]  ;;  %v10798_v51 = vsel %vm3213_vm0, %v10669_v25, %v3399_v14 }
 0x1bc   : > { %3060 = vmatpush.bf16.msrb.mxu1 %v6109_v10  ;;  %3074 = vmatmul.bf16.vlgmr.msrb.gmra.mxu2 %v8822_v19  ;;  %v7815_v38 = vld [vmem:[%s12471_s1 + $0x1d4] sm:$0xf0]  ;;  %v7072_v12 = vld [vmem:[%s12471_s1 + $0xaa8] sm:$0xf]  ;;  %v10811_v54 = vsel %vm3213_vm0, %v3409_v43, %v3360_v53  ;;  %v6353_v25 = vor.u32 %v7923_v46, %v6352_v45  ;;  %v10814_v57 = vsel %vm3213_vm0, %v3372_v9, %v3411_v33 }
 0x1bd   : > { %3118 = vmatpush.bf16.msra.mxu2 %v6833_v56  ;;  %3092 = vmatpush.bf16.msra.mxu0 %v6065_v4  ;;  %v8103_v7 = vld [vmem:[%s12471_s1 + $0xad4] sm:$0xf0]  ;;  %v6689_v59 = vor.u32 %v8007_v48, %v6688_v24  ;;  %v6304_v56 = vld [vmem:[%s12471_s1 + $0x4a8] sm:$0xf]  ;;  %v5921_v31 = vor.u32 %v7815_v38, %v5920_v55  ;;  %v8037_v55 = vld [vmem:[%s12471_s1 + $0x8cc] sm:$0xf] }
 0x1be   : > { %3131 = vmatpush.bf16.msra.mxu3 %v7217_v23  ;;  %3048 = vmatmul.bf16.vlgmr.msrb.gmra.mxu0 %v8824_v20  ;;  %v7911_v52 = vld [vmem:[%s12471_s1 + $0x4d4] sm:$0xf0]  ;;  %v7073_v62 = vor.u32 %v8103_v7, %v7072_v12  ;;  %v6640_v1 = vld [vmem:[%s12471_s1 + $0x748] sm:$0xf]  ;;  %v6834_v7 = vld [vmem:[%s12471_s1 + $0x8f8] sm:$0xf0] }
 0x1bf   : > { %3087 = vmatmul.bf16.vlgmr.msrb.gmra.mxu3 %v8826_v21  ;;  %3061 = vmatmul.bf16.vlgmr.msrb.gmra.mxu1 %v8828_v22  ;;  %v7995_v61 = vld [vmem:[%s12471_s1 + $0x774] sm:$0xf0]  ;;  %v5872_v2 = vld [vmem:[%s12471_s1 + $0x148] sm:$0xf]  ;;  %v6305_v6 = vor.u32 %v7911_v52, %v6304_v56 }
 0x1c0   : > { %3105 = vmatpush.bf16.msra.mxu1 %v6449_v11  ;;  %v7803_v4 = vld [vmem:[%s12471_s1 + $0x174] sm:$0xf0]  ;;  %v7024_v23 = vld [vmem:[%s12471_s1 + $0xa48] sm:$0xf]  ;;  %v6641_v9 = vor.u32 %v7995_v61, %v6640_v1  ;;  %v6066_v1 = vld [vmem:[%s12471_s1 + $0x2f8] sm:$0xf0] }
 0x1c1   : > { %3119 = vmatpush.bf16.msra.mxu2 %v6785_v18  ;;  %3093 = vmatpush.bf16.msra.mxu0 %v6017_v15  ;;  %v8091_v5 = vld [vmem:[%s12471_s1 + $0xa74] sm:$0xf0]  ;;  %v6256_v10 = vld [vmem:[%s12471_s1 + $0x448] sm:$0xf]  ;;  %v5873_v27 = vor.u32 %v7803_v4, %v5872_v2  ;;  %v8133_v61 = vld [vmem:[%s12471_s1 + $0xbcc] sm:$0xf] }
 0x1c2   : > { %3132 = vmatpush.bf16.msra.mxu3 %v7169_v58  ;;  %v7899_v49 = vld [vmem:[%s12471_s1 + $0x474] sm:$0xf0]  ;;  %v7025_v53 = vor.u32 %v8091_v5, %v7024_v23  ;;  %v6592_v8 = vld [vmem:[%s12471_s1 + $0x6e8] sm:$0xf]  ;;  %v7218_v2 = vld [vmem:[%s12471_s1 + $0xbf8] sm:$0xf0] }
 0x1c3   : > { %v7983_v11 = vld [vmem:[%s12471_s1 + $0x714] sm:$0xf0]  ;;  %v5824_v13 = vld [vmem:[%s12471_s1 + $0xe8] sm:$0xf]  ;;  %v6257_v16 = vor.u32 %v7899_v49, %v6256_v10  ;;  %v6837_v10 = vor.u32 %v8037_v55, %v6834_v7 }
 0x1c4   : > { %3106 = vmatpush.bf16.msra.mxu1 %v6401_v34  ;;  %v7791_v14 = vld [vmem:[%s12471_s1 + $0x114] sm:$0xf0]  ;;  %v6976_v18 = vld [vmem:[%s12471_s1 + $0x9e8] sm:$0xf]  ;;  %v6593_v40 = vor.u32 %v7983_v11, %v6592_v8  ;;  %v6786_v8 = vld [vmem:[%s12471_s1 + $0x898] sm:$0xf0]  ;;  %v3404_v11 = vperm.slane %v10766_v28, %v10536_v37  ;;  %v10965_v28 = vperm.slane %v10672_v26, %v10536_v37  ;;  %v3396_v26 = vperm.slane %v10684_v42, %v10536_v37 }
 0x1c5   : > { %3120 = vmatpush.bf16.msra.mxu2 %v6737_v39  ;;  %3094 = vmatpush.bf16.msra.mxu0 %v5969_v47  ;;  %v8079_v15 = vld [vmem:[%s12471_s1 + $0xa14] sm:$0xf0]  ;;  %v6208_v58 = vld [vmem:[%s12471_s1 + $0x3e8] sm:$0xf]  ;;  %v5825_v17 = vor.u32 %v7791_v14, %v5824_v13  ;;  %v7833_v14 = vld [vmem:[%s12471_s1 + $0x26c] sm:$0xf] }
 0x1c6   : > { %3133 = vmatpush.bf16.msra.mxu3 %v7121_v44  ;;  %v7887_v3 = vld [vmem:[%s12471_s1 + $0x414] sm:$0xf0]  ;;  %v6977_v50 = vor.u32 %v8079_v15, %v6976_v18  ;;  %v6544_v43 = vld [vmem:[%s12471_s1 + $0x688] sm:$0xf]  ;;  %v6018_v18 = vld [vmem:[%s12471_s1 + $0x298] sm:$0xf0] }
 0x1c7   : > { %v7971_v30 = vld [vmem:[%s12471_s1 + $0x6b4] sm:$0xf0]  ;;  %v5776_v0 = vld [vmem:[%s12471_s1 + $0x88] sm:$0xf]  ;;  %v6209_v45 = vor.u32 %v7887_v3, %v6208_v58  ;;  %v8121_v15 = vld [vmem:[%s12471_s1 + $0xb6c] sm:$0xf] }
 0x1c8   : > { %3107 = vmatpush.bf16.msra.mxu1 %v6353_v25  ;;  %v7779_v33 = vld [vmem:[%s12471_s1 + $0xb4] sm:$0xf0]  ;;  %v6928_v34 = vld [vmem:[%s12471_s1 + $0x988] sm:$0xf]  ;;  %v6545_v44 = vor.u32 %v7971_v30, %v6544_v43  ;;  %v7170_v3 = vld [vmem:[%s12471_s1 + $0xb98] sm:$0xf0]  ;;  %v3416_v30 = vperm.slane %v10811_v54, %v10536_v37 }
 0x1c9   : > { %3121 = vmatpush.bf16.msra.mxu2 %v6689_v59  ;;  %3095 = vmatpush.bf16.msra.mxu0 %v5921_v31  ;;  %v8067_v39 = vld [vmem:[%s12471_s1 + $0x9b4] sm:$0xf0]  ;;  %v6160_v46 = vld [vmem:[%s12471_s1 + $0x388] sm:$0xf]  ;;  %v5777_v38 = vor.u32 %v7779_v33, %v5776_v0  ;;  %v7845_v31 = vld [vmem:[%s12471_s1 + $0x2cc] sm:$0xf]  ;;  %v3420_v0 = vperm.slane %v10814_v57, %v10536_v37 }
 0x1ca   : > { %3134 = vmatpush.bf16.msra.mxu3 %v7073_v62  ;;  %v7875_v47 = vld [vmem:[%s12471_s1 + $0x3b4] sm:$0xf0]  ;;  %v6496_v24 = vld [vmem:[%s12471_s1 + $0x628] sm:$0xf]  ;;  %v6929_v12 = vor.u32 %v8067_v39, %v6928_v34  ;;  %v6069_v13 = vor.u32 %v7845_v31, %v6066_v1  ;;  %v6021_v34 = vor.u32 %v7833_v14, %v6018_v18  ;;  %v8013_v39 = vld [vmem:[%s12471_s1 + $0x80c] sm:$0xf] }
 0x1cb   : > { %v7959_v48 = vld [vmem:[%s12471_s1 + $0x654] sm:$0xf0]  ;;  %v5728_v25 = vld [vmem:[%s12471_s1 + $0x28] sm:$0xf]  ;;  %v6161_v62 = vor.u32 %v7875_v47, %v6160_v46  ;;  %v7821_v54 = vld [vmem:[%s12471_s1 + $0x20c] sm:$0xf] }
 0x1cc   : > { %3108 = vmatpush.bf16.msra.mxu1 %v6305_v6  ;;  %v7767_v59 = vld [vmem:[%s12471_s1 + $0x54] sm:$0xf0]  ;;  %v6880_v56 = vld [vmem:[%s12471_s1 + $0x928] sm:$0xf]  ;;  %v6497_v4 = vor.u32 %v7959_v48, %v6496_v24  ;;  %v7941_v6 = vld [vmem:[%s12471_s1 + $0x5cc] sm:$0xf] }
 0x1cd   : > { %3122 = vmatpush.bf16.msra.mxu2 %v6641_v9  ;;  %3096 = vmatpush.bf16.msra.mxu0 %v5873_v27  ;;  %v8055_v52 = vld [vmem:[%s12471_s1 + $0x954] sm:$0xf0]  ;;  %v6112_v23 = vld [vmem:[%s12471_s1 + $0x328] sm:$0xf]  ;;  %v3380_v9 = vperm.slane %v10762_v63, %v10536_v37  ;;  %v5729_v49 = vor.u32 %v7767_v59, %v5728_v25  ;;  %v6450_v27 = vld [vmem:[%s12471_s1 + $0x5f8] sm:$0xf0] }
 0x1ce   : > { %3135 = vmatpush.bf16.msra.mxu3 %v7025_v53  ;;  %v7863_v5 = vld [vmem:[%s12471_s1 + $0x354] sm:$0xf0]  ;;  %v8025_v53 = vld [vmem:[%s12471_s1 + $0x86c] sm:$0xf]  ;;  %v6881_v63 = vor.u32 %v8055_v52, %v6880_v56  ;;  %v6453_v43 = vor.u32 %v7941_v6, %v6450_v27  ;;  %v5970_v47 = vld [vmem:[%s12471_s1 + $0x238] sm:$0xf0] }
 0x1cf   : > { %v6113_v58 = vor.u32 %v7863_v5, %v6112_v23  ;;  %v6789_v33 = vor.u32 %v8025_v53, %v6786_v8  ;;  %v3423_v57 = vrot.slane %v3380_v9, 4  ;;  %v3431_v48 = vrot.slane %v10965_v28, 4  ;;  %v7917_v31 = vld [vmem:[%s12471_s1 + $0x50c] sm:$0xf]  ;;  %v7074_v8 = vld [vmem:[%s12471_s1 + $0xad8] sm:$0xf0] }
 0x1d0   : > { %3109 = vmatpush.bf16.msra.mxu1 %v6257_v16  ;;  %v3384_v16 = vperm.slane %v10778_v29, %v10536_v37  ;;  %v3408_v29 = vperm.slane %v10798_v51, %v10536_v37  ;;  %v7173_v51 = vor.u32 %v8121_v15, %v7170_v3  ;;  %v3435_v55 = vrot.slane %v3396_v26, 4  ;;  %v8097_v53 = vld [vmem:[%s12471_s1 + $0xaac] sm:$0xf]  ;;  %v6306_v18 = vld [vmem:[%s12471_s1 + $0x4d8] sm:$0xf0] }
 0x1d1   : > { %3123 = vmatpush.bf16.msra.mxu2 %v6593_v40  ;;  %3097 = vmatpush.bf16.msra.mxu0 %v5825_v17  ;;  %v7221_v40 = vor.u32 %v8133_v61, %v7218_v2  ;;  %v7929_v17 = vld [vmem:[%s12471_s1 + $0x56c] sm:$0xf]  ;;  %v11005_v7 = vsel %vm3213_vm0, %v3404_v11, %v3423_v57  ;;  %v3429_v59 = vrot.slane %v3416_v30, 4  ;;  %v3433_v56 = vrot.slane %v3420_v0, 4  ;;  %v5874_v3 = vld [vmem:[%s12471_s1 + $0x178] sm:$0xf0] }
 0x1d2   : > { %3136 = vmatpush.bf16.msra.mxu3 %v6977_v50  ;;  %v6402_v50 = vld [vmem:[%s12471_s1 + $0x598] sm:$0xf0]  ;;  %v3427_v46 = vrot.slane %v3384_v16, 4  ;;  %v3425_v24 = vrot.slane %v3408_v29, 4  ;;  %v5973_v61 = vor.u32 %v7821_v54, %v5970_v47  ;;  %v8001_v2 = vld [vmem:[%s12471_s1 + $0x7ac] sm:$0xf]  ;;  %v11031_v5 = vsel %vm3213_vm0, %v3416_v30, %v3431_v48 }
 0x1d3   : > { %v6405_v42 = vor.u32 %v7929_v17, %v6402_v50  ;;  %v7905_v14 = vld [vmem:[%s12471_s1 + $0x4ac] sm:$0xf]  ;;  %v6258_v30 = vld [vmem:[%s12471_s1 + $0x478] sm:$0xf0] }
 0x1d4   : > { %3110 = vmatpush.bf16.msra.mxu1 %v6209_v45  ;;  %v6738_v45 = vld [vmem:[%s12471_s1 + $0x838] sm:$0xf0]  ;;  %v11008_v25 = vsel %vm3213_vm0, %v3408_v29, %v3427_v46  ;;  %v11028_v23 = vsel %vm3213_vm0, %v3425_v24, %v3384_v16  ;;  %v7989_v16 = vld [vmem:[%s12471_s1 + $0x74c] sm:$0xf]  ;;  %v6309_v17 = vor.u32 %v7905_v14, %v6306_v18 }
 0x1d5   : > { %3124 = vmatpush.bf16.msra.mxu2 %v6545_v44  ;;  %3098 = vmatpush.bf16.msra.mxu0 %v5777_v38  ;;  %v3421_v44 = vrot.slane %v3404_v11, 4  ;;  %v8109_v38 = vld [vmem:[%s12471_s1 + $0xb0c] sm:$0xf]  ;;  %v6741_v52 = vor.u32 %v8013_v39, %v6738_v45  ;;  %v11051_v11 = vsel %vm3213_vm0, %v3429_v59, %v10965_v28  ;;  %v6642_v28 = vld [vmem:[%s12471_s1 + $0x778] sm:$0xf0] }
 0x1d6   : > { %3137 = vmatpush.bf16.msra.mxu3 %v6929_v12  ;;  %v7122_v12 = vld [vmem:[%s12471_s1 + $0xb38] sm:$0xf0]  ;;  %v8085_v50 = vld [vmem:[%s12471_s1 + $0xa4c] sm:$0xf] }
 0x1d7   : > { %v11018_v1 = vsel %vm3213_vm0, %v3421_v44, %v3380_v9  ;;  %v7125_v6 = vor.u32 %v8109_v38, %v7122_v12  ;;  %v7809_v9 = vld [vmem:[%s12471_s1 + $0x1ac] sm:$0xf]  ;;  %v7026_v29 = vld [vmem:[%s12471_s1 + $0xa78] sm:$0xf0] }
 0x1d8   : > { %3111 = vmatpush.bf16.msra.mxu1 %v6161_v62  ;;  %v6354_v62 = vld [vmem:[%s12471_s1 + $0x538] sm:$0xf0]  ;;  %v7029_v39 = vor.u32 %v8085_v50, %v7026_v29  ;;  %v8073_v54 = vld [vmem:[%s12471_s1 + $0x9ec] sm:$0xf]  ;;  %v3468_v29 = vperm.slane %v10169_v36, %v10347_v32 }
 0x1d9   : > { %3125 = vmatpush.bf16.msra.mxu2 %v6497_v4  ;;  %3099 = vmatpush.bf16.msra.mxu0 %v5729_v49  ;;  %v6690_v4 = vld [vmem:[%s12471_s1 + $0x7d8] sm:$0xf0]  ;;  %v11041_v49 = vsel %vm3213_vm0, %v3420_v0, %v3435_v55  ;;  %v6357_v27 = vor.u32 %v7917_v31, %v6354_v62  ;;  %v7881_v47 = vld [vmem:[%s12471_s1 + $0x3ec] sm:$0xf] }
 0x1da   : > { %3138 = vmatpush.bf16.msra.mxu3 %v6881_v63  ;;  %v11054_v63 = vsel %vm3213_vm0, %v3433_v56, %v3396_v26  ;;  %v6645_v26 = vor.u32 %v7989_v16, %v6642_v28  ;;  %v6978_v57 = vld [vmem:[%s12471_s1 + $0xa18] sm:$0xf0]  ;;  %v7965_v48 = vld [vmem:[%s12471_s1 + $0x68c] sm:$0xf] }
 0x1db   : > { %v6210_v44 = vld [vmem:[%s12471_s1 + $0x418] sm:$0xf0]  ;;  %v6981_v38 = vor.u32 %v8073_v54, %v6978_v57  ;;  %v7773_v12 = vld [vmem:[%s12471_s1 + $0x8c] sm:$0xf] }
 0x1dc   : > { %3112 = vmatpush.bf16.msra.mxu1 %v6113_v58  ;;  %3126 = vmatmul.bf16.vlgmr.msra.gmra.mxu2 %v8822_v19  ;;  %v7797_v58 = vld [vmem:[%s12471_s1 + $0x14c] sm:$0xf]  ;;  %v6546_v55 = vld [vmem:[%s12471_s1 + $0x6b8] sm:$0xf0]  ;;  %v6213_v56 = vor.u32 %v7881_v47, %v6210_v44 }
 0x1dd   : > { %3170 = vmatpush.bf16.msrb.mxu2 %v6837_v10  ;;  %3144 = vmatpush.bf16.msrb.mxu0 %v6069_v13  ;;  %v5922_v10 = vld [vmem:[%s12471_s1 + $0x1d8] sm:$0xf0]  ;;  %v6693_v13 = vor.u32 %v8001_v2, %v6690_v4  ;;  %v5877_v0 = vor.u32 %v7797_v58, %v5874_v3  ;;  %v6549_v62 = vor.u32 %v7965_v48, %v6546_v55 }
 0x1de   : > { %3183 = vmatpush.bf16.msrb.mxu3 %v7221_v40  ;;  %3100 = vmatmul.bf16.vlgmr.msra.gmra.mxu0 %v8824_v20  ;;  %v5925_v15 = vor.u32 %v7809_v9, %v5922_v10  ;;  %v7077_v40 = vor.u32 %v8097_v53, %v7074_v8  ;;  %v5778_v59 = vld [vmem:[%s12471_s1 + $0xb8] sm:$0xf0] }
 0x1df   : > { %3139 = vmatmul.bf16.vlgmr.msra.gmra.mxu3 %v8826_v21  ;;  %3113 = vmatmul.bf16.vlgmr.msra.gmra.mxu1 %v8828_v22  ;;  %v6930_v31 = vld [vmem:[%s12471_s1 + $0x9b8] sm:$0xf0]  ;;  %v5781_v4 = vor.u32 %v7773_v12, %v5778_v59 }
 0x1e0   : > { %3157 = vmatpush.bf16.msrb.mxu1 %v6453_v43  ;;  %v7893_v43 = vld [vmem:[%s12471_s1 + $0x44c] sm:$0xf]  ;;  %v6162_v2 = vld [vmem:[%s12471_s1 + $0x3b8] sm:$0xf0] }
 0x1e1   : > { %3171 = vmatpush.bf16.msrb.mxu2 %v6789_v33  ;;  %3145 = vmatpush.bf16.msrb.mxu0 %v6021_v34  ;;  %v7977_v33 = vld [vmem:[%s12471_s1 + $0x6ec] sm:$0xf]  ;;  %v6594_v34 = vld [vmem:[%s12471_s1 + $0x718] sm:$0xf0]  ;;  %v6261_v45 = vor.u32 %v7893_v43, %v6258_v30  ;;  %v3492_v43 = vperm.slane %v10488_v60, %v10347_v32 }
 0x1e2   : > { %3184 = vmatpush.bf16.msrb.mxu3 %v7173_v51  ;;  %v7785_v51 = vld [vmem:[%s12471_s1 + $0xec] sm:$0xf]  ;;  %v6597_v46 = vor.u32 %v7977_v33, %v6594_v34  ;;  %v6498_v9 = vld [vmem:[%s12471_s1 + $0x658] sm:$0xf0] }
 0x1e3   : > { %v5730_v53 = vld [vmem:[%s12471_s1 + $0x58] sm:$0xf0] }
 0x1e4   : > { %3158 = vmatpush.bf16.msrb.mxu1 %v6405_v42  ;;  %v5826_v42 = vld [vmem:[%s12471_s1 + $0x118] sm:$0xf0] }
 0x1e5   : > { %3172 = vmatpush.bf16.msrb.mxu2 %v6741_v52  ;;  %3146 = vmatpush.bf16.msrb.mxu0 %v5973_v61  ;;  %v5829_v24 = vor.u32 %v7785_v51, %v5826_v42  ;;  %v8061_v52 = vld [vmem:[%s12471_s1 + $0x98c] sm:$0xf]  ;;  %v6882_v14 = vld [vmem:[%s12471_s1 + $0x958] sm:$0xf0]  ;;  %v3511_v51 = vrot.slane %v3468_v29, 4 }
 0x1e6   : > { %3185 = vmatpush.bf16.msrb.mxu3 %v7125_v6  ;;  %v7869_v61 = vld [vmem:[%s12471_s1 + $0x38c] sm:$0xf]  ;;  %v6933_v10 = vor.u32 %v8061_v52, %v6930_v31  ;;  %v6114_v16 = vld [vmem:[%s12471_s1 + $0x358] sm:$0xf0] }
 0x1e7   : > { %v7953_v6 = vld [vmem:[%s12471_s1 + $0x62c] sm:$0xf]  ;;  %v6165_v8 = vor.u32 %v7869_v61, %v6162_v2 }
 0x1e8   : > { %3159 = vmatpush.bf16.msrb.mxu1 %v6357_v27  ;;  %v7761_v27 = vld [vmem:[%s12471_s1 + $0x2c] sm:$0xf]  ;;  %v6501_v18 = vor.u32 %v7953_v6, %v6498_v9 }
 0x1e9   : > { %3173 = vmatpush.bf16.msrb.mxu2 %v6693_v13  ;;  %3147 = vmatpush.bf16.msrb.mxu0 %v5925_v15  ;;  %v8049_v13 = vld [vmem:[%s12471_s1 + $0x92c] sm:$0xf]  ;;  %v5733_v28 = vor.u32 %v7761_v27, %v5730_v53 }
 0x1ea   : > { %3186 = vmatpush.bf16.msrb.mxu3 %v7077_v40  ;;  %v7857_v15 = vld [vmem:[%s12471_s1 + $0x32c] sm:$0xf]  ;;  %v6885_v40 = vor.u32 %v8049_v13, %v6882_v14 }
 0x1eb   : > { %v6117_v58 = vor.u32 %v7857_v15, %v6114_v16 }
 0x1ec   : > { %3160 = vmatpush.bf16.msrb.mxu1 %v6309_v17 }
 0x1ed   : > { %3174 = vmatpush.bf16.msrb.mxu2 %v6645_v26  ;;  %3148 = vmatpush.bf16.msrb.mxu0 %v5877_v0  ;;  %v3472_v26 = vperm.slane %v10165_v35, %v10347_v32 }
 0x1ee   : > { %3187 = vmatpush.bf16.msrb.mxu3 %v7029_v39 }
 0x1ef   : > { %v3523_v60 = vrot.slane %v3472_v26, 4 }
 0x1f0   : > { %3161 = vmatpush.bf16.msrb.mxu1 %v6261_v45  ;;  %v3535_v45 = vrot.slane %v3492_v43, 4 }
 0x1f1   : > { %3175 = vmatpush.bf16.msrb.mxu2 %v6597_v46  ;;  %3149 = vmatpush.bf16.msrb.mxu0 %v5829_v24 }
 0x1f2   : > { %3188 = vmatpush.bf16.msrb.mxu3 %v6981_v38 }
 0x1f4   : > { %3162 = vmatpush.bf16.msrb.mxu1 %v6213_v56 }
 0x1f5   : > { %3176 = vmatpush.bf16.msrb.mxu2 %v6549_v62  ;;  %3150 = vmatpush.bf16.msrb.mxu0 %v5781_v4 }
 0x1f6   : > { %3189 = vmatpush.bf16.msrb.mxu3 %v6933_v10 }
 0x1f8   : > { %3163 = vmatpush.bf16.msrb.mxu1 %v6165_v8 }
 0x1f9   : > { %3177 = vmatpush.bf16.msrb.mxu2 %v6501_v18  ;;  %3151 = vmatpush.bf16.msrb.mxu0 %v5733_v28 }
 0x1fa   : > { %3190 = vmatpush.bf16.msrb.mxu3 %v6885_v40 }
 0x1fc   : > { %3178 = vmatmul.bf16.vlgmr.msrb.gmra.mxu2 %v8822_v19  ;;  %3164 = vmatpush.bf16.msrb.mxu1 %v6117_v58 }
 0x1fd   : > { %3152 = vmatmul.bf16.vlgmr.msrb.gmra.mxu0 %v8824_v20  ;;  %3191 = vmatmul.bf16.vlgmr.msrb.gmra.mxu3 %v8826_v21  ;;  %v3496_v21 = vperm.slane %v10468_v41, %v10347_v32 }
 0x1ff   : > { %3165 = vmatmul.bf16.vlgmr.msrb.gmra.mxu1 %v8828_v22  ;;  %v3547_v24 = vrot.slane %v3496_v21, 4 }
 0x213   : > { %v8313_v3 = vpop.permute.xlu0 %8312 }
 0x214   : > { %v8315_v17 = vunpack.i.h.bf16 %v8313_v3  ;;  %v8314_v50 = vunpack.i.l.bf16 %v8313_v3 }
 0x216   : > { %v3473_v30 = vrot.slane %v8315_v17, 4  ;;  %v3497_v0 = vrot.slane %v8314_v50, 4 }
 0x21b   : > { %v8318_v19 = vpop.permute.xlu0 %8317 }
 0x21c   : > { %v8320_v20 = vunpack.i.h.bf16 %v8318_v19  ;;  %v8319_v33 = vunpack.i.l.bf16 %v8318_v19 }
 0x21e   : > { %v3474_v22 = vsel %vm3213_vm0, %v3473_v30, %v8320_v20  ;;  %v3475_v34 = vrot.slane %v8320_v20, 4  ;;  %v3498_v39 = vsel %vm3213_vm0, %v3497_v0, %v8319_v33  ;;  %v3499_v36 = vrot.slane %v8319_v33, 4 }
 0x21f   : > { %v3480_v35 = vperm.slane %v3474_v22, %v10347_v32  ;;  %v3504_v42 = vperm.slane %v3498_v39, %v10347_v32 }
 0x220   : > { %v3476_v54 = vsel %vm3213_vm0, %v8315_v17, %v3475_v34  ;;  %v3500_v57 = vsel %vm3213_vm0, %v8314_v50, %v3499_v36 }
 0x221   : > { %v3484_v46 = vperm.slane %v3476_v54, %v10347_v32  ;;  %v3509_v41 = vrot.slane %v3480_v35, 4  ;;  %v3508_v47 = vperm.slane %v3500_v57, %v10347_v32  ;;  %v3512_v44 = vsel %vm3213_vm0, %v3480_v35, %v3511_v51 }
 0x222   : > { %v3520_v48 = vperm.slane %v3512_v44, %v10536_v37  ;;  %v3533_v55 = vrot.slane %v3504_v42, 4  ;;  %v3536_v38 = vsel %vm3213_vm0, %v3504_v42, %v3535_v45 }
 0x223   : > { %v3521_v12 = vrot.slane %v3484_v46, 4  ;;  %v3510_v59 = vsel %vm3213_vm0, %v3509_v41, %v3468_v29  ;;  %v3524_v56 = vsel %vm3213_vm0, %v3484_v46, %v3523_v60  ;;  %v3544_v52 = vperm.slane %v3536_v38, %v10536_v37 }
 0x224   : > { %v3516_v31 = vperm.slane %v3510_v59, %v10536_v37  ;;  %v3532_v62 = vperm.slane %v3524_v56, %v10536_v37  ;;  %v3534_v61 = vsel %vm3213_vm0, %v3533_v55, %v3492_v43  ;;  %v3545_v2 = vrot.slane %v3508_v47, 4 }
 0x225   : > { %v3522_v4 = vsel %vm3213_vm0, %v3521_v12, %v3472_v26  ;;  %v3540_v6 = vperm.slane %v3534_v61, %v10536_v37  ;;  %v3548_v9 = vsel %vm3213_vm0, %v3508_v47, %v3547_v24  ;;  %v3561_v10 = vrot.slane %v3544_v52, 4 }
 0x226   : > { %v3528_v27 = vperm.slane %v3522_v4, %v10536_v37  ;;  %v3546_v53 = vsel %vm3213_vm0, %v3545_v2, %v3496_v21  ;;  %v3556_v8 = vperm.slane %v3548_v9, %v10536_v37  ;;  %v3559_v13 = vrot.slane %v3516_v31, 4 }
 0x227   : > { %v3552_v14 = vperm.slane %v3546_v53, %v10536_v37  ;;  %v3557_v18 = vrot.slane %v3540_v6, 4  ;;  %v3562_v15 = vsel %vm3213_vm0, %v3561_v10, %v3520_v48  ;;  %v3563_v16 = vrot.slane %v3520_v48, 4 }
 0x228   : > { %v3560_v28 = vsel %vm3213_vm0, %v3540_v6, %v3559_v13  ;;  %v3567_v40 = vrot.slane %v3528_v27, 4  ;;  %v3569_v58 = vrot.slane %v3556_v8, 4  ;;  %v3571_v3 = vrot.slane %v3532_v62, 4  ;;  %v3010_v13 = vpop.f32.mrf.mxu1 }
 0x229   : > { %v3558_v17 = vsel %vm3213_vm0, %v3557_v18, %v3516_v31  ;;  %v3564_v50 = vsel %vm3213_vm0, %v3544_v52, %v3563_v16  ;;  %v3565_v29 = vrot.slane %v3552_v14, 4  ;;  %v3573_v26 = vrot.slane %v3562_v15, 4 }
 0x22a   : > { %v3570_v43 = vsel %vm3213_vm0, %v3569_v58, %v3532_v62  ;;  %v3572_v19 = vsel %vm3213_vm0, %v3556_v8, %v3571_v3  ;;  %v3575_v30 = vrot.slane %v3558_v17, 4  ;;  %v3585_v0 = vrot.slane %v3564_v50, 4  ;;  %v2997_v8 = vpop.f32.mrf.mxu0 }
 0x22b   : > { %v3587_v20 = vrot.slane %v3560_v28, 4  ;;  %v3597_v33 = vrot.slane %v3570_v43, 4  ;;  %v3609_v21 = vrot.slane %v3572_v19, 4  ;;  %v3566_v22 = vsel %vm3213_vm0, %v3565_v29, %v3528_v27 }
 0x22c   : > { %v3568_v34 = vsel %vm3213_vm0, %v3552_v14, %v3567_v40  ;;  %v3574_v39 = vsel %vm3213_vm0, %v3573_v26, %v3558_v17  ;;  %v3586_v36 = vsel %vm3213_vm0, %v3585_v0, %v3560_v28  ;;  %v3599_v51 = vrot.slane %v3566_v22, 4  ;;  %v11226_v28 = vpop.f32.mrf.mxu2  ;;  %v11228_v40 = vpop.f32.mrf.mxu3 }
 0x22d   : > { %v3588_v35 = vsel %vm3213_vm0, %v3564_v50, %v3587_v20  ;;  %v3580_v42 = vperm.slane %v3574_v39, %v10347_v32  ;;  %v3592_v60 = vperm.slane %v3586_v36, %v10347_v32  ;;  %v3598_v45 = vsel %vm3213_vm0, %v3597_v33, %v3566_v22 }
 0x22e   : > { %v3604_v54 = vperm.slane %v3598_v45, %v10347_v32  ;;  %v3610_v57 = vsel %vm3213_vm0, %v3609_v21, %v3568_v34  ;;  %v3611_v46 = vrot.slane %v3568_v34, 4  ;;  %v3576_v41 = vsel %vm3213_vm0, %v3562_v15, %v3575_v30 }
 0x22f   : > { %v3616_v47 = vperm.slane %v3610_v57, %v10347_v32  ;;  %v3621_v44 = vrot.slane %v3592_v60, 4  ;;  %v3623_v24 = vrot.slane %v3580_v42, 4  ;;  %v3584_v48 = vperm.slane %v3576_v41, %v10347_v32 }
 0x230   : > { %v3647_v55 = vrot.slane %v3604_v54, 4  ;;  %v3596_v38 = vperm.slane %v3588_v35, %v10347_v32  ;;  %v3600_v12 = vsel %vm3213_vm0, %v3570_v43, %v3599_v51  ;;  %v3612_v59 = vsel %vm3213_vm0, %v3572_v19, %v3611_v46 }
 0x231   : > { %v3622_v56 = vsel %vm3213_vm0, %v3621_v44, %v3580_v42  ;;  %v3645_v52 = vrot.slane %v3616_v47, 4  ;;  %v3624_v31 = vsel %vm3213_vm0, %v3592_v60, %v3623_v24  ;;  %v3608_v62 = vperm.slane %v3600_v12, %v10347_v32  ;;  %v11250_v24 = vld [vmem:[%s12472_s2 + $0x8] sm:$0xf] }
 0x232   : > { %v3628_v61 = vperm.slane %v3622_v56, %v10536_v37  ;;  %v3632_v2 = vperm.slane %v3624_v31, %v10536_v37  ;;  %v3648_v4 = vsel %vm3213_vm0, %v3616_v47, %v3647_v55  ;;  %v3620_v6 = vperm.slane %v3612_v59, %v10347_v32  ;;  %v3012_v55 = vpop.f32.mrf.mxu1 }
 0x233   : > { %v3646_v9 = vsel %vm3213_vm0, %v3645_v52, %v3604_v54  ;;  %v3656_v10 = vperm.slane %v3648_v4, %v10536_v37  ;;  %v3633_v27 = vrot.slane %v3596_v38, 4  ;;  %v3635_v53 = vrot.slane %v3584_v48, 4 }
 0x234   : > { %v3652_v14 = vperm.slane %v3646_v9, %v10536_v37  ;;  %v3671_v18 = vrot.slane %v3628_v61, 4  ;;  %v3675_v15 = vrot.slane %v3632_v2, 4  ;;  %v3657_v16 = vrot.slane %v3620_v6, 4  ;;  %v3025_v59 = vpop.f32.mrf.mxu2  ;;  %v3038_v56 = vpop.f32.mrf.mxu3 }
 0x235   : > { %v3673_v58 = vrot.slane %v3656_v10, 4  ;;  %v3634_v3 = vsel %vm3213_vm0, %v3633_v27, %v3584_v48  ;;  %v3636_v17 = vsel %vm3213_vm0, %v3596_v38, %v3635_v53  ;;  %v3659_v50 = vrot.slane %v3608_v62, 4  ;;  %v2999_v48 = vpop.f32.mrf.mxu0 }
 0x236   : > { %v3672_v29 = vsel %vm3213_vm0, %v3652_v14, %v3671_v18  ;;  %v3676_v26 = vsel %vm3213_vm0, %v3656_v10, %v3675_v15  ;;  %v3669_v43 = vrot.slane %v3652_v14, 4  ;;  %v3640_v19 = vperm.slane %v3634_v3, %v10536_v37 }
 0x237   : > { %v3686_v30 = vpack.c.bf16 %v3672_v29, %v3672_v29  ;;  %v3688_v0 = vpack.c.bf16 %v3676_v26, %v3676_v26  ;;  %v3674_v20 = vsel %vm3213_vm0, %v3673_v58, %v3632_v2  ;;  %v3658_v33 = vsel %vm3213_vm0, %v3657_v16, %v3608_v62 }
 0x238   : > { %v3670_v21 = vsel %vm3213_vm0, %v3669_v43, %v3628_v61  ;;  %v3687_v22 = vpack.c.bf16 %v3674_v20, %v3674_v20  ;;  %v3664_v34 = vperm.slane %v3658_v33, %v10536_v37  ;;  %v3679_v39 = vrot.slane %v3640_v19, 4 }
 0x239   : > { %v3965_v36 = vsel %vm3941_vm1, %v3686_v30, 0  ;;  %v4003_v51 = vsel %vm3941_vm1, %v3688_v0, 0  ;;  %v3685_v35 = vpack.c.bf16 %v3670_v21, %v3670_v21  ;;  %v3644_v42 = vperm.slane %v3636_v17, %v10536_v37 }
 0x23a   : > { %3974 = vmatpush.bf16.xpose.msra.mxu1 %v3965_v36  ;;  %4012 = vmatpush.bf16.xpose.msra.mxu3 %v4003_v51  ;;  %v3984_v60 = vsel %vm3941_vm1, %v3687_v22, 0  ;;  %v3680_v45 = vsel %vm3213_vm0, %v3664_v34, %v3679_v39  ;;  %v3660_v54 = vsel %vm3213_vm0, %v3620_v6, %v3659_v50  ;;  %v3677_v57 = vrot.slane %v3664_v34, 4 }
 0x23b   : > { %v3946_v46 = vsel %vm3941_vm1, %v3685_v35, 0  ;;  %3993 = vmatpush.bf16.xpose.msra.mxu2 %v3984_v60  ;;  %v3690_v41 = vpack.c.bf16 %v3680_v45, %v3680_v45  ;;  %v3668_v47 = vperm.slane %v3660_v54, %v10536_v37  ;;  %v3683_v44 = vrot.slane %v3644_v42, 4 }
 0x23c   : > { %3955 = vmatpush.bf16.xpose.msra.mxu0 %v3946_v46  ;;  %v3678_v38 = vsel %vm3213_vm0, %v3677_v57, %v3640_v19  ;;  %v622_v12 = vperm.slane %v11250_v24, 0  ;;  %v3438_v4 = vpack.c.bf16 %v11005_v7, %v11005_v7  ;;  %v3440_v27 = vpack.c.bf16 %v11008_v25, %v11008_v25  ;;  %v3062_v3 = vpop.f32.mrf.mxu1 }
 0x23d   : > { %v4041_v52 = vsel %vm3941_vm1, %v3690_v41, 0  ;;  %v3684_v31 = vsel %vm3213_vm0, %v3668_v47, %v3683_v44  ;;  %v3689_v62 = vpack.c.bf16 %v3678_v38, %v3678_v38  ;;  %v3681_v61 = vrot.slane %v3668_v47, 4 }
 0x23e   : > { %v3692_v2 = vpack.c.bf16 %v3684_v31, %v3684_v31  ;;  %v2998_v6 = vadd.f32 %v2997_v8, %v622_v12  ;;  %v3439_v53 = vpack.c.bf16 %v11028_v23, %v11028_v23  ;;  %v623_v16 = vperm.slane %v11250_v24, 1  ;;  %v3049_v23 = vpop.f32.mrf.mxu0 }
 0x23f   : > { %v4022_v9 = vsel %vm3941_vm1, %v3689_v62, 0  ;;  %v3682_v10 = vsel %vm3213_vm0, %v3681_v61, %v3644_v42  ;;  %v3437_v7 = vpack.c.bf16 %v11018_v1, %v11018_v1  ;;  %v3075_v50 = vpop.f32.mrf.mxu2  ;;  %v3444_v0 = vpack.c.bf16 %v11041_v49, %v11041_v49 }
 0x240   : > { %v4079_v14 = vsel %vm3941_vm1, %v3692_v2, 0  ;;  %v3691_v18 = vpack.c.bf16 %v3682_v10, %v3682_v10  ;;  %v3011_v15 = vadd.f32 %v3010_v13, %v2998_v6  ;;  %v3050_v58 = vadd.f32 %v3049_v23, %v623_v16 }
 0x241   : > { %7223 = vmatmul.msk.bf16.vlgmr.msra.gmra.mxu1 %vm3941_vm1, %v3438_v4  ;;  %7225 = vmatmul.msk.bf16.vlgmr.msra.gmra.mxu3 %vm3941_vm1, %v3440_v27  ;;  %v3441_v20 = vpack.c.bf16 %v11051_v11, %v11051_v11  ;;  %v625_v45 = vperm.slane %v11250_v24, 3  ;;  %v4102_v2 = vlaneseq }
 0x242   : > { %4050 = vmatpush.bf16.xpose.msrb.mxu1 %v4041_v52  ;;  %4088 = vmatpush.bf16.xpose.msrb.mxu3 %v4079_v14  ;;  %v4060_v8 = vsel %vm3941_vm1, %v3691_v18, 0  ;;  %v3024_v25 = vadd.f32 %v11226_v28, %v3011_v15  ;;  %v3063_v17 = vadd.f32 %v3062_v3, %v3050_v58  ;;  %v3088_v29 = vpop.f32.mrf.mxu3  ;;  %v3442_v28 = vpack.c.bf16 %v11031_v5, %v11031_v5 }
 0x243   : > { %7224 = vmatmul.msk.bf16.vlgmr.msra.gmra.mxu2 %vm3941_vm1, %v3439_v53  ;;  %7222 = vmatmul.msk.bf16.vlgmr.msra.gmra.mxu0 %vm3941_vm1, %v3437_v7  ;;  %v624_v5 = vperm.slane %v11250_v24, 2  ;;  %v4103_v4 = vshrl.u32 %v4102_v2, 7  ;;  %v4105_v6 = vand.u32 127, %v4102_v2 }
 0x244   : > { %4031 = vmatpush.bf16.xpose.msrb.mxu0 %v4022_v9  ;;  %4069 = vmatpush.bf16.xpose.msrb.mxu2 %v4060_v8  ;;  %v11275_v13 = vadd.f32 %v11228_v40, %v3024_v25  ;;  %v3076_v1 = vadd.f32 %v3075_v50, %v3063_v17  ;;  %v3064_v19 = vpop.f32.mrf.mxu1  ;;  %v3443_v40 = vpack.c.bf16 %v11054_v63, %v11054_v63 }
 0x245   : > { %vm11304_vm2 = vcmp.le.s32.totalorder %v4105_v6, %v4103_v4 }
 0x246   : > { %v11277_v26 = vadd.f32 %v3088_v29, %v3076_v1  ;;  %v3051_v43 = vpop.f32.mrf.mxu0 }
 0x247   : > { %v3077_v30 = vpop.f32.mrf.mxu2 }
 0x24a   : > { %v3090_v33 = vpop.f32.mrf.mxu3 }
 0x251   : > { %7227 = vmatmul.msk.bf16.vlgmr.msrb.gmra.mxu1 %vm3941_vm1, %v3442_v28  ;;  %7229 = vmatmul.msk.bf16.vlgmr.msrb.gmra.mxu3 %vm3941_vm1, %v3444_v0 }
 0x253   : > { %7228 = vmatmul.msk.bf16.vlgmr.msrb.gmra.mxu2 %vm3941_vm1, %v3443_v40  ;;  %7226 = vmatmul.msk.bf16.vlgmr.msrb.gmra.mxu0 %vm3941_vm1, %v3441_v20 }
 0x25b   : > { %v3101_v21 = vpop.f32.mrf.mxu0 }
 0x25c   : > { %v3102_v22 = vadd.f32 %v3101_v21, %v624_v5  ;;  %v3114_v49 = vpop.f32.mrf.mxu1 }
 0x25e   : > { %v3115_v34 = vadd.f32 %v3114_v49, %v3102_v22 }
 0x25f   : > { %v3127_v39 = vpop.f32.mrf.mxu2 }
 0x260   : > { %v3128_v63 = vadd.f32 %v3127_v39, %v3115_v34 }
 0x262   : > { %v3140_v36 = vpop.f32.mrf.mxu3 }
 0x263   : > { %v3141_v51 = vadd.f32 %v3140_v36, %v3128_v63  ;;  %v3103_v35 = vpop.f32.mrf.mxu0 }
 0x264   : > { %v3116_v42 = vpop.f32.mrf.mxu1 }
 0x265   : > { %v8336_v47 = vpack.i.bf16 %v11275_v13, %v3141_v51  ;;  %v3735_v48 = vrot.slane %v3141_v51, 4 }
 0x267   : > { %v3129_v11 = vpop.f32.mrf.mxu2 }
 0x26a   : > { %v3142_v60 = vpop.f32.mrf.mxu3 }
 0x27a   : > { %v3153_v54 = vpop.f32.mrf.mxu0 }
 0x27b   : > { %v3154_v57 = vadd.f32 %v3153_v54, %v625_v45 }
 0x27c   : > { %v3166_v46 = vpop.f32.mrf.mxu1 }
 0x27d   : > { %v3167_v41 = vadd.f32 %v3166_v46, %v3154_v57 }
 0x27f   : > { %v3179_v44 = vpop.f32.mrf.mxu2 }
 0x280   : > { %v3180_v55 = vadd.f32 %v3179_v44, %v3167_v41  ;;  %v3192_v38 = vpop.f32.mrf.mxu3 }
 0x282   : > { %v11294_v12 = vadd.f32 %v3192_v38, %v3180_v55  ;;  %v3155_v59 = vpop.f32.mrf.mxu0 }
 0x284   : > { %v3733_v56 = vrot.slane %v11294_v12, 4  ;;  %v11299_v52 = vsel %vm3213_vm0, %v11294_v12, %v3735_v48  ;;  %v3168_v24 = vpop.f32.mrf.mxu1  ;;  %v8331_v57 = vpack.i.bf16 %v11277_v26, %v11294_v12 }
 0x286   : > { %v11302_v31 = vsel %vm3213_vm0, %v3733_v56, %v3141_v51 }
 0x287   : > { %v3181_v62 = vpop.f32.mrf.mxu2 }
 0x288   : > { %v3194_v61 = vpop.f32.mrf.mxu3 }
 0x2be   : > { %v3976_v9 = vpop.f32.mrf.mxu1 }
 0x2bf   : > { %v4095_v27 = vmul.f32 0.125, %v3976_v9 }
 0x2c0   : > { %v3957_v53 = vpop.f32.mrf.mxu0 }
 0x2c1   : > { %v4094_v14 = vmul.f32 0.125, %v3957_v53  ;;  %v4108_v18 = vsel %vm11304_vm2, %v4095_v27, -inf }
 0x2c2   : > { %v4119_v15 = vsel %vm4115_vm3, %v4108_v18, -inf }
 0x2c3   : > { %4120 = vmax.xlane.f32.xlu0 %v4119_v15  ;;  %v11313_v16 = vsel %vm11304_vm2, %v4094_v14, -inf }
 0x2c4   : > { %v4116_v7 = vsel %vm4115_vm3, %v11313_v16, -inf  ;;  %v4014_v8 = vpop.f32.mrf.mxu3 }
 0x2c5   : > { %4117 = vmax.xlane.f32.xlu1 %v4116_v7  ;;  %v4097_v1 = vmul.f32 0.125, %v4014_v8 }
 0x2c6   : > { %v3995_v25 = vpop.f32.mrf.mxu2  ;;  %v3978_v23 = vpop.f32.mrf.mxu1 }
 0x2c7   : > { %v4096_v58 = vmul.f32 0.125, %v3995_v25  ;;  %v4110_v28 = vsel %vm11304_vm2, %v4097_v1, -inf  ;;  %v3711_v25 = vrot.slane %v11275_v13, 4 }
 0x2c8   : > { %v3959_v3 = vpop.f32.mrf.mxu0  ;;  %v4125_v0 = vsel %vm4115_vm3, %v4110_v28, -inf }
 0x2c9   : > { %v4109_v17 = vsel %vm11304_vm2, %v4096_v58, -inf  ;;  %v3709_v3 = vrot.slane %v11277_v26, 4 }
 0x2ca   : > { %v4122_v50 = vsel %vm4115_vm3, %v4109_v17, -inf }
 0x2cb   : > { %4123 = vmax.xlane.f32.xlu2 %v4122_v50 }
 0x2cc   : > { %v4016_v29 = vpop.f32.mrf.mxu3 }
 0x2ce   : > { %v3997_v43 = vpop.f32.mrf.mxu2  ;;  %v4052_v19 = vpop.f32.mrf.mxu1 }
 0x2cf   : > { %v4099_v34 = vmul.f32 0.125, %v4052_v19  ;;  %v3712_v43 = vsel %vm3213_vm0, %v11277_v26, %v3711_v25  ;;  %v3744_v26 = vperm.slane %v11299_v52, %v10347_v32 }
 0x2d0   : > { %v4033_v30 = vpop.f32.mrf.mxu0 }
 0x2d1   : > { %v4098_v40 = vmul.f32 0.125, %v4033_v30  ;;  %v4112_v36 = vsel %vm11304_vm2, %v4099_v34, -inf  ;;  %v3710_v30 = vsel %vm3213_vm0, %v3709_v3, %v11275_v13 }
 0x2d2   : > { %v4131_v51 = vsel %vm4115_vm3, %v4112_v36, -inf }
 0x2d3   : > { %4126 = vmax.xlane.f32.xlu2 %v4125_v0  ;;  %v11325_v21 = vsel %vm11304_vm2, %v4098_v40, -inf }
 0x2d4   : > { %v4090_v20 = vpop.f32.mrf.mxu3  ;;  %v4128_v49 = vsel %vm4115_vm3, %v11325_v21, -inf }
 0x2d5   : > { %v4101_v60 = vmul.f32 0.125, %v4090_v20  ;;  %v3720_v20 = vperm.slane %v3712_v43, %v10347_v32 }
 0x2d6   : > { %v4071_v33 = vpop.f32.mrf.mxu2  ;;  %v4054_v5 = vpop.f32.mrf.mxu1 }
 0x2d7   : > { %8337 = vrot.lane.b32.xlu0 %v8336_v47, %s8448_s12  ;;  %v4100_v35 = vmul.f32 0.125, %v4071_v33  ;;  %v4114_v45 = vsel %vm11304_vm2, %v4101_v60, -inf  ;;  %v3716_v5 = vperm.slane %v3710_v30, %v10347_v32  ;;  %v3771_v13 = vrot.slane %v3720_v20, 4 }
 0x2d8   : > { %v4035_v22 = vpop.f32.mrf.mxu0  ;;  %v4137_v54 = vsel %vm4115_vm3, %v4114_v45, -inf }
 0x2d9   : > { %v4113_v42 = vsel %vm11304_vm2, %v4100_v35, -inf }
 0x2da   : > { %v4134_v11 = vsel %vm4115_vm3, %v4113_v42, -inf }
 0x2db   : > { %4129 = vmax.xlane.f32.xlu2 %v4128_v49 }
 0x2dc   : > { %v4092_v39 = vpop.f32.mrf.mxu3 }
 0x2de   : > { %v4073_v63 = vpop.f32.mrf.mxu2 }
 0x2e3   : > { %4132 = vmax.xlane.f32.xlu2 %v4131_v51 }
 0x2eb   : > { %4135 = vmax.xlane.f32.xlu2 %v4134_v11 }
 0x2f3   : > { %4138 = vmax.xlane.f32.xlu2 %v4137_v54 }
 0x30b   : > { %8332 = vrot.lane.b32.xlu2 %v8331_v57, %s8448_s12 }
 0x336   : > { %v4121_v46 = vpop.xlane.xlu0 %4120 }
 0x337   : > { %v4141_v41 = vsub.f32 %v4108_v18, %v4121_v46  ;;  %v3795_v46 = vrot.slane %v3744_v26, 4 }
 0x338   : > { %v4118_v56 = vpop.xlane.xlu1 %4117 }
 0x339   : > { %v4150_v47 = vmul.f32 1.442695, %v4141_v41  ;;  %v4140_v61 = vsub.f32 %v11313_v16, %v4118_v56 }
 0x33b   : > { %8351 = vpow2.f32 %v4150_v47  ;;  %v4148_v6 = vmul.f32 1.442695, %v4140_v61 }
 0x33e   : > { %v4124_v44 = vpop.xlane.xlu2 %4123 }
 0x33f   : > { %v4142_v48 = vsub.f32 %v4109_v17, %v4124_v44 }
 0x341   : > { %v4152_v55 = vmul.f32 1.442695, %v4142_v48  ;;  %v11342_v38 = vpop.eup %8351 }
 0x342   : > { %v4167_v59 = vsel %vm4115_vm3, %v11342_v38, 0.0 }
 0x343   : > { %8353 = vpow2.f32 %v4152_v55  ;;  %4168 = vadd.xlane.f32.xlu2 %v4167_v59 }
 0x346   : > { %v4127_v24 = vpop.xlane.xlu2 %4126 }
 0x347   : > { %v4143_v62 = vsub.f32 %v4110_v28, %v4127_v24 }
 0x349   : > { %v11346_v12 = vpop.eup %8353  ;;  %v4154_v2 = vmul.f32 1.442695, %v4143_v62  ;;  %v8338_v50 = vpop.permute.xlu0 %8337 }
 0x34a   : > { %v4170_v4 = vsel %vm4115_vm3, %v11346_v12, 0.0  ;;  %v8340_v0 = vunpack.i.h.bf16 %v8338_v50  ;;  %v8339_v40 = vunpack.i.l.bf16 %v8338_v50 }
 0x34b   : > { %8355 = vpow2.f32 %v4154_v2  ;;  %4171 = vadd.xlane.f32.xlu1 %v4170_v4 }
 0x34c   : > { %8357 = vpow2.f32 %v4148_v6  ;;  %v3723_v49 = vrot.slane %v8340_v0, 4  ;;  %v3747_v34 = vrot.slane %v8339_v40, 4 }
 0x34e   : > { %v4130_v9 = vpop.xlane.xlu2 %4129 }
 0x34f   : > { %v4144_v1 = vsub.f32 %v11325_v21, %v4130_v9 }
 0x351   : > { %v11351_v10 = vpop.eup %8355  ;;  %v4156_v33 = vmul.f32 1.442695, %v4144_v1 }
 0x352   : > { %v4173_v27 = vsel %vm4115_vm3, %v11351_v10, 0.0  ;;  %v11355_v14 = vpop.eup %8357 }
 0x353   : > { %4174 = vadd.xlane.f32.xlu1 %v4173_v27  ;;  %v4164_v18 = vsel %vm4115_vm3, %v11355_v14, 0.0 }
 0x356   : > { %v4133_v53 = vpop.xlane.xlu2 %4132 }
 0x357   : > { %v4145_v7 = vsub.f32 %v4112_v36, %v4133_v53  ;;  %v3740_v36 = vperm.slane %v11302_v31, %v10347_v32  ;;  %v3759_v31 = vrot.slane %v3716_v5, 4 }
 0x359   : > { %v4158_v23 = vmul.f32 1.442695, %v4145_v7  ;;  %v3783_v56 = vrot.slane %v3740_v36, 4 }
 0x35b   : > { %4165 = vadd.xlane.f32.xlu1 %v4164_v18 }
 0x35e   : > { %v4136_v15 = vpop.xlane.xlu2 %4135 }
 0x35f   : > { %v4146_v16 = vsub.f32 %v4113_v42, %v4136_v15 }
 0x361   : > { %v4160_v8 = vmul.f32 1.442695, %v4146_v16 }
 0x363   : > { %8359 = vpow2.f32 %v4160_v8 }
 0x364   : > { %8361 = vpow2.f32 %v4158_v23 }
 0x366   : > { %v4139_v58 = vpop.xlane.xlu2 %4138 }
 0x367   : > { %v4147_v17 = vsub.f32 %v4114_v45, %v4139_v58 }
 0x369   : > { %v11362_v29 = vpop.eup %8359  ;;  %v4162_v19 = vmul.f32 1.442695, %v4147_v17 }
 0x36a   : > { %v4182_v28 = vsel %vm4115_vm3, %v11362_v29, 0.0  ;;  %v11374_v22 = vpop.eup %8361 }
 0x36b   : > { %8363 = vpow2.f32 %v4162_v19  ;;  %4183 = vadd.xlane.f32.xlu1 %v4182_v28  ;;  %v4179_v54 = vsel %vm4115_vm3, %v11374_v22, 0.0 }
 0x36c   : > { %8365 = vpow2.f32 %v4156_v33 }
 0x36e   : > { %v8333_v21 = vpop.permute.xlu2 %8332 }
 0x36f   : > { %v8335_v39 = vunpack.i.h.bf16 %v8333_v21  ;;  %v8334_v63 = vunpack.i.l.bf16 %v8333_v21 }
 0x371   : > { %v11378_v51 = vpop.eup %8363  ;;  %v3721_v35 = vrot.slane %v8335_v39, 4  ;;  %v3724_v42 = vsel %vm3213_vm0, %v8335_v39, %v3723_v49  ;;  %v3745_v11 = vrot.slane %v8334_v63, 4  ;;  %v3748_v52 = vsel %vm3213_vm0, %v8334_v63, %v3747_v34 }
 0x372   : > { %v3732_v60 = vperm.slane %v3724_v42, %v10347_v32  ;;  %v3756_v45 = vperm.slane %v3748_v52, %v10347_v32  ;;  %v4185_v57 = vsel %vm4115_vm3, %v11378_v51, 0.0  ;;  %v11395_v2 = vpop.eup %8365 }
 0x373   : > { %v3722_v41 = vsel %vm3213_vm0, %v3721_v35, %v8340_v0  ;;  %v3746_v47 = vsel %vm3213_vm0, %v3745_v11, %v8339_v40  ;;  %4180 = vadd.xlane.f32.xlu1 %v4179_v54  ;;  %4186 = vadd.xlane.f32.xlu0 %v4185_v57  ;;  %v4176_v28 = vsel %vm4115_vm3, %v11395_v2, 0.0 }
 0x374   : > { %v3728_v44 = vperm.slane %v3722_v41, %v10347_v32  ;;  %v3769_v48 = vrot.slane %v3732_v60, 4  ;;  %v3772_v55 = vsel %vm3213_vm0, %v3732_v60, %v3771_v13  ;;  %v3752_v59 = vperm.slane %v3746_v47, %v10347_v32 }
 0x375   : > { %v3780_v24 = vperm.slane %v3772_v55, %v10536_v37  ;;  %v3793_v62 = vrot.slane %v3756_v45, 4  ;;  %v3796_v61 = vsel %vm3213_vm0, %v3756_v45, %v3795_v46 }
 0x376   : > { %v3757_v4 = vrot.slane %v3728_v44, 4  ;;  %v3760_v6 = vsel %vm3213_vm0, %v3728_v44, %v3759_v31  ;;  %v3770_v9 = vsel %vm3213_vm0, %v3769_v48, %v3720_v20  ;;  %v3781_v27 = vrot.slane %v3752_v59, 4 }
 0x377   : > { %v3768_v53 = vperm.slane %v3760_v6, %v10536_v37  ;;  %v3776_v18 = vperm.slane %v3770_v9, %v10536_v37  ;;  %v3819_v15 = vrot.slane %v3780_v24, 4  ;;  %v3784_v16 = vsel %vm3213_vm0, %v3752_v59, %v3783_v56 }
 0x378   : > { %v3758_v7 = vsel %vm3213_vm0, %v3757_v4, %v3716_v5  ;;  %v3782_v8 = vsel %vm3213_vm0, %v3781_v27, %v3740_v36  ;;  %v3792_v25 = vperm.slane %v3784_v16, %v10536_v37  ;;  %v3794_v23 = vsel %vm3213_vm0, %v3793_v62, %v3744_v26 }
 0x379   : > { %v3764_v58 = vperm.slane %v3758_v7, %v10536_v37  ;;  %v3811_v3 = vrot.slane %v3768_v53, 4  ;;  %v3815_v17 = vrot.slane %v3776_v18, 4  ;;  %v3788_v50 = vperm.slane %v3782_v8, %v10536_v37 }
 0x37a   : > { %v3800_v1 = vperm.slane %v3794_v23, %v10536_v37  ;;  %v3804_v43 = vperm.slane %v3796_v61, %v10536_v37  ;;  %v3809_v19 = vrot.slane %v3792_v25, 4 }
 0x37b   : > { %v3807_v30 = vrot.slane %v3764_v58, 4  ;;  %v3805_v0 = vrot.slane %v3788_v50, 4  ;;  %v3812_v40 = vsel %vm3213_vm0, %v3792_v25, %v3811_v3  ;;  %4177 = vadd.xlane.f32.xlu1 %v4176_v28 }
 0x37c   : > { %v3810_v20 = vsel %vm3213_vm0, %v3809_v19, %v3768_v53  ;;  %v3813_v33 = vrot.slane %v3800_v1, 4  ;;  %v3816_v5 = vsel %vm3213_vm0, %v3800_v1, %v3815_v17  ;;  %v3817_v26 = vrot.slane %v3804_v43, 4 }
 0x37d   : > { %v3820_v21 = vsel %vm3213_vm0, %v3804_v43, %v3819_v15  ;;  %v3821_v49 = vrot.slane %v3810_v20, 4  ;;  %v3833_v34 = vrot.slane %v3812_v40, 4  ;;  %v3859_v39 = vrot.slane %v3816_v5, 4 }
 0x37e   : > { %v3814_v63 = vsel %vm3213_vm0, %v3813_v33, %v3776_v18  ;;  %v3818_v13 = vsel %vm3213_vm0, %v3817_v26, %v3780_v24  ;;  %v3857_v36 = vrot.slane %v3820_v21, 4  ;;  %v3806_v35 = vsel %vm3213_vm0, %v3805_v0, %v3764_v58 }
 0x37f   : > { %v3845_v42 = vrot.slane %v3818_v13, 4  ;;  %v3847_v11 = vrot.slane %v3814_v63, 4  ;;  %v3860_v52 = vsel %vm3213_vm0, %v3820_v21, %v3859_v39  ;;  %v3808_v60 = vsel %vm3213_vm0, %v3788_v50, %v3807_v30 }
 0x380   : > { %v3822_v45 = vsel %vm3213_vm0, %v3821_v49, %v3806_v35  ;;  %v3823_v54 = vrot.slane %v3806_v35, 4  ;;  %v3834_v57 = vsel %vm3213_vm0, %v3833_v34, %v3808_v60  ;;  %v3835_v31 = vrot.slane %v3808_v60, 4 }
 0x381   : > { %v3828_v46 = vperm.slane %v3822_v45, %v10347_v32  ;;  %v3840_v41 = vperm.slane %v3834_v57, %v10347_v32  ;;  %v3846_v47 = vsel %vm3213_vm0, %v3845_v42, %v3814_v63  ;;  %v3858_v44 = vsel %vm3213_vm0, %v3857_v36, %v3816_v5 }
 0x382   : > { %v3852_v48 = vperm.slane %v3846_v47, %v10347_v32  ;;  %v3864_v55 = vperm.slane %v3858_v44, %v10347_v32  ;;  %v3824_v59 = vsel %vm3213_vm0, %v3810_v20, %v3823_v54  ;;  %v3836_v56 = vsel %vm3213_vm0, %v3812_v40, %v3835_v31 }
 0x383   : > { %v3869_v24 = vrot.slane %v3840_v41, 4  ;;  %v3871_v62 = vrot.slane %v3828_v46, 4  ;;  %v3832_v61 = vperm.slane %v3824_v59, %v10347_v32  ;;  %v3844_v4 = vperm.slane %v3836_v56, %v10347_v32 }
 0x384   : > { %v3893_v6 = vrot.slane %v3864_v55, 4  ;;  %v3895_v9 = vrot.slane %v3852_v48, 4  ;;  %v3848_v27 = vsel %vm3213_vm0, %v3818_v13, %v3847_v11  ;;  %v3868_v53 = vperm.slane %v3860_v52, %v10347_v32 }
 0x385   : > { %v3870_v18 = vsel %vm3213_vm0, %v3869_v24, %v3828_v46  ;;  %v3872_v15 = vsel %vm3213_vm0, %v3840_v41, %v3871_v62  ;;  %v3856_v16 = vperm.slane %v3848_v27, %v10347_v32  ;;  %v3881_v7 = vrot.slane %v3844_v4, 4 }
 0x386   : > { %v3876_v8 = vperm.slane %v3870_v18, %v10536_v37  ;;  %v3894_v25 = vsel %vm3213_vm0, %v3893_v6, %v3852_v48  ;;  %v3880_v23 = vperm.slane %v3872_v15, %v10536_v37  ;;  %v3896_v58 = vsel %vm3213_vm0, %v3864_v55, %v3895_v9 }
 0x387   : > { %v3900_v3 = vperm.slane %v3894_v25, %v10536_v37  ;;  %v3904_v17 = vperm.slane %v3896_v58, %v10536_v37  ;;  %v3882_v50 = vsel %vm3213_vm0, %v3881_v7, %v3832_v61  ;;  %v3905_v1 = vrot.slane %v3868_v53, 4 }
 0x388   : > { %v3919_v43 = vrot.slane %v3876_v8, 4  ;;  %v3923_v19 = vrot.slane %v3880_v23, 4  ;;  %v3888_v28 = vperm.slane %v3882_v50, %v10536_v37  ;;  %v3883_v30 = vrot.slane %v3832_v61, 4 }
 0x389   : > { %v3917_v0 = vrot.slane %v3900_v3, 4  ;;  %v3921_v40 = vrot.slane %v3904_v17, 4  ;;  %v3906_v20 = vsel %vm3213_vm0, %v3905_v1, %v3856_v16  ;;  %v3907_v33 = vrot.slane %v3856_v16, 4 }
 0x38a   : > { %v3920_v5 = vsel %vm3213_vm0, %v3900_v3, %v3919_v43  ;;  %v3924_v26 = vsel %vm3213_vm0, %v3904_v17, %v3923_v19  ;;  %v3912_v21 = vperm.slane %v3906_v20, %v10536_v37  ;;  %v3884_v49 = vsel %vm3213_vm0, %v3844_v4, %v3883_v30 }
 0x38b   : > { %v3918_v34 = vsel %vm3213_vm0, %v3917_v0, %v3876_v8  ;;  %v3922_v39 = vsel %vm3213_vm0, %v3921_v40, %v3880_v23  ;;  %v3934_v63 = vpack.c.bf16 %v3920_v5, %v3920_v5  ;;  %v3936_v13 = vpack.c.bf16 %v3924_v26, %v3924_v26 }
 0x38c   : > { %v3933_v36 = vpack.c.bf16 %v3918_v34, %v3918_v34  ;;  %v3935_v35 = vpack.c.bf16 %v3922_v39, %v3922_v39  ;;  %v3925_v42 = vrot.slane %v3912_v21, 4  ;;  %v3892_v11 = vperm.slane %v3884_v49, %v10536_v37 }
 0x38d   : > { %v4236_v52 = vsel %vm4215_vm4, %v3934_v63, 0  ;;  %v4274_v60 = vsel %vm4215_vm4, %v3936_v13, 0  ;;  %v3908_v45 = vsel %vm3213_vm0, %v3868_v53, %v3907_v33  ;;  %v3927_v54 = vrot.slane %v3888_v28, 4 }
 0x38e   : > { %v4217_v57 = vsel %vm4215_vm4, %v3933_v36, 0  ;;  %v4255_v31 = vsel %vm4215_vm4, %v3935_v35, 0  ;;  %4245 = vmatpush.bf16.msra.mxu1 %v4236_v52  ;;  %4283 = vmatpush.bf16.msra.mxu3 %v4274_v60  ;;  %v3926_v46 = vsel %vm3213_vm0, %v3925_v42, %v3888_v28  ;;  %v3916_v41 = vperm.slane %v3908_v45, %v10536_v37 }
 0x38f   : > { %4226 = vmatpush.bf16.msra.mxu0 %v4217_v57  ;;  %4264 = vmatpush.bf16.msra.mxu2 %v4255_v31  ;;  %v3937_v47 = vpack.c.bf16 %v3926_v46, %v3926_v46  ;;  %v3928_v44 = vsel %vm3213_vm0, %v3912_v21, %v3927_v54  ;;  %v3931_v48 = vrot.slane %v3892_v11, 4 }
 0x390   : > { %v3929_v55 = vrot.slane %v3916_v41, 4  ;;  %v3938_v59 = vpack.c.bf16 %v3928_v44, %v3928_v44 }
 0x391   : > { %v4293_v56 = vsel %vm4215_vm4, %v3937_v47, 0  ;;  %v3932_v24 = vsel %vm3213_vm0, %v3916_v41, %v3931_v48 }
 0x392   : > { %v3930_v62 = vsel %vm3213_vm0, %v3929_v55, %v3892_v11  ;;  %v4312_v61 = vsel %vm4215_vm4, %v3938_v59, 0  ;;  %v3940_v4 = vpack.c.bf16 %v3932_v24, %v3932_v24 }
 0x393   : > { %4302 = vmatpush.bf16.msrb.mxu0 %v4293_v56  ;;  %v3939_v6 = vpack.c.bf16 %v3930_v62, %v3930_v62  ;;  %4321 = vmatpush.bf16.msrb.mxu1 %v4312_v61 }
 0x394   : > { %v4350_v9 = vsel %vm4215_vm4, %v3940_v4, 0 }
 0x395   : > { %v4331_v27 = vsel %vm4215_vm4, %v3939_v6, 0  ;;  %4359 = vmatpush.bf16.msrb.mxu3 %v4350_v9 }
 0x396   : > { %4340 = vmatpush.bf16.msrb.mxu2 %v4331_v27 }
 0x3b6   : > { %v4169_v53 = vpop.xlane.xlu2 %4168 }
 0x3b7   : > { %8367 = vrcp.f32 %v4169_v53 }
 0x3bd   : > { %v8368_v18 = vpop.eup %8367 }
 0x3be   : > { %v4172_v15 = vpop.xlane.xlu1 %4171  ;;  %v4197_v16 = vmul.f32 %v8368_v18, %v11342_v38 }
 0x3bf   : > { %8369 = vrcp.f32 %v4172_v15 }
 0x3c0   : > { %v4205_v7 = vpack.c.bf16 %v4197_v16, %v4197_v16 }
 0x3c2   : > { %7231 = vmatmul.msk.bf16.vlgmr.msra.gmra.mxu1 %vm4115_vm3, %v4205_v7 }
 0x3c5   : > { %v8370_v8 = vpop.eup %8369 }
 0x3c6   : > { %v4198_v25 = vmul.f32 %v8370_v8, %v11346_v12  ;;  %v4175_v23 = vpop.xlane.xlu1 %4174 }
 0x3c7   : > { %8371 = vrcp.f32 %v4175_v23 }
 0x3c8   : > { %v4206_v58 = vpack.c.bf16 %v4198_v25, %v4198_v25 }
 0x3ca   : > { %7232 = vmatmul.msk.bf16.vlgmr.msra.gmra.mxu2 %vm4115_vm3, %v4206_v58 }
 0x3cd   : > { %v8372_v3 = vpop.eup %8371 }
 0x3ce   : > { %v4199_v17 = vmul.f32 %v8372_v3, %v11351_v10  ;;  %v4166_v50 = vpop.xlane.xlu1 %4165  ;;  %v7352_v3 = vld [vmem:[%s12473_s3 + $0xe0] sm:$0xf] }
 0x3cf   : > { %8373 = vrcp.f32 %v4166_v50  ;;  %v7480_v50 = vld [vmem:[%s12473_s3 + $0x1e0] sm:$0xf] }
 0x3d0   : > { %v4207_v1 = vpack.c.bf16 %v4199_v17, %v4199_v17  ;;  %v8170_v17 = vld [vmem:[%s12473_s3 + $0xec] sm:$0xf0] }
 0x3d2   : > { %7233 = vmatmul.msk.bf16.vlgmr.msra.gmra.mxu3 %vm4115_vm3, %v4207_v1 }
 0x3d5   : > { %v8374_v38 = vpop.eup %8373 }
 0x3d6   : > { %v4196_v43 = vmul.f32 %v8374_v38, %v11355_v14 }
 0x3d8   : > { %v4204_v19 = vpack.c.bf16 %v4196_v43, %v4196_v43 }
 0x3da   : > { %7230 = vmatmul.msk.bf16.vlgmr.msra.gmra.mxu0 %vm4115_vm3, %v4204_v19 }
 0x3de   : > { %v4184_v12 = vpop.xlane.xlu1 %4183 }
 0x3df   : > { %8375 = vrcp.f32 %v4184_v12 }
 0x3e5   : > { %v8376_v28 = vpop.eup %8375 }
 0x3e6   : > { %v4202_v30 = vmul.f32 %v8376_v28, %v11362_v29  ;;  %v4181_v0 = vpop.xlane.xlu1 %4180  ;;  %v4187_v40 = vpop.xlane.xlu0 %4186  ;;  %v7353_v28 = vor.u32 %v8170_v17, %v7352_v3 }
 0x3e7   : > { %8377 = vrcp.f32 %v4181_v0  ;;  %v7336_v0 = vld [vmem:[%s12473_s3 + $0xc0] sm:$0xf] }
 0x3e8   : > { %v4210_v10 = vpack.c.bf16 %v4202_v30, %v4202_v30  ;;  %8379 = vrcp.f32 %v4187_v40  ;;  %v8202_v30 = vld [vmem:[%s12473_s3 + $0x1ec] sm:$0xf0]  ;;  %5391 = vmatpush.bf16.msra.mxu0 %v7353_v28 }
 0x3ea   : > { %7236 = vmatmul.msk.bf16.vlgmr.msrb.gmra.mxu2 %vm4115_vm3, %v4210_v10 }
 0x3ed   : > { %v8378_v20 = vpop.eup %8377 }
 0x3ee   : > { %v8380_v33 = vpop.eup %8379  ;;  %v4201_v5 = vmul.f32 %v8378_v20, %v11374_v22  ;;  %v4178_v14 = vpop.xlane.xlu1 %4177 }
 0x3ef   : > { %v4203_v26 = vmul.f32 %v8380_v33, %v11378_v51  ;;  %8381 = vrcp.f32 %v4178_v14  ;;  %v7481_v33 = vor.u32 %v8202_v30, %v7480_v50  ;;  %v7464_v14 = vld [vmem:[%s12473_s3 + $0x1c0] sm:$0xf] }
 0x3f0   : > { %v4209_v21 = vpack.c.bf16 %v4201_v5, %v4201_v5  ;;  %v8166_v5 = vld [vmem:[%s12473_s3 + $0xcc] sm:$0xf0] }
 0x3f1   : > { %v4211_v49 = vpack.c.bf16 %v4203_v26, %v4203_v26  ;;  %5404 = vmatpush.bf16.msra.mxu1 %v7481_v33 }
 0x3f2   : > { %7235 = vmatmul.msk.bf16.vlgmr.msrb.gmra.mxu1 %vm4115_vm3, %v4209_v21 }
 0x3f3   : > { %7237 = vmatmul.msk.bf16.vlgmr.msrb.gmra.mxu3 %vm4115_vm3, %v4211_v49  ;;  %v7337_v49 = vor.u32 %v8166_v5, %v7336_v0 }
 0x3f5   : > { %v8382_v29 = vpop.eup %8381  ;;  %5392 = vmatpush.bf16.msra.mxu0 %v7337_v49 }
 0x3f6   : > { %v4200_v34 = vmul.f32 %v8382_v29, %v11395_v2  ;;  %v8198_v29 = vld [vmem:[%s12473_s3 + $0x1cc] sm:$0xf0] }
 0x3f8   : > { %v4208_v39 = vpack.c.bf16 %v4200_v34, %v4200_v34  ;;  %v7320_v34 = vld [vmem:[%s12473_s3 + $0xa0] sm:$0xf] }
 0x3fa   : > { %7234 = vmatmul.msk.bf16.vlgmr.msrb.gmra.mxu0 %vm4115_vm3, %v4208_v39  ;;  %v8162_v39 = vld [vmem:[%s12473_s3 + $0xac] sm:$0xf0] }
 0x43f   : > { %v4247_v63 = vpop.f32.mrf.mxu1 }
 0x440   : > { %v4379_v31 = vrot.slane %v4247_v63, 4 }
 0x447   : > { %v4249_v13 = vpop.f32.mrf.mxu1 }
 0x44d   : > { %v4266_v36 = vpop.f32.mrf.mxu2 }
 0x44e   : > { %v4365_v60 = vrot.slane %v4266_v36, 4 }
 0x455   : > { %v4268_v22 = vpop.f32.mrf.mxu2  ;;  %v4285_v35 = vpop.f32.mrf.mxu3 }
 0x456   : > { %v4377_v11 = vrot.slane %v4285_v35, 4  ;;  %v4380_v47 = vsel %vm3213_vm0, %v4285_v35, %v4379_v31  ;;  %v7465_v22 = vor.u32 %v8198_v29, %v7464_v14  ;;  %v7448_v35 = vld [vmem:[%s12473_s3 + $0x1a0] sm:$0xf] }
 0x457   : > { %v4228_v42 = vpop.f32.mrf.mxu0  ;;  %v4388_v59 = vperm.slane %v4380_v47, %v10347_v32 }
 0x458   : > { %v4378_v45 = vsel %vm3213_vm0, %v4377_v11, %v4247_v63  ;;  %v4367_v54 = vrot.slane %v4228_v42, 4  ;;  %v4366_v57 = vsel %vm3213_vm0, %v4365_v60, %v4228_v42  ;;  %v8194_v42 = vld [vmem:[%s12473_s3 + $0x1ac] sm:$0xf0]  ;;  %v7304_v60 = vld [vmem:[%s12473_s3 + $0x80] sm:$0xf]  ;;  %5405 = vmatpush.bf16.msra.mxu1 %v7465_v22 }
 0x459   : > { %v4384_v2 = vperm.slane %v4378_v45, %v10347_v32  ;;  %v4372_v41 = vperm.slane %v4366_v57, %v10347_v32  ;;  %v4425_v6 = vrot.slane %v4388_v59, 4  ;;  %v8158_v45 = vld [vmem:[%s12473_s3 + $0x8c] sm:$0xf0]  ;;  %v7449_v31 = vor.u32 %v8194_v42, %v7448_v35 }
 0x45a   : > { %v4368_v46 = vsel %vm3213_vm0, %v4266_v36, %v4367_v54 }
 0x45b   : > { %v4413_v44 = vrot.slane %v4384_v2, 4  ;;  %v4376_v48 = vperm.slane %v4368_v46, %v10347_v32  ;;  %v4415_v55 = vrot.slane %v4372_v41, 4  ;;  %v7432_v46 = vld [vmem:[%s12473_s3 + $0x180] sm:$0xf] }
 0x45c   : > { %5406 = vmatpush.bf16.msra.mxu1 %v7449_v31 }
 0x45d   : > { %v4287_v51 = vpop.f32.mrf.mxu3  ;;  %v4414_v24 = vsel %vm3213_vm0, %v4413_v44, %v4372_v41  ;;  %v4427_v62 = vrot.slane %v4376_v48, 4  ;;  %v4416_v4 = vsel %vm3213_vm0, %v4384_v2, %v4415_v55  ;;  %v4426_v53 = vsel %vm3213_vm0, %v4425_v6, %v4376_v48  ;;  %v8190_v41 = vld [vmem:[%s12473_s3 + $0x18c] sm:$0xf0] }
 0x45e   : > { %v11495_v9 = vperm.slane %v4414_v24, %v10536_v37  ;;  %v11498_v27 = vperm.slane %v4416_v4, %v10536_v37  ;;  %v11504_v25 = vperm.slane %v4426_v53, %v10536_v37  ;;  %v7321_v2 = vor.u32 %v8162_v39, %v7320_v34  ;;  %v7416_v53 = vld [vmem:[%s12473_s3 + $0x160] sm:$0xf] }
 0x45f   : > { %v4230_v52 = vpop.f32.mrf.mxu0  ;;  %v4428_v18 = vsel %vm3213_vm0, %v4388_v59, %v4427_v62  ;;  %v7305_v55 = vor.u32 %v8158_v45, %v7304_v60  ;;  %v7288_v59 = vld [vmem:[%s12473_s3 + $0x60] sm:$0xf]  ;;  %v7433_v6 = vor.u32 %v8190_v41, %v7432_v46 }
 0x460   : > { %v4463_v15 = vrot.slane %v11495_v9, 4  ;;  %v11507_v23 = vperm.slane %v4428_v18, %v10536_v37  ;;  %v4467_v1 = vrot.slane %v11498_v27, 4  ;;  %v4471_v63 = vrot.slane %v11504_v25, 4  ;;  %v8186_v18 = vld [vmem:[%s12473_s3 + $0x16c] sm:$0xf0]  ;;  %5393 = vmatpush.bf16.msra.mxu0 %v7321_v2 }
 0x461   : > { %v7417_v3 = vor.u32 %v8186_v18, %v7416_v53  ;;  %5407 = vmatpush.bf16.msra.mxu1 %v7433_v6  ;;  %v8150_v53 = vld [vmem:[%s12473_s3 + $0x4c] sm:$0xf0]  ;;  %v7400_v18 = vld [vmem:[%s12473_s3 + $0x140] sm:$0xf] }
 0x462   : > { %v4475_v54 = vrot.slane %v11507_v23, 4 }
 0x464   : > { %5394 = vmatpush.bf16.msra.mxu0 %v7305_v55 }
 0x465   : > { %5408 = vmatpush.bf16.msra.mxu1 %v7417_v3  ;;  %v8182_v3 = vld [vmem:[%s12473_s3 + $0x14c] sm:$0xf0] }
 0x46d   : > { %v4342_v56 = vpop.f32.mrf.mxu2 }
 0x46e   : > { %v4389_v16 = vrot.slane %v4342_v56, 4 }
 0x46f   : > { %v4323_v61 = vpop.f32.mrf.mxu1 }
 0x470   : > { %v4403_v7 = vrot.slane %v4323_v61, 4 }
 0x475   : > { %v4344_v8 = vpop.f32.mrf.mxu2 }
 0x476   : > { %v4361_v58 = vpop.f32.mrf.mxu3 }
 0x477   : > { %v4401_v38 = vrot.slane %v4361_v58, 4  ;;  %v4404_v43 = vsel %vm3213_vm0, %v4361_v58, %v4403_v7  ;;  %v4304_v19 = vpop.f32.mrf.mxu0  ;;  %v4325_v12 = vpop.f32.mrf.mxu1 }
 0x478   : > { %v4412_v40 = vperm.slane %v4404_v43, %v10347_v32  ;;  %v4390_v10 = vsel %vm3213_vm0, %v4389_v16, %v4304_v19  ;;  %v4391_v20 = vrot.slane %v4304_v19, 4 }
 0x479   : > { %v4402_v26 = vsel %vm3213_vm0, %v4401_v38, %v4323_v61  ;;  %v4396_v21 = vperm.slane %v4390_v10, %v10347_v32 }
 0x47a   : > { %v4408_v13 = vperm.slane %v4402_v26, %v10347_v32  ;;  %v4392_v36 = vsel %vm3213_vm0, %v4342_v56, %v4391_v20  ;;  %v4449_v51 = vrot.slane %v4412_v40, 4  ;;  %v8154_v56 = vld [vmem:[%s12473_s3 + $0x6c] sm:$0xf0] }
 0x47b   : > { %v4400_v11 = vperm.slane %v4392_v36, %v10347_v32  ;;  %v4439_v52 = vrot.slane %v4396_v21, 4  ;;  %v7289_v58 = vor.u32 %v8154_v56, %v7288_v59 }
 0x47c   : > { %v4437_v57 = vrot.slane %v4408_v13, 4 }
 0x47d   : > { %v4440_v47 = vsel %vm3213_vm0, %v4408_v13, %v4439_v52  ;;  %v4450_v44 = vsel %vm3213_vm0, %v4449_v51, %v4400_v11  ;;  %v4451_v48 = vrot.slane %v4400_v11, 4  ;;  %5395 = vmatpush.bf16.msra.mxu0 %v7289_v58 }
 0x47e   : > { %v4438_v24 = vsel %vm3213_vm0, %v4437_v57, %v4396_v21  ;;  %v4448_v62 = vperm.slane %v4440_v47, %v10536_v37  ;;  %v4456_v61 = vperm.slane %v4450_v44, %v10536_v37  ;;  %v4363_v4 = vpop.f32.mrf.mxu3 }
 0x47f   : > { %v4444_v16 = vperm.slane %v4438_v24, %v10536_v37  ;;  %v4452_v7 = vsel %vm3213_vm0, %v4412_v40, %v4451_v48  ;;  %v4306_v8 = vpop.f32.mrf.mxu0 }
 0x480   : > { %v4460_v17 = vperm.slane %v4452_v7, %v10536_v37  ;;  %v4465_v50 = vrot.slane %v4448_v62, 4  ;;  %v4468_v38 = vsel %vm3213_vm0, %v4448_v62, %v4467_v1  ;;  %v4469_v43 = vrot.slane %v4456_v61, 4  ;;  %v7272_v62 = vld [vmem:[%s12473_s3 + $0x40] sm:$0xf] }
 0x481   : > { %v4461_v19 = vrot.slane %v4444_v16, 4  ;;  %v4464_v12 = vsel %vm3213_vm0, %v4444_v16, %v4463_v15  ;;  %v4472_v28 = vsel %vm3213_vm0, %v4456_v61, %v4471_v63  ;;  %v4489_v30 = vrot.slane %v4468_v38, 4 }
 0x482   : > { %v4466_v0 = vsel %vm3213_vm0, %v4465_v50, %v11498_v27  ;;  %v4470_v40 = vsel %vm3213_vm0, %v4469_v43, %v11504_v25  ;;  %v4473_v10 = vrot.slane %v4460_v17, 4  ;;  %v4491_v20 = vrot.slane %v4464_v12, 4 }
 0x483   : > { %v4462_v1 = vsel %vm3213_vm0, %v4461_v19, %v11495_v9  ;;  %v4477_v33 = vrot.slane %v4466_v0, 4  ;;  %v4490_v5 = vsel %vm3213_vm0, %v4489_v30, %v4464_v12  ;;  %v4503_v15 = vrot.slane %v4470_v40, 4  ;;  %v8146_v19 = vld [vmem:[%s12473_s3 + $0x2c] sm:$0xf0]  ;;  %v7384_v12 = vld [vmem:[%s12473_s3 + $0x120] sm:$0xf] }
 0x484   : > { %v4479_v14 = vrot.slane %v4462_v1, 4  ;;  %v4492_v26 = vsel %vm3213_vm0, %v4468_v38, %v4491_v20  ;;  %v4496_v21 = vperm.slane %v4490_v5, %v10347_v32  ;;  %v4515_v49 = vrot.slane %v4472_v28, 4  ;;  %v7608_v20 = vld [vmem:[%s12473_s3 + $0x2e0] sm:$0xf] }
 0x485   : > { %v4478_v27 = vsel %vm3213_vm0, %v4477_v33, %v4462_v1  ;;  %v4474_v25 = vsel %vm3213_vm0, %v4473_v10, %v11507_v23  ;;  %v4476_v29 = vsel %vm3213_vm0, %v4460_v17, %v4475_v54  ;;  %v4500_v34 = vperm.slane %v4492_v26, %v10347_v32  ;;  %v7256_v17 = vld [vmem:[%s12473_s3 + $0x20] sm:$0xf]  ;;  %v8234_v1 = vld [vmem:[%s12473_s3 + $0x2ec] sm:$0xf0] }
 0x486   : > { %v4480_v9 = vsel %vm3213_vm0, %v4466_v0, %v4479_v14  ;;  %v4501_v39 = vrot.slane %v4474_v25, 4  ;;  %v4504_v63 = vsel %vm3213_vm0, %v4474_v25, %v4503_v15  ;;  %v4513_v13 = vrot.slane %v4476_v29, 4  ;;  %v8266_v26 = vld [vmem:[%s12473_s3 + $0x3ec] sm:$0xf0] }
 0x487   : > { %v4488_v36 = vperm.slane %v4480_v9, %v10347_v32  ;;  %v4512_v22 = vperm.slane %v4504_v63, %v10347_v32  ;;  %v4516_v35 = vsel %vm3213_vm0, %v4476_v29, %v4515_v49  ;;  %v4537_v42 = vrot.slane %v4500_v34, 4  ;;  %v7592_v49 = vld [vmem:[%s12473_s3 + $0x2c0] sm:$0xf]  ;;  %v8262_v63 = vld [vmem:[%s12473_s3 + $0x3cc] sm:$0xf0] }
 0x488   : > { %v4524_v23 = vperm.slane %v4516_v35, %v10347_v32  ;;  %v4484_v51 = vperm.slane %v4478_v27, %v10347_v32  ;;  %v4502_v11 = vsel %vm3213_vm0, %v4501_v39, %v4470_v40  ;;  %v4514_v52 = vsel %vm3213_vm0, %v4513_v13, %v4472_v28  ;;  %v8178_v28 = vld [vmem:[%s12473_s3 + $0x12c] sm:$0xf0]  ;;  %v7240_v9 = vld [vmem:[%s12473_s3] sm:$0xf] }
 0x489   : > { %v4538_v60 = vsel %vm3213_vm0, %v4537_v42, %v4488_v36  ;;  %v4539_v45 = vrot.slane %v4488_v36, 4  ;;  %v4563_v54 = vrot.slane %v4512_v22, 4  ;;  %v4508_v57 = vperm.slane %v4502_v11, %v10347_v32  ;;  %v8230_v27 = vld [vmem:[%s12473_s3 + $0x2cc] sm:$0xf0]  ;;  %v7720_v39 = vld [vmem:[%s12473_s3 + $0x3c0] sm:$0xf] }
 0x48a   : > { %v11619_v2 = vperm.slane %v4538_v60, %v10536_v37  ;;  %v4561_v31 = vrot.slane %v4524_v23, 4  ;;  %v4520_v46 = vperm.slane %v4514_v52, %v10347_v32  ;;  %v4525_v41 = vrot.slane %v4496_v21, 4  ;;  %v8142_v35 = vld [vmem:[%s12473_s3 + $0xc] sm:$0xf0]  ;;  %v7368_v42 = vld [vmem:[%s12473_s3 + $0x100] sm:$0xf] }
 0x48b   : > { %v4540_v47 = vsel %vm3213_vm0, %v4500_v34, %v4539_v45  ;;  %v4564_v44 = vsel %vm3213_vm0, %v4524_v23, %v4563_v54  ;;  %v4527_v48 = vrot.slane %v4484_v51, 4  ;;  %v4551_v55 = vrot.slane %v4508_v57, 4  ;;  %v8174_v23 = vld [vmem:[%s12473_s3 + $0x10c] sm:$0xf0]  ;;  %v8168_v11 = vld [vmem:[%s12473_s3 + $0xe4] sm:$0xf] }
 0x48c   : > { %v11625_v59 = vperm.slane %v4540_v47, %v10536_v37  ;;  %v4562_v56 = vsel %vm3213_vm0, %v4561_v31, %v4512_v22  ;;  %v4583_v24 = vrot.slane %v11619_v2, 4  ;;  %v4526_v61 = vsel %vm3213_vm0, %v4525_v41, %v4484_v51  ;;  %v7354_v52 = vld [vmem:[%s12473_s3 + $0xf0] sm:$0xf0]  ;;  %v8200_v60 = vld [vmem:[%s12473_s3 + $0x1e4] sm:$0xf] }
 0x48d   : > { %v11633_v32 = vperm.slane %v4562_v56, %v10536_v37  ;;  %v4528_v4 = vsel %vm3213_vm0, %v4496_v21, %v4527_v48  ;;  %v4549_v6 = vrot.slane %v4520_v46, 4  ;;  %v11644_v16 = vperm.slane %v4564_v44, %v10536_v37  ;;  %v7482_v54 = vld [vmem:[%s12473_s3 + $0x1f0] sm:$0xf0]  ;;  %v8226_v31 = vld [vmem:[%s12473_s3 + $0x2ac] sm:$0xf0] }
 0x48e   : > { %v4587_v7 = vrot.slane %v11625_v59, 4  ;;  %v11648_v8 = vperm.slane %v4526_v61, %v10536_v37  ;;  %v11651_v58 = vperm.slane %v4528_v4, %v10536_v37  ;;  %v4552_v43 = vsel %vm3213_vm0, %v4520_v46, %v4551_v55  ;;  %v7704_v44 = vld [vmem:[%s12473_s3 + $0x3a0] sm:$0xf]  ;;  %v8258_v48 = vld [vmem:[%s12473_s3 + $0x3ac] sm:$0xf0] }
 0x48f   : > { %v4584_v50 = vsel %vm3213_vm0, %v11633_v32, %v4583_v24  ;;  %v4550_v38 = vsel %vm3213_vm0, %v4549_v6, %v4508_v57  ;;  %v11678_v40 = vperm.slane %v4552_v43, %v10536_v37  ;;  %v7273_v15 = vor.u32 %v8150_v53, %v7272_v62  ;;  %v7576_v57 = vld [vmem:[%s12473_s3 + $0x2a0] sm:$0xf]  ;;  %v8164_v61 = vld [vmem:[%s12473_s3 + $0xc4] sm:$0xf]  ;;  %v7338_v4 = vld [vmem:[%s12473_s3 + $0xd0] sm:$0xf0] }
 0x490   : > { %v4588_v30 = vsel %vm3213_vm0, %v11644_v16, %v4587_v7  ;;  %v11675_v0 = vperm.slane %v4550_v38, %v10536_v37  ;;  %v4575_v10 = vrot.slane %v11648_v8, 4  ;;  %v4579_v5 = vrot.slane %v11651_v58, 4  ;;  %v7736_v37 = vld [vmem:[%s12473_s3 + $0x3e0] sm:$0xf]  ;;  %v8254_v38 = vld [vmem:[%s12473_s3 + $0x38c] sm:$0xf0] }
 0x491   : > { %v8341_v33 = vpack.i.bf16 %v4588_v30, %v4584_v50  ;;  %v7401_v14 = vor.u32 %v8182_v3, %v7400_v18  ;;  %5396 = vmatpush.bf16.msra.mxu0 %v7273_v15  ;;  %v7257_v29 = vor.u32 %v8146_v19, %v7256_v17  ;;  %v7609_v34 = vor.u32 %v8234_v1, %v7608_v20  ;;  %v7560_v7 = vld [vmem:[%s12473_s3 + $0x280] sm:$0xf]  ;;  %v8222_v3 = vld [vmem:[%s12473_s3 + $0x28c] sm:$0xf0] }
 0x492   : > { %v4576_v21 = vsel %vm3213_vm0, %v11675_v0, %v4575_v10  ;;  %v4580_v25 = vsel %vm3213_vm0, %v11678_v40, %v4579_v5  ;;  %v7385_v36 = vor.u32 %v8178_v28, %v7384_v12  ;;  %v7737_v22 = vor.u32 %v8266_v26, %v7736_v37  ;;  %v7688_v50 = vld [vmem:[%s12473_s3 + $0x380] sm:$0xf]  ;;  %v8218_v20 = vld [vmem:[%s12473_s3 + $0x26c] sm:$0xf0]  ;;  %v8156_v37 = vld [vmem:[%s12473_s3 + $0x84] sm:$0xf] }
 0x493   : > { %8342 = vrot.lane.b32.xlu1 %v8341_v33, %s8448_s12  ;;  %v8346_v13 = vpack.i.bf16 %v4580_v25, %v4576_v21  ;;  %5409 = vmatpush.bf16.msra.mxu1 %v7401_v14  ;;  %v7593_v51 = vor.u32 %v8230_v27, %v7592_v49  ;;  %v7721_v45 = vor.u32 %v8262_v63, %v7720_v39  ;;  %v4585_v46 = vrot.slane %v11644_v16, 4  ;;  %v7466_v16 = vld [vmem:[%s12473_s3 + $0x1d0] sm:$0xf0]  ;;  %v7544_v10 = vld [vmem:[%s12473_s3 + $0x260] sm:$0xf] }
 0x494   : > { %5417 = vmatpush.bf16.msra.mxu2 %v7609_v34  ;;  %5430 = vmatpush.bf16.msra.mxu3 %v7737_v22  ;;  %v4577_v41 = vrot.slane %v11678_v40, 4  ;;  %v7241_v47 = vor.u32 %v8142_v35, %v7240_v9  ;;  %v4581_v55 = vrot.slane %v11633_v32, 4  ;;  %v4573_v56 = vrot.slane %v11675_v0, 4  ;;  %v8196_v32 = vld [vmem:[%s12473_s3 + $0x1c4] sm:$0xf] }
 0x495   : > { %8347 = vrot.lane.b32.xlu2 %v8346_v13, %s8448_s12  ;;  %5397 = vmatpush.bf16.msra.mxu0 %v7257_v29  ;;  %v7369_v24 = vor.u32 %v8174_v23, %v7368_v42  ;;  %v7357_v62 = vor.u32 %v8168_v11, %v7354_v52  ;;  %v7485_v6 = vor.u32 %v8200_v60, %v7482_v54  ;;  %v7672_v1 = vld [vmem:[%s12473_s3 + $0x360] sm:$0xf]  ;;  %v8250_v33 = vld [vmem:[%s12473_s3 + $0x36c] sm:$0xf0]  ;;  %v7306_v26 = vld [vmem:[%s12473_s3 + $0x90] sm:$0xf0] }
 0x496   : > { %v7577_v53 = vor.u32 %v8226_v31, %v7576_v57  ;;  %v7705_v18 = vor.u32 %v8258_v48, %v7704_v44  ;;  %v7341_v17 = vor.u32 %v8164_v61, %v7338_v4  ;;  %v11778_v43 = vsel %vm3213_vm0, %v4577_v41, %v11651_v58  ;;  %v8160_v58 = vld [vmem:[%s12473_s3 + $0xa4] sm:$0xf]  ;;  %v7434_v27 = vld [vmem:[%s12473_s3 + $0x190] sm:$0xf0]  ;;  %v7528_v25 = vld [vmem:[%s12473_s3 + $0x240] sm:$0xf] }
 0x497   : > { %5410 = vmatpush.bf16.msra.mxu1 %v7385_v36  ;;  %v11782_v19 = vsel %vm3213_vm0, %v4573_v56, %v11648_v8  ;;  %v11786_v12 = vsel %vm3213_vm0, %v4585_v46, %v11625_v59  ;;  %v11790_v28 = vsel %vm3213_vm0, %v4581_v55, %v11619_v2  ;;  %v7469_v30 = vor.u32 %v8196_v32, %v7466_v16  ;;  %v7322_v8 = vld [vmem:[%s12473_s3 + $0xb0] sm:$0xf0]  ;;  %v8192_v59 = vld [vmem:[%s12473_s3 + $0x1a4] sm:$0xf]  ;;  %v8214_v29 = vld [vmem:[%s12473_s3 + $0x24c] sm:$0xf0] }
 0x498   : > { %5418 = vmatpush.bf16.msra.mxu2 %v7593_v51  ;;  %5431 = vmatpush.bf16.msra.mxu3 %v7721_v45  ;;  %v7561_v0 = vor.u32 %v8222_v3, %v7560_v7  ;;  %v7689_v40 = vor.u32 %v8254_v38, %v7688_v50  ;;  %v7450_v2 = vld [vmem:[%s12473_s3 + $0x1b0] sm:$0xf0]  ;;  %v7325_v5 = vor.u32 %v8160_v58, %v7322_v8  ;;  %v8188_v21 = vld [vmem:[%s12473_s3 + $0x184] sm:$0xf]  ;;  %v7656_v34 = vld [vmem:[%s12473_s3 + $0x340] sm:$0xf] }
 0x499   : > { %5398 = vmatpush.bf16.msra.mxu0 %v7241_v47  ;;  %v7453_v15 = vor.u32 %v8192_v59, %v7450_v2  ;;  %v7545_v14 = vor.u32 %v8218_v20, %v7544_v10  ;;  %v7673_v49 = vor.u32 %v8250_v33, %v7672_v1  ;;  %v8246_v9 = vld [vmem:[%s12473_s3 + $0x34c] sm:$0xf0]  ;;  %v7309_v39 = vor.u32 %v8156_v37, %v7306_v26  ;;  %v8152_v36 = vld [vmem:[%s12473_s3 + $0x64] sm:$0xf]  ;;  %v7290_v22 = vld [vmem:[%s12473_s3 + $0x70] sm:$0xf0] }
 0x49a   : > { %v7437_v63 = vor.u32 %v8188_v21, %v7434_v27  ;;  %v7529_v13 = vor.u32 %v8214_v29, %v7528_v25  ;;  %v8184_v35 = vld [vmem:[%s12473_s3 + $0x164] sm:$0xf]  ;;  %v7657_v42 = vor.u32 %v8246_v9, %v7656_v34  ;;  %v7418_v23 = vld [vmem:[%s12473_s3 + $0x170] sm:$0xf0]  ;;  %v7512_v51 = vld [vmem:[%s12473_s3 + $0x220] sm:$0xf]  ;;  %v7293_v45 = vor.u32 %v8152_v36, %v7290_v22 }
 0x49b   : > { %5411 = vmatpush.bf16.msra.mxu1 %v7369_v24  ;;  %v8210_v11 = vld [vmem:[%s12473_s3 + $0x22c] sm:$0xf0]  ;;  %v7640_v52 = vld [vmem:[%s12473_s3 + $0x320] sm:$0xf]  ;;  %v7421_v54 = vor.u32 %v8184_v35, %v7418_v23  ;;  %v8148_v31 = vld [vmem:[%s12473_s3 + $0x44] sm:$0xf] }
 0x49c   : > { %5419 = vmatpush.bf16.msra.mxu2 %v7577_v53  ;;  %5432 = vmatpush.bf16.msra.mxu3 %v7705_v18  ;;  %v8242_v60 = vld [vmem:[%s12473_s3 + $0x32c] sm:$0xf0]  ;;  %v7513_v57 = vor.u32 %v8210_v11, %v7512_v51  ;;  %v7274_v46 = vld [vmem:[%s12473_s3 + $0x50] sm:$0xf0]  ;;  %v8180_v41 = vld [vmem:[%s12473_s3 + $0x144] sm:$0xf] }
 0x49d   : > { %5443 = vmatpush.bf16.msrb.mxu0 %v7357_v62  ;;  %v7641_v47 = vor.u32 %v8242_v60, %v7640_v52  ;;  %v7402_v44 = vld [vmem:[%s12473_s3 + $0x150] sm:$0xf0]  ;;  %v7496_v48 = vld [vmem:[%s12473_s3 + $0x200] sm:$0xf]  ;;  %v8206_v55 = vld [vmem:[%s12473_s3 + $0x20c] sm:$0xf0]  ;;  %v7277_v62 = vor.u32 %v8148_v31, %v7274_v46 }
 0x49e   : > { %v7624_v56 = vld [vmem:[%s12473_s3 + $0x300] sm:$0xf]  ;;  %v8238_v24 = vld [vmem:[%s12473_s3 + $0x30c] sm:$0xf0]  ;;  %v7405_v61 = vor.u32 %v8180_v41, %v7402_v44  ;;  %v7497_v4 = vor.u32 %v8206_v55, %v7496_v48  ;;  %v8144_v53 = vld [vmem:[%s12473_s3 + $0x24] sm:$0xf] }
 0x49f   : > { %5456 = vmatpush.bf16.msrb.mxu1 %v7485_v6  ;;  %v7625_v6 = vor.u32 %v8238_v24, %v7624_v56  ;;  %v7258_v32 = vld [vmem:[%s12473_s3 + $0x30] sm:$0xf0]  ;;  %v8176_v18 = vld [vmem:[%s12473_s3 + $0x124] sm:$0xf]  ;;  %s8398_s12 = sshra.s32 %s5620_s25, 4  ;;  %s8399_s12 = int_to_ptr.hbm [resolvable:$true] %s8398_s12 }
 0x4a0   : > { %5420 = vmatpush.bf16.msra.mxu2 %v7561_v0  ;;  %5433 = vmatpush.bf16.msra.mxu3 %v7689_v40  ;;  %v7261_v16 = vor.u32 %v8144_v53, %v7258_v32  ;;  %v7386_v7 = vld [vmem:[%s12473_s3 + $0x130] sm:$0xf0]  ;;  %v8232_v3 = vld [vmem:[%s12473_s3 + $0x2e4] sm:$0xf]  ;;  %v8171_v53 = vld [vmem:[%s12473_s3 + $0xf4] sm:$0xf0]  ;;  %p8405_p0 = scmp.lt.s32.totalorder %s8399_s12, %s12475_s5 }
 0x4a1   : > { %5444 = vmatpush.bf16.msrb.mxu0 %v7341_v17  ;;  %v7610_v17 = vld [vmem:[%s12473_s3 + $0x2f0] sm:$0xf0]  ;;  %v7389_v50 = vor.u32 %v8176_v18, %v7386_v7  ;;  %v8140_v58 = vld [vmem:[%s12473_s3 + $0x4] sm:$0xf]  ;;  %v7488_v32 = vld [vmem:[%s12473_s3 + $0x1e8] sm:$0xf] }
 0x4a2   : > { %v7613_v38 = vor.u32 %v8232_v3, %v7610_v17  ;;  %v7738_v0 = vld [vmem:[%s12473_s3 + $0x3f0] sm:$0xf0]  ;;  %v8172_v40 = vld [vmem:[%s12473_s3 + $0x104] sm:$0xf]  ;;  %v8203_v18 = vld [vmem:[%s12473_s3 + $0x1f4] sm:$0xf0] }
 0x4a3   : > { %5457 = vmatpush.bf16.msrb.mxu1 %v7469_v30  ;;  %v8264_v30 = vld [vmem:[%s12473_s3 + $0x3e4] sm:$0xf]  ;;  %v7242_v59 = vld [vmem:[%s12473_s3 + $0x10] sm:$0xf0]  ;;  %s8400_s22 = scalar_lea.hbm %s8399_s12, 32 }
 0x4a4   : > { %5421 = vmatpush.bf16.msra.mxu2 %v7545_v14  ;;  %5434 = vmatpush.bf16.msra.mxu3 %v7673_v49  ;;  %v7741_v8 = vor.u32 %v8264_v30, %v7738_v0  ;;  %v7370_v2 = vld [vmem:[%s12473_s3 + $0x110] sm:$0xf0]  ;;  %v7245_v10 = vor.u32 %v8140_v58, %v7242_v59  ;;  %v8228_v1 = vld [vmem:[%s12473_s3 + $0x2c4] sm:$0xf]  ;;  %v7489_v0 = vor.u32 %v8203_v18, %v7488_v32  ;;  %v7344_v58 = vld [vmem:[%s12473_s3 + $0xc8] sm:$0xf]  ;;  %p8401_p11 = scmp.ne.s32.totalorder %s8399_s12, %s8400_s22  ;;  %p8406_p1 = scmp.lt.s32.totalorder %s8404_s7, %s8400_s22 }
 0x4a5   : > { %5445 = vmatpush.bf16.msrb.mxu0 %v7325_v5  ;;  %v7373_v20 = vor.u32 %v8172_v40, %v7370_v2  ;;  %v7594_v33 = vld [vmem:[%s12473_s3 + $0x2d0] sm:$0xf0]  ;;  %v8260_v5 = vld [vmem:[%s12473_s3 + $0x3c4] sm:$0xf]  ;;  %v8167_v40 = vld [vmem:[%s12473_s3 + $0xd4] sm:$0xf0] }
 0x4a6   : > { %v7722_v14 = vld [vmem:[%s12473_s3 + $0x3d0] sm:$0xf0]  ;;  %v8224_v26 = vld [vmem:[%s12473_s3 + $0x2a4] sm:$0xf]  ;;  %v7345_v2 = vor.u32 %v8167_v40, %v7344_v58  ;;  %v7248_v18 = vld [vmem:[%s12473_s3 + $0x8] sm:$0xf]  ;;  %p8402_p12 = pnand %p8401_p11, %p8519_p5  ;;  %p8407_p2 = por %p8406_p1, %p8405_p0 }
 0x4a7   : > { %5458 = vmatpush.bf16.msrb.mxu1 %v7453_v15  ;;  %v7597_v15 = vor.u32 %v8228_v1, %v7594_v33  ;;  %v7725_v37 = vor.u32 %v8260_v5, %v7722_v14  ;;  %v7578_v21 = vld [vmem:[%s12473_s3 + $0x2b0] sm:$0xf0]  ;;  %v8256_v49 = vld [vmem:[%s12473_s3 + $0x3a4] sm:$0xf]  ;;  %v8163_v1 = vld [vmem:[%s12473_s3 + $0xb4] sm:$0xf0] }
 0x4a8   : > { %5422 = vmatpush.bf16.msra.mxu2 %v7529_v13  ;;  %5435 = vmatpush.bf16.msra.mxu3 %v7657_v42  ;;  %v7706_v27 = vld [vmem:[%s12473_s3 + $0x3b0] sm:$0xf0]  ;;  %v7581_v25 = vor.u32 %v8224_v26, %v7578_v21  ;;  %v8220_v34 = vld [vmem:[%s12473_s3 + $0x284] sm:$0xf]  ;;  %v7456_v33 = vld [vmem:[%s12473_s3 + $0x1a8] sm:$0xf]  ;;  %p8403_p13 = pneg %p8402_p12 }
 0x4a9   : > { %5446 = vmatpush.bf16.msrb.mxu0 %v7309_v39  ;;  %v7709_v29 = vor.u32 %v8256_v49, %v7706_v27  ;;  %v7562_v9 = vld [vmem:[%s12473_s3 + $0x290] sm:$0xf0]  ;;  %v8252_v39 = vld [vmem:[%s12473_s3 + $0x384] sm:$0xf]  ;;  %v8195_v5 = vld [vmem:[%s12473_s3 + $0x1b4] sm:$0xf0] }
 0x4aa   : > { %v7565_v13 = vor.u32 %v8220_v34, %v7562_v9  ;;  %v8216_v22 = vld [vmem:[%s12473_s3 + $0x264] sm:$0xf]  ;;  %v7546_v35 = vld [vmem:[%s12473_s3 + $0x270] sm:$0xf0]  ;;  %v7457_v14 = vor.u32 %v8195_v5, %v7456_v33  ;;  %v8159_v26 = vld [vmem:[%s12473_s3 + $0x94] sm:$0xf0]  ;;  %p8408_p3 = pnand %p8407_p2, %p8403_p13 }
 0x4ab   : > { %5459 = vmatpush.bf16.msrb.mxu1 %v7437_v63  ;;  %v7690_v63 = vld [vmem:[%s12473_s3 + $0x390] sm:$0xf0]  ;;  %v8248_v42 = vld [vmem:[%s12473_s3 + $0x364] sm:$0xf]  ;;  %v7549_v51 = vor.u32 %v8216_v22, %v7546_v35  ;;  %v7440_v21 = vld [vmem:[%s12473_s3 + $0x188] sm:$0xf] }
 0x4ac   : > { %5423 = vmatpush.bf16.msra.mxu2 %v7513_v57  ;;  %5436 = vmatpush.bf16.msra.mxu3 %v7641_v47  ;;  %v7693_v36 = vor.u32 %v8252_v39, %v7690_v63  ;;  %v7674_v23 = vld [vmem:[%s12473_s3 + $0x370] sm:$0xf0]  ;;  %v8212_v52 = vld [vmem:[%s12473_s3 + $0x244] sm:$0xf]  ;;  %v8191_v49 = vld [vmem:[%s12473_s3 + $0x194] sm:$0xf0] }
 0x4ad   : > { %5447 = vmatpush.bf16.msrb.mxu0 %v7293_v45  ;;  %v7677_v11 = vor.u32 %v8248_v42, %v7674_v23  ;;  %v7530_v60 = vld [vmem:[%s12473_s3 + $0x250] sm:$0xf0]  ;;  %v8244_v45 = vld [vmem:[%s12473_s3 + $0x344] sm:$0xf]  ;;  %v8155_v34 = vld [vmem:[%s12473_s3 + $0x74] sm:$0xf0] }
 0x4ae   : > { %v7533_v57 = vor.u32 %v8212_v52, %v7530_v60  ;;  %v8208_v46 = vld [vmem:[%s12473_s3 + $0x224] sm:$0xf]  ;;  %v7514_v41 = vld [vmem:[%s12473_s3 + $0x230] sm:$0xf0]  ;;  %v7424_v9 = vld [vmem:[%s12473_s3 + $0x168] sm:$0xf] }
 0x4af   : > { %5460 = vmatpush.bf16.msrb.mxu1 %v7421_v54  ;;  %v7658_v54 = vld [vmem:[%s12473_s3 + $0x350] sm:$0xf0]  ;;  %v8240_v47 = vld [vmem:[%s12473_s3 + $0x324] sm:$0xf]  ;;  %v7517_v48 = vor.u32 %v8208_v46, %v7514_v41  ;;  %v8187_v39 = vld [vmem:[%s12473_s3 + $0x174] sm:$0xf0] }
 0x4b0   : > { %5424 = vmatpush.bf16.msra.mxu2 %v7497_v4  ;;  %5437 = vmatpush.bf16.msra.mxu3 %v7625_v6  ;;  %v7661_v31 = vor.u32 %v8244_v45, %v7658_v54  ;;  %v7642_v44 = vld [vmem:[%s12473_s3 + $0x330] sm:$0xf0]  ;;  %v8204_v56 = vld [vmem:[%s12473_s3 + $0x204] sm:$0xf]  ;;  %v7360_v4 = vld [vmem:[%s12473_s3 + $0xe8] sm:$0xf] }
 0x4b1   : > { %5448 = vmatpush.bf16.msrb.mxu0 %v7277_v62  ;;  %v7645_v55 = vor.u32 %v8240_v47, %v7642_v44  ;;  %v7498_v24 = vld [vmem:[%s12473_s3 + $0x210] sm:$0xf0]  ;;  %v8236_v62 = vld [vmem:[%s12473_s3 + $0x304] sm:$0xf]  ;;  %v7361_v30 = vor.u32 %v8171_v53, %v7360_v4  ;;  %v8151_v22 = vld [vmem:[%s12473_s3 + $0x54] sm:$0xf0] }
 0x4b2   : > { %v7408_v35 = vld [vmem:[%s12473_s3 + $0x148] sm:$0xf]  ;;  %v8183_v42 = vld [vmem:[%s12473_s3 + $0x154] sm:$0xf0]  ;;  %v7490_v58 = vld [vmem:[%s12473_s3 + $0x1f8] sm:$0xf0] }
 0x4b3   : > { %5461 = vmatpush.bf16.msrb.mxu1 %v7405_v61  ;;  %v7626_v61 = vld [vmem:[%s12473_s3 + $0x310] sm:$0xf0]  ;;  %v8235_v60 = vld [vmem:[%s12473_s3 + $0x2f4] sm:$0xf0]  ;;  %v7744_v45 = vld [vmem:[%s12473_s3 + $0x3e8] sm:$0xf] }
 0x4b4   : > { %5469 = vmatpush.bf16.msrb.mxu2 %v7613_v38  ;;  %5482 = vmatpush.bf16.msrb.mxu3 %v7741_v8  ;;  %v7629_v17 = vor.u32 %v8236_v62, %v7626_v61  ;;  %v8267_v54 = vld [vmem:[%s12473_s3 + $0x3f4] sm:$0xf0]  ;;  %v7264_v46 = vld [vmem:[%s12473_s3 + $0x28] sm:$0xf]  ;;  %v8165_v5 = vld [vmem:[%s12473_s3 + $0xcc] sm:$0xf] }
 0x4b5   : > { %5449 = vmatpush.bf16.msrb.mxu0 %v7261_v16  ;;  %v7501_v16 = vor.u32 %v8204_v56, %v7498_v24  ;;  %v8147_v44 = vld [vmem:[%s12473_s3 + $0x34] sm:$0xf0]  ;;  %v7745_v62 = vor.u32 %v8267_v54, %v7744_v45  ;;  %v7728_v4 = vld [vmem:[%s12473_s3 + $0x3c8] sm:$0xf]  ;;  %v8157_v45 = vld [vmem:[%s12473_s3 + $0x8c] sm:$0xf] }
 0x4b6   : > { %v8231_v61 = vld [vmem:[%s12473_s3 + $0x2d4] sm:$0xf0]  ;;  %v7265_v53 = vor.u32 %v8147_v44, %v7264_v46  ;;  %v7584_v40 = vld [vmem:[%s12473_s3 + $0x2a8] sm:$0xf]  ;;  %v7314_v54 = vld [vmem:[%s12473_s3 + $0x98] sm:$0xf0] }
 0x4b7   : > { %5462 = vmatpush.bf16.msrb.mxu1 %v7389_v50  ;;  %v8215_v44 = vld [vmem:[%s12473_s3 + $0x254] sm:$0xf0] }
 0x4b8   : > { %5470 = vmatpush.bf16.msrb.mxu2 %v7597_v15  ;;  %5483 = vmatpush.bf16.msrb.mxu3 %v7725_v37  ;;  %v7312_v37 = vld [vmem:[%s12473_s3 + $0x88] sm:$0xf] }
 0x4b9   : > { %5450 = vmatpush.bf16.msrb.mxu0 %v7245_v10  ;;  %v7313_v27 = vor.u32 %v8159_v26, %v7312_v37  ;;  %v8197_v26 = vld [vmem:[%s12473_s3 + $0x1cc] sm:$0xf] }
 0x4bb   : > { %5463 = vmatpush.bf16.msrb.mxu1 %v7373_v20  ;;  %v7328_v20 = vld [vmem:[%s12473_s3 + $0xa8] sm:$0xf] }
 0x4bc   : > { %5471 = vmatpush.bf16.msrb.mxu2 %v7581_v25  ;;  %5484 = vmatpush.bf16.msrb.mxu3 %v7709_v29  ;;  %v7329_v15 = vor.u32 %v8163_v1, %v7328_v20  ;;  %v7441_v25 = vor.u32 %v8191_v49, %v7440_v21  ;;  %v7296_v29 = vld [vmem:[%s12473_s3 + $0x68] sm:$0xf]  ;;  %v7474_v21 = vld [vmem:[%s12473_s3 + $0x1d8] sm:$0xf0] }
 0x4bd   : > { %v7297_v63 = vor.u32 %v8155_v34, %v7296_v29  ;;  %v7568_v49 = vld [vmem:[%s12473_s3 + $0x288] sm:$0xf]  ;;  %v8255_v29 = vld [vmem:[%s12473_s3 + $0x394] sm:$0xf0] }
 0x4c0   : > { %5472 = vmatpush.bf16.msrb.mxu2 %v7565_v13  ;;  %5485 = vmatpush.bf16.msrb.mxu3 %v7693_v36  ;;  %v7425_v13 = vor.u32 %v8187_v39, %v7424_v9  ;;  %v7280_v36 = vld [vmem:[%s12473_s3 + $0x48] sm:$0xf]  ;;  %v7477_v9 = vor.u32 %v8197_v26, %v7474_v21  ;;  %v8161_v39 = vld [vmem:[%s12473_s3 + $0xac] sm:$0xf]  ;;  %v7746_v26 = vld [vmem:[%s12473_s3 + $0x3f8] sm:$0xf0] }
 0x4c1   : > { %v7266_v21 = vld [vmem:[%s12473_s3 + $0x38] sm:$0xf0] }
 0x4c4   : > { %5473 = vmatpush.bf16.msrb.mxu2 %v7549_v51  ;;  %5486 = vmatpush.bf16.msrb.mxu3 %v7677_v11  ;;  %v7616_v51 = vld [vmem:[%s12473_s3 + $0x2e8] sm:$0xf] }
 0x4c8   : > { %5474 = vmatpush.bf16.msrb.mxu2 %v7533_v57  ;;  %5487 = vmatpush.bf16.msrb.mxu3 %v7661_v31  ;;  %v7281_v57 = vor.u32 %v8151_v22, %v7280_v36  ;;  %v7409_v31 = vor.u32 %v8183_v42, %v7408_v35  ;;  %v7330_v36 = vld [vmem:[%s12473_s3 + $0xb8] sm:$0xf0]  ;;  %v8193_v22 = vld [vmem:[%s12473_s3 + $0x1ac] sm:$0xf]  ;;  %v7552_v42 = vld [vmem:[%s12473_s3 + $0x268] sm:$0xf] }
 0x4c9   : > { %v7458_v35 = vld [vmem:[%s12473_s3 + $0x1b8] sm:$0xf0] }
 0x4cc   : > { %5475 = vmatpush.bf16.msrb.mxu2 %v7517_v48  ;;  %5488 = vmatpush.bf16.msrb.mxu3 %v7645_v55  ;;  %v7392_v48 = vld [vmem:[%s12473_s3 + $0x128] sm:$0xf]  ;;  %v8179_v55 = vld [vmem:[%s12473_s3 + $0x134] sm:$0xf0] }
 0x4cd   : > { %v7393_v32 = vor.u32 %v8179_v55, %v7392_v48  ;;  %v7664_v48 = vld [vmem:[%s12473_s3 + $0x348] sm:$0xf]  ;;  %v8247_v55 = vld [vmem:[%s12473_s3 + $0x354] sm:$0xf0] }
 0x4d0   : > { %5476 = vmatpush.bf16.msrb.mxu2 %v7501_v16  ;;  %5489 = vmatpush.bf16.msrb.mxu3 %v7629_v17  ;;  %v8143_v16 = vld [vmem:[%s12473_s3 + $0x14] sm:$0xf0]  ;;  %v8169_v17 = vld [vmem:[%s12473_s3 + $0xec] sm:$0xf] }
 0x4ef   : > { %v8348_v6 = vpop.permute.xlu2 %8347 }
 0x4f0   : > { %v8350_v7 = vunpack.i.h.bf16 %v8348_v6  ;;  %v8349_v3 = vunpack.i.l.bf16 %v8348_v6  ;;  %v8263_v6 = vld [vmem:[%s12473_s3 + $0x3d4] sm:$0xf0] }
 0x4f2   : > { %v4606_v50 = vsel %vm3941_vm1, %v11778_v43, %v8350_v7  ;;  %v4605_v38 = vsel %vm3941_vm1, %v11782_v19, %v8349_v3  ;;  %v7472_v43 = vld [vmem:[%s12473_s3 + $0x1c8] sm:$0xf]  ;;  %v8199_v19 = vld [vmem:[%s12473_s3 + $0x1d4] sm:$0xf0] }
 0x4f3   : > { %v12027_v8 = vpack.c.bf16 %v4606_v50, %v4606_v50  ;;  %v12029_v59 = vpack.c.bf16 %v4605_v38, %v4605_v38  ;;  %v7473_v10 = vor.u32 %v8199_v19, %v7472_v43  ;;  %v7376_v7 = vld [vmem:[%s12473_s3 + $0x108] sm:$0xf]  ;;  %v8175_v3 = vld [vmem:[%s12473_s3 + $0x114] sm:$0xf0]  ;;  %v7362_v50 = vld [vmem:[%s12473_s3 + $0xf8] sm:$0xf0] }
 0x4f4   : > { %v8227_v43 = vld [vmem:[%s12473_s3 + $0x2b4] sm:$0xf0]  ;;  %v7712_v19 = vld [vmem:[%s12473_s3 + $0x3a8] sm:$0xf]  ;;  %v7377_v20 = vor.u32 %v8175_v3, %v7376_v7  ;;  %v7365_v1 = vor.u32 %v8169_v17, %v7362_v50 }
 0x4f5   : > { %5399 = vmatmul.bf16.vlgmr.msra.gmra.mxu0 %v12029_v59  ;;  %5412 = vmatmul.bf16.vlgmr.msra.gmra.mxu1 %v12027_v8  ;;  %v7648_v7 = vld [vmem:[%s12473_s3 + $0x328] sm:$0xf]  ;;  %v8243_v3 = vld [vmem:[%s12473_s3 + $0x334] sm:$0xf0] }
 0x4f6   : > { %5495 = vmatpush.bf16.msra.mxu0 %v7361_v30  ;;  %5508 = vmatpush.bf16.msra.mxu1 %v7489_v0  ;;  %v7729_v30 = vor.u32 %v8263_v6, %v7728_v4  ;;  %v8201_v0 = vld [vmem:[%s12473_s3 + $0x1ec] sm:$0xf]  ;;  %v7426_v6 = vld [vmem:[%s12473_s3 + $0x178] sm:$0xf0] }
 0x4f7   : > { %v7493_v33 = vor.u32 %v8201_v0, %v7490_v58  ;;  %v8185_v4 = vld [vmem:[%s12473_s3 + $0x16c] sm:$0xf]  ;;  %v7410_v58 = vld [vmem:[%s12473_s3 + $0x158] sm:$0xf0] }
 0x4f8   : > { %v7429_v50 = vor.u32 %v8185_v4, %v7426_v6  ;;  %v8181_v0 = vld [vmem:[%s12473_s3 + $0x14c] sm:$0xf]  ;;  %v7554_v6 = vld [vmem:[%s12473_s3 + $0x278] sm:$0xf0] }
 0x4f9   : > { %v8217_v4 = vld [vmem:[%s12473_s3 + $0x26c] sm:$0xf] }
 0x4fa   : > { %5496 = vmatpush.bf16.msra.mxu0 %v7345_v2  ;;  %5509 = vmatpush.bf16.msra.mxu1 %v7473_v10  ;;  %v8259_v2 = vld [vmem:[%s12473_s3 + $0x3b4] sm:$0xf0]  ;;  %v7249_v10 = vor.u32 %v8143_v16, %v7248_v18  ;;  %v7520_v18 = vld [vmem:[%s12473_s3 + $0x228] sm:$0xf] }
 0x4fb   : > { %v7713_v37 = vor.u32 %v8259_v2, %v7712_v19  ;;  %v8211_v16 = vld [vmem:[%s12473_s3 + $0x234] sm:$0xf0]  ;;  %v7504_v19 = vld [vmem:[%s12473_s3 + $0x208] sm:$0xf] }
 0x4fc   : > { %v8207_v2 = vld [vmem:[%s12473_s3 + $0x214] sm:$0xf0] }
 0x4fe   : > { %5497 = vmatpush.bf16.msra.mxu0 %v7329_v15  ;;  %5510 = vmatpush.bf16.msra.mxu1 %v7457_v14  ;;  %v7346_v15 = vld [vmem:[%s12473_s3 + $0xd8] sm:$0xf0]  ;;  %v7585_v14 = vor.u32 %v8227_v43, %v7584_v40  ;;  %v7521_v40 = vor.u32 %v8211_v16, %v7520_v18  ;;  %v7649_v43 = vor.u32 %v8243_v3, %v7648_v7  ;;  %v8213_v18 = vld [vmem:[%s12473_s3 + $0x24c] sm:$0xf] }
 0x4ff   : > { %v7349_v34 = vor.u32 %v8165_v5, %v7346_v15  ;;  %v7413_v15 = vor.u32 %v8181_v0, %v7410_v58  ;;  %v7538_v16 = vld [vmem:[%s12473_s3 + $0x258] sm:$0xf0]  ;;  %v8245_v7 = vld [vmem:[%s12473_s3 + $0x34c] sm:$0xf] }
 0x500   : > { %v7666_v3 = vld [vmem:[%s12473_s3 + $0x358] sm:$0xf0]  ;;  %v8241_v0 = vld [vmem:[%s12473_s3 + $0x32c] sm:$0xf] }
 0x501   : > { %v7650_v58 = vld [vmem:[%s12473_s3 + $0x338] sm:$0xf0] }
 0x502   : > { %5498 = vmatpush.bf16.msra.mxu0 %v7313_v27  ;;  %5511 = vmatpush.bf16.msra.mxu1 %v7441_v25  ;;  %v8223_v27 = vld [vmem:[%s12473_s3 + $0x294] sm:$0xf0]  ;;  %v7696_v25 = vld [vmem:[%s12473_s3 + $0x388] sm:$0xf] }
 0x505   : > { %v8343_v23 = vpop.permute.xlu1 %8342  ;;  %5451 = vmatmul.bf16.vlgmr.msrb.gmra.mxu0 %v12029_v59  ;;  %5464 = vmatmul.bf16.vlgmr.msrb.gmra.mxu1 %v12027_v8 }
 0x506   : > { %v8345_v11 = vunpack.i.h.bf16 %v8343_v23  ;;  %v8344_v52 = vunpack.i.l.bf16 %v8343_v23  ;;  %5499 = vmatpush.bf16.msra.mxu0 %v7297_v63  ;;  %5512 = vmatpush.bf16.msra.mxu1 %v7425_v13  ;;  %v7569_v63 = vor.u32 %v8223_v27, %v7568_v49  ;;  %v7697_v13 = vor.u32 %v8255_v29, %v7696_v25  ;;  %v8219_v23 = vld [vmem:[%s12473_s3 + $0x274] sm:$0xf0]  ;;  %v8177_v49 = vld [vmem:[%s12473_s3 + $0x12c] sm:$0xf]  ;;  %v7394_v27 = vld [vmem:[%s12473_s3 + $0x138] sm:$0xf0] }
 0x507   : > { %v7553_v46 = vor.u32 %v8219_v23, %v7552_v42  ;;  %v7505_v25 = vor.u32 %v8207_v2, %v7504_v19  ;;  %v7730_v42 = vld [vmem:[%s12473_s3 + $0x3d8] sm:$0xf0]  ;;  %v8205_v19 = vld [vmem:[%s12473_s3 + $0x20c] sm:$0xf] }
 0x508   : > { %v4608_v41 = vsel %vm3941_vm1, %v11786_v12, %v8345_v11  ;;  %v4607_v47 = vsel %vm3941_vm1, %v11790_v28, %v8344_v52  ;;  %v7617_v12 = vor.u32 %v8235_v60, %v7616_v51  ;;  %v7600_v28 = vld [vmem:[%s12473_s3 + $0x2c8] sm:$0xf]  ;;  %v8251_v11 = vld [vmem:[%s12473_s3 + $0x374] sm:$0xf0]  ;;  %v7333_v52 = vor.u32 %v8161_v39, %v7330_v36  ;;  %v8141_v39 = vld [vmem:[%s12473_s3 + $0xc] sm:$0xf] }
 0x509   : > { %v12120_v56 = vpack.c.bf16 %v4608_v41, %v4608_v41  ;;  %v12122_v24 = vpack.c.bf16 %v4607_v47, %v4607_v47  ;;  %v7601_v38 = vor.u32 %v8231_v61, %v7600_v28  ;;  %v7680_v51 = vld [vmem:[%s12473_s3 + $0x368] sm:$0xf]  ;;  %v7461_v60 = vor.u32 %v8193_v22, %v7458_v35  ;;  %v8153_v28 = vld [vmem:[%s12473_s3 + $0x6c] sm:$0xf]  ;;  %v7298_v61 = vld [vmem:[%s12473_s3 + $0x78] sm:$0xf0] }
 0x50a   : > { %5500 = vmatpush.bf16.msra.mxu0 %v7281_v57  ;;  %5513 = vmatpush.bf16.msra.mxu1 %v7409_v31  ;;  %v8189_v57 = vld [vmem:[%s12473_s3 + $0x18c] sm:$0xf]  ;;  %v7442_v31 = vld [vmem:[%s12473_s3 + $0x198] sm:$0xf0]  ;;  %v7681_v41 = vor.u32 %v8251_v11, %v7680_v51  ;;  %v7536_v47 = vld [vmem:[%s12473_s3 + $0x248] sm:$0xf]  ;;  %v7301_v17 = vor.u32 %v8153_v28, %v7298_v61  ;;  %v7397_v36 = vor.u32 %v8177_v49, %v7394_v27 }
 0x50b   : > { %5425 = vmatmul.bf16.vlgmr.msra.gmra.mxu2 %v12122_v24  ;;  %5438 = vmatmul.bf16.vlgmr.msra.gmra.mxu3 %v12120_v56  ;;  %v7602_v22 = vld [vmem:[%s12473_s3 + $0x2d8] sm:$0xf0]  ;;  %v8261_v35 = vld [vmem:[%s12473_s3 + $0x3cc] sm:$0xf] }
 0x50c   : > { %5521 = vmatpush.bf16.msra.mxu2 %v7617_v12  ;;  %5534 = vmatpush.bf16.msra.mxu3 %v7745_v62  ;;  %v7317_v12 = vor.u32 %v8157_v45, %v7314_v54  ;;  %v7445_v62 = vor.u32 %v8189_v57, %v7442_v31  ;;  %v7250_v23 = vld [vmem:[%s12473_s3 + $0x18] sm:$0xf0]  ;;  %v8173_v51 = vld [vmem:[%s12473_s3 + $0x10c] sm:$0xf] }
 0x50d   : > { %v7378_v11 = vld [vmem:[%s12473_s3 + $0x118] sm:$0xf0]  ;;  %v7253_v45 = vor.u32 %v8141_v39, %v7250_v23  ;;  %v8225_v57 = vld [vmem:[%s12473_s3 + $0x2ac] sm:$0xf] }
 0x50e   : > { %5501 = vmatpush.bf16.msra.mxu0 %v7265_v53  ;;  %5514 = vmatpush.bf16.msra.mxu1 %v7393_v32  ;;  %v7537_v53 = vor.u32 %v8215_v44, %v7536_v47  ;;  %v7665_v32 = vor.u32 %v8247_v55, %v7664_v48  ;;  %v7381_v54 = vor.u32 %v8173_v51, %v7378_v11  ;;  %v7586_v31 = vld [vmem:[%s12473_s3 + $0x2b8] sm:$0xf0]  ;;  %v8221_v48 = vld [vmem:[%s12473_s3 + $0x28c] sm:$0xf] }
 0x50f   : > { %v7589_v47 = vor.u32 %v8225_v57, %v7586_v31  ;;  %v7570_v55 = vld [vmem:[%s12473_s3 + $0x298] sm:$0xf0] }
 0x510   : > { %5522 = vmatpush.bf16.msra.mxu2 %v7601_v38  ;;  %5535 = vmatpush.bf16.msra.mxu3 %v7729_v30  ;;  %v8149_v38 = vld [vmem:[%s12473_s3 + $0x4c] sm:$0xf]  ;;  %v7282_v30 = vld [vmem:[%s12473_s3 + $0x58] sm:$0xf0]  ;;  %v7573_v28 = vor.u32 %v8221_v48, %v7570_v55 }
 0x511   : > { %v7285_v5 = vor.u32 %v8149_v38, %v7282_v30  ;;  %v8209_v38 = vld [vmem:[%s12473_s3 + $0x22c] sm:$0xf]  ;;  %v7522_v30 = vld [vmem:[%s12473_s3 + $0x238] sm:$0xf0] }
 0x512   : > { %5502 = vmatpush.bf16.msra.mxu0 %v7249_v10  ;;  %5515 = vmatpush.bf16.msra.mxu1 %v7377_v20  ;;  %v7632_v10 = vld [vmem:[%s12473_s3 + $0x308] sm:$0xf]  ;;  %v8239_v20 = vld [vmem:[%s12473_s3 + $0x314] sm:$0xf0]  ;;  %v7506_v2 = vld [vmem:[%s12473_s3 + $0x218] sm:$0xf0] }
 0x513   : > { %v7633_v29 = vor.u32 %v8239_v20, %v7632_v10  ;;  %v8237_v10 = vld [vmem:[%s12473_s3 + $0x30c] sm:$0xf]  ;;  %v7634_v20 = vld [vmem:[%s12473_s3 + $0x318] sm:$0xf0] }
 0x514   : > { %5523 = vmatpush.bf16.msra.mxu2 %v7585_v14  ;;  %5536 = vmatpush.bf16.msra.mxu3 %v7713_v37  ;;  %v7618_v14 = vld [vmem:[%s12473_s3 + $0x2f8] sm:$0xf0]  ;;  %v8265_v37 = vld [vmem:[%s12473_s3 + $0x3ec] sm:$0xf] }
 0x515   : > { %5503 = vmatmul.bf16.vlgmr.msra.gmra.mxu0 %v12029_v59  ;;  %5516 = vmatmul.bf16.vlgmr.msra.gmra.mxu1 %v12027_v8 }
 0x516   : > { %5547 = vmatpush.bf16.msrb.mxu0 %v7365_v1  ;;  %5560 = vmatpush.bf16.msrb.mxu1 %v7493_v33  ;;  %v8145_v1 = vld [vmem:[%s12473_s3 + $0x2c] sm:$0xf] }
 0x517   : > { %v8233_v33 = vld [vmem:[%s12473_s3 + $0x2ec] sm:$0xf] }
 0x518   : > { %5524 = vmatpush.bf16.msra.mxu2 %v7569_v63  ;;  %5537 = vmatpush.bf16.msra.mxu3 %v7697_v13  ;;  %v8229_v63 = vld [vmem:[%s12473_s3 + $0x2cc] sm:$0xf]  ;;  %v7269_v13 = vor.u32 %v8145_v1, %v7266_v21  ;;  %v7509_v1 = vor.u32 %v8205_v19, %v7506_v2 }
 0x51a   : > { %5548 = vmatpush.bf16.msrb.mxu0 %v7349_v34  ;;  %5561 = vmatpush.bf16.msrb.mxu1 %v7477_v9  ;;  %v7621_v34 = vor.u32 %v8233_v33, %v7618_v14  ;;  %v7749_v9 = vor.u32 %v8265_v37, %v7746_v26  ;;  %v7637_v33 = vor.u32 %v8237_v10, %v7634_v20  ;;  %v4741_v26 = vld [vmem:[%s12474_s4] sm:$0xf] }
 0x51b   : > { %5477 = vmatmul.bf16.vlgmr.msrb.gmra.mxu2 %v12122_v24  ;;  %5490 = vmatmul.bf16.vlgmr.msrb.gmra.mxu3 %v12120_v56  ;;  %v4743_v27 = vperm.slane %v4741_v26, 0  ;;  %v4745_v31 = vperm.slane %v4741_v26, 2 }
 0x51c   : > { %5525 = vmatpush.bf16.msra.mxu2 %v7553_v46  ;;  %5538 = vmatpush.bf16.msra.mxu3 %v7681_v41  ;;  %v8257_v46 = vld [vmem:[%s12473_s3 + $0x3ac] sm:$0xf]  ;;  %v7714_v41 = vld [vmem:[%s12473_s3 + $0x3b8] sm:$0xf0] }
 0x51d   : > { %v7717_v44 = vor.u32 %v8257_v46, %v7714_v41 }
 0x51e   : > { %5549 = vmatpush.bf16.msrb.mxu0 %v7333_v52  ;;  %5562 = vmatpush.bf16.msrb.mxu1 %v7461_v60  ;;  %v7605_v52 = vor.u32 %v8229_v63, %v7602_v22  ;;  %v7733_v60 = vor.u32 %v8261_v35, %v7730_v42  ;;  %v4744_v22 = vperm.slane %v4741_v26, 1 }
 0x520   : > { %5526 = vmatpush.bf16.msra.mxu2 %v7537_v53  ;;  %5539 = vmatpush.bf16.msra.mxu3 %v7665_v32  ;;  %v8249_v53 = vld [vmem:[%s12473_s3 + $0x36c] sm:$0xf] }
 0x522   : > { %5550 = vmatpush.bf16.msrb.mxu0 %v7317_v12  ;;  %5563 = vmatpush.bf16.msrb.mxu1 %v7445_v62  ;;  %v8253_v12 = vld [vmem:[%s12473_s3 + $0x38c] sm:$0xf]  ;;  %v7698_v62 = vld [vmem:[%s12473_s3 + $0x398] sm:$0xf0] }
 0x523   : > { %v7701_v61 = vor.u32 %v8253_v12, %v7698_v62 }
 0x524   : > { %5527 = vmatpush.bf16.msra.mxu2 %v7521_v40  ;;  %5540 = vmatpush.bf16.msra.mxu3 %v7649_v43  ;;  %v7525_v40 = vor.u32 %v8209_v38, %v7522_v30  ;;  %v7653_v43 = vor.u32 %v8241_v0, %v7650_v58 }
 0x526   : > { %5551 = vmatpush.bf16.msrb.mxu0 %v7301_v17  ;;  %5564 = vmatpush.bf16.msrb.mxu1 %v7429_v50  ;;  %v7541_v17 = vor.u32 %v8213_v18, %v7538_v16  ;;  %v7669_v50 = vor.u32 %v8245_v7, %v7666_v3 }
 0x528   : > { %5528 = vmatpush.bf16.msra.mxu2 %v7505_v25  ;;  %5541 = vmatpush.bf16.msra.mxu3 %v7633_v29 }
 0x52a   : > { %5552 = vmatpush.bf16.msrb.mxu0 %v7285_v5  ;;  %5565 = vmatpush.bf16.msrb.mxu1 %v7413_v15 }
 0x52b   : > { %5529 = vmatmul.bf16.vlgmr.msra.gmra.mxu2 %v12122_v24  ;;  %5542 = vmatmul.bf16.vlgmr.msra.gmra.mxu3 %v12120_v56 }
 0x52c   : > { %5573 = vmatpush.bf16.msrb.mxu2 %v7621_v34  ;;  %5586 = vmatpush.bf16.msrb.mxu3 %v7749_v9 }
 0x52e   : > { %5553 = vmatpush.bf16.msrb.mxu0 %v7269_v13  ;;  %5566 = vmatpush.bf16.msrb.mxu1 %v7397_v36 }
 0x530   : > { %5574 = vmatpush.bf16.msrb.mxu2 %v7605_v52  ;;  %5587 = vmatpush.bf16.msrb.mxu3 %v7733_v60 }
 0x532   : > { %5554 = vmatpush.bf16.msrb.mxu0 %v7253_v45  ;;  %5567 = vmatpush.bf16.msrb.mxu1 %v7381_v54 }
 0x534   : > { %5575 = vmatpush.bf16.msrb.mxu2 %v7589_v47  ;;  %5588 = vmatpush.bf16.msrb.mxu3 %v7717_v44 }
 0x535   : > { %5555 = vmatmul.bf16.vlgmr.msrb.gmra.mxu0 %v12029_v59  ;;  %5568 = vmatmul.bf16.vlgmr.msrb.gmra.mxu1 %v12027_v8  ;;  %v7682_v8 = vld [vmem:[%s12473_s3 + $0x378] sm:$0xf0]  ;;  %v7557_v59 = vor.u32 %v8217_v4, %v7554_v6 }
 0x536   : > { %v7685_v32 = vor.u32 %v8249_v53, %v7682_v8 }
 0x538   : > { %5576 = vmatpush.bf16.msrb.mxu2 %v7573_v28  ;;  %5589 = vmatpush.bf16.msrb.mxu3 %v7701_v61 }
 0x53c   : > { %5577 = vmatpush.bf16.msrb.mxu2 %v7557_v59  ;;  %5590 = vmatpush.bf16.msrb.mxu3 %v7685_v32  ;;  %v4746_v59 = vperm.slane %v4741_v26, 3 }
 0x540   : > { %5578 = vmatpush.bf16.msrb.mxu2 %v7541_v17  ;;  %5591 = vmatpush.bf16.msrb.mxu3 %v7669_v50 }
 0x544   : > { %5579 = vmatpush.bf16.msrb.mxu2 %v7525_v40  ;;  %5592 = vmatpush.bf16.msrb.mxu3 %v7653_v43 }
 0x548   : > { %5580 = vmatpush.bf16.msrb.mxu2 %v7509_v1  ;;  %5593 = vmatpush.bf16.msrb.mxu3 %v7637_v33 }
 0x54b   : > { %5581 = vmatmul.bf16.vlgmr.msrb.gmra.mxu2 %v12122_v24  ;;  %5594 = vmatmul.bf16.vlgmr.msrb.gmra.mxu3 %v12120_v56 }
 0x572   : > { %v5400_v5 = vpop.f32.mrf.mxu0  ;;  %v5413_v15 = vpop.f32.mrf.mxu1 }
 0x573   : > { %v5401_v25 = vadd.f32 %v5400_v5, %v4743_v27 }
 0x575   : > { %v5414_v9 = vadd.f32 %v5413_v15, %v5401_v25 }
 0x57a   : > { %v5402_v14 = vpop.f32.mrf.mxu0  ;;  %v5415_v37 = vpop.f32.mrf.mxu1 }
 0x582   : > { %v5452_v21 = vpop.f32.mrf.mxu0  ;;  %v5465_v49 = vpop.f32.mrf.mxu1 }
 0x583   : > { %v5453_v23 = vadd.f32 %v5452_v21, %v4744_v22 }
 0x585   : > { %v5466_v52 = vadd.f32 %v5465_v49, %v5453_v23 }
 0x58a   : > { %v5454_v29 = vpop.f32.mrf.mxu0  ;;  %v5467_v34 = vpop.f32.mrf.mxu1 }
 0x58e   : > { %v5426_v24 = vpop.f32.mrf.mxu2  ;;  %v5439_v56 = vpop.f32.mrf.mxu3 }
 0x58f   : > { %v5427_v39 = vadd.f32 %v5426_v24, %v5414_v9 }
 0x591   : > { %v5440_v63 = vadd.f32 %v5439_v56, %v5427_v39 }
 0x592   : > { %v5504_v13 = vpop.f32.mrf.mxu0  ;;  %v5517_v36 = vpop.f32.mrf.mxu1 }
 0x593   : > { %5599 = vst [vmem:[%s12430_s13] sm:$0xff] %v5440_v63  ;;  %v5505_v47 = vadd.f32 %v5504_v13, %v4745_v31 }
 0x595   : > { %v5518_v44 = vadd.f32 %v5517_v36, %v5505_v47 }
 0x596   : > { %v5428_v35 = vpop.f32.mrf.mxu2  ;;  %v5441_v42 = vpop.f32.mrf.mxu3 }
 0x59a   : > { %v5506_v51 = vpop.f32.mrf.mxu0  ;;  %v5519_v11 = vpop.f32.mrf.mxu1 }
 0x59e   : > { %v5478_v60 = vpop.f32.mrf.mxu2  ;;  %v5491_v45 = vpop.f32.mrf.mxu3 }
 0x59f   : > { %v5479_v54 = vadd.f32 %v5478_v60, %v5466_v52 }
 0x5a1   : > { %v5492_v57 = vadd.f32 %v5491_v45, %v5479_v54 }
 0x5a3   : > { %5600 = vst [vmem:[%s12430_s13 + $0x8] sm:$0xff] %v5492_v57 }
 0x5a6   : > { %v5480_v46 = vpop.f32.mrf.mxu2  ;;  %v5493_v41 = vpop.f32.mrf.mxu3 }
 0x5ae   : > { %v5530_v12 = vpop.f32.mrf.mxu2  ;;  %v5543_v62 = vpop.f32.mrf.mxu3 }
 0x5af   : > { %v5531_v28 = vadd.f32 %v5530_v12, %v5518_v44 }
 0x5b1   : > { %v5544_v61 = vadd.f32 %v5543_v62, %v5531_v28 }
 0x5b2   : > { %v5556_v48 = vpop.f32.mrf.mxu0  ;;  %v5569_v55 = vpop.f32.mrf.mxu1 }
 0x5b3   : > { %5601 = vst [vmem:[%s12430_s13 + $0x10] sm:$0xff] %v5544_v61  ;;  %v5557_v32 = vadd.f32 %v5556_v48, %v4746_v59 }
 0x5b5   : > { %v5570_v18 = vadd.f32 %v5569_v55, %v5557_v32 }
 0x5b6   : > { %v5532_v53 = vpop.f32.mrf.mxu2  ;;  %v5545_v8 = vpop.f32.mrf.mxu3 }
 0x5ba   : > { %v5558_v4 = vpop.f32.mrf.mxu0  ;;  %v5571_v6 = vpop.f32.mrf.mxu1 }
 0x5ce   : > { %v5582_v16 = vpop.f32.mrf.mxu2  ;;  %v5595_v7 = vpop.f32.mrf.mxu3 }
 0x5cf   : > { %v5583_v3 = vadd.f32 %v5582_v16, %v5570_v18 }
 0x5d1   : > { %v5596_v17 = vadd.f32 %v5595_v7, %v5583_v3 }
 0x5d3   : > { %5602 = vst [vmem:[%s12430_s13 + $0x18] sm:$0xff] %v5596_v17 }
 0x5d4   : > { %8411 = shalt.err (!%p8408_p3)
}
 0x5d5   : > { %8269 = dma.vmem_to_hbm [thread:$0]  (%p8519_p5), %s5618_s23, 512, %s5620_s25, %s5604_s26  }
 0x5d6   : > { %v5584_v50 = vpop.f32.mrf.mxu2  ;;  %v5597_v38 = vpop.f32.mrf.mxu3 }
 0x5d7 PF: > { %p8275_p4 = scmp.ge.s32.totalorder %s8446_s21, 2  ;;  %s5631_s10 = sand.u32 1, %s8434_s18  }
 0x5d8   : > { %s5632_s11 = scalar_lea.sflag [#allocation3], %s5631_s10 }
 0x5d9   : > { %p8272_p7 = pnand %p8275_p4, %p8523_p6 }
 0x5db   : > { %p8273_p8 = pneg %p8272_p7 }
 0x5dd   : > { %8429 = dma.done.wait (%p8273_p8), %s5632_s11, 512  }
 0x5de   : > { %8431 = vsyncadd (%p8273_p8), %s5632_s11, 4294966784  ;;  %p15_p5 = scmp.ge.s32.totalorder %s8506_s24, 4   ;;  %s12480_s18 = smov %s8438_s19 }
 0x5df   : > { %s12481_s19 = smov %s8442_s20  ;;  %s12482_s20 = smov %s8517_s27 }
 0x5e0   : > { %s12483_s21 = smov %s8506_s24  ;;  %17 = sbr.rel (!%p15_p5) target bundleno = 3 (0x3), region = 75 }
 0x5e5   :  { %5638 = vsyncpa [#allocation3], 1 }
 0x5e6   :  { %5640 = vsyncpa [#allocation3 + $0x1], 1 }

</bundles_post_ra>
